<compile_context>
chip_gen: v6e
topology: v6e:2x2x1
jax: 0.10.0
libtpu: 0.0.40
codegen_flags: <defaults>
</compile_context>

<pallas_src>
import jax
import jax.numpy as jnp
from jax import lax
from jax.experimental import pallas as pl
from jax.experimental.pallas import tpu as pltpu

# Module constants (fixed by nn.Conv2d(20, 50, kernel_size=(5,5), stride=1, padding=0))
CIN, COUT = 20, 50
KH, KW = 5, 5
POOL = 2
COUT_PAD = 64          # pad 50 -> 64 so the pooled-output lane width is a multiple of 128


def _c2_kernel(x_ref, w_ref, b_ref, o_ref):
    # x_ref: (2, BM, K)    im2row LHS, split by conv-output-row parity (K = KH*W*CIN)
    # w_ref: (K, 2*NP)     block-Toeplitz weight; cols = [even | odd] output-column parity
    # b_ref: (1, NP)       bias tiled over pooled columns (COUT padded to 64)
    # o_ref: (BM, NP)      pooled output, rows = (img, pooled-row), cols = (pooled-col, cout)
    np_ = o_ref.shape[-1]

    # two MXU dots (one per conv-row parity); kh & kw reductions live in K
    acc0 = jnp.dot(x_ref[0], w_ref[...], preferred_element_type=jnp.float32)
    acc1 = jnp.dot(x_ref[1], w_ref[...], preferred_element_type=jnp.float32)

    # 2x2 max-pool = max over column parity (aligned 256-lane halves) and row parity
    pooled = jnp.maximum(jnp.maximum(acc0[:, :np_], acc0[:, np_:]),
                         jnp.maximum(acc1[:, :np_], acc1[:, np_:]))

    # bias + ReLU, one dense lane-aligned store
    o_ref[...] = jnp.maximum(pooled + b_ref[...], 0.0).astype(o_ref.dtype)


def _build_pooled_toeplitz_weight(w_oihw, width, pw, dtype):
    """(COUT,CIN,KH,KW) -> (KH*width*CIN, 2*pw*COUT_PAD) zero-padded block-Toeplitz weight.

    W2[kh*width*CIN + cw*CIN + ci, dj*pw*COUT_PAD + j*COUT_PAD + o]
        = w[o, ci, kh, cw - (2j + dj)]   when that kw index is in [0, KW), else 0,
    so  im2row_row(b, i) @ W2  yields the valid-conv output at (row i, column 2j+dj) with
    kh and kw folded into the matmul K dimension and (parity, pooled column, cout) in N.
    Channels COUT..COUT_PAD-1 are zero padding (sliced off in the wrapper).
    """
    cout, cin, kh_, kw_ = w_oihw.shape
    wk = jnp.transpose(w_oihw, (2, 3, 1, 0)).astype(dtype)        # (KH, KW, CIN, COUT)
    w2 = jnp.zeros((kh_, width, cin, POOL, pw, COUT_PAD), dtype)
    for dj in range(POOL):
        for j in range(pw):
            c = POOL * j + dj
            for kw in range(kw_):
                w2 = w2.at[:, c + kw, :, dj, j, :cout].set(wk[:, kw])
    return w2.reshape(kh_ * width * cin, POOL * pw * COUT_PAD)


def _pick_images_per_block(n, ph, m_target=256):
    """Images folded into the pooled-row M dim per grid step (M = b*ph).

    The grid is a serial loop on 1-TC chips, so small problems use ONE step (no forced
    split); we only split once total M clearly exceeds m_target, keeping each step's M
    large enough to fill the MXU and the output block sublane dim a multiple of 8.
    """
    total_m = n * ph
    if total_m <= max(m_target, 8):
        return n
    b = max(1, m_target // max(ph, 1))
    while (b * ph) % 8 != 0 and b < n:
        b += 1
    if (b * ph) % 8 != 0:
        b = n              # single block == full array, always a legal block shape
    return min(b, n)


def c2_forward(x_nchw, w_oihw, bias, *, m_target=256):
    """Forward of C2. x_nchw: (N, 20, H, W); w_oihw: (50, 20, 5, 5); bias: (50,)."""
    n, cin, h, w = x_nchw.shape
    assert cin == CIN
    oh, ow = h - KH + 1, w - KW + 1                   # valid conv, stride 1
    assert oh % POOL == 0 and ow % POOL == 0, "pooling path assumes even conv-output dims"
    ph, pw = oh // POOL, ow // POOL
    k = KH * w * CIN                                  # contraction depth (1200 at LeNet)
    ncol = pw * COUT_PAD                              # pooled-output lane width (256)

    b_imgs = _pick_images_per_block(n, ph, m_target)
    npad = -(-n // b_imgs) * b_imgs
    block_m = b_imgs * ph

    # ---- im2row LHS, pre-split by conv-output-row parity (built once with XLA) ----
    x_nhwc = jnp.transpose(x_nchw, (0, 2, 3, 1)).astype(jnp.float32)     # (N, H, W, CIN)
    ridx = jnp.arange(oh)[:, None] + jnp.arange(KH)[None, :]             # (OH, KH)
    lhs = x_nhwc[:, ridx].reshape(n, oh, k)                              # (N, OH, K)
    lhs = lhs.reshape(n, ph, POOL, k)                                    # row i = 2*pi + di
    lhs = jnp.transpose(lhs, (2, 0, 1, 3)).reshape(POOL, n * ph, k)      # (2, N*PH, K)
    if npad != n:
        lhs = jnp.concatenate(
            [lhs, jnp.zeros((POOL, (npad - n) * ph, k), lhs.dtype)], axis=1)

    w2 = _build_pooled_toeplitz_weight(w_oihw, w, pw, jnp.float32)       # (K, 2*ncol)
    bias_pad = jnp.concatenate(
        [bias.astype(jnp.float32), jnp.zeros((COUT_PAD - COUT,), jnp.float32)])
    b2 = jnp.tile(bias_pad, pw).reshape(1, ncol)

    out2d = pl.pallas_call(
        _c2_kernel,
        out_shape=jax.ShapeDtypeStruct((npad * ph, ncol), x_nchw.dtype),
        grid_spec=pltpu.PrefetchScalarGridSpec(
            num_scalar_prefetch=0,
            grid=(npad // b_imgs,),
            in_specs=[
                pl.BlockSpec((POOL, block_m, k), lambda i: (0, i, 0)),
                pl.BlockSpec((k, 2 * ncol), lambda i: (0, 0)),
                pl.BlockSpec((1, ncol), lambda i: (0, 0)),
            ],
            out_specs=pl.BlockSpec((block_m, ncol), lambda i: (i, 0)),
        ),
        compiler_params=pltpu.CompilerParams(dimension_semantics=("parallel",)),
    )(lhs, w2, b2)

    # lane-dense slab -> NCHW, drop padded images / channels
    out = out2d.reshape(npad, ph, pw, COUT_PAD)[:n, :, :, :COUT]
    return jnp.transpose(out, (0, 3, 1, 2))


if __name__ == "__main__":
    key = jax.random.PRNGKey(0)
    kx, kw_, kb = jax.random.split(key, 3)

    # LeNet5 C2 sees 12x12 feature maps with 20 channels; small batch of 4.
    N, H, W = 4, 12, 12
    x = jax.random.normal(kx, (N, CIN, H, W), jnp.float32)
    wt = jax.random.normal(kw_, (COUT, CIN, KH, KW), jnp.float32) * 0.05
    bias = jax.random.normal(kb, (COUT,), jnp.float32) * 0.05

    fwd = jax.jit(c2_forward)
    out = jax.block_until_ready(fwd(x, wt, bias))

    # Pure-JAX reference.
    conv = lax.conv_general_dilated(x, wt, (1, 1), "VALID",
                                    dimension_numbers=("NCHW", "OIHW", "NCHW"),
                                    precision=lax.Precision.HIGHEST)
    conv = jnp.maximum(conv + bias[None, :, None, None], 0.0)
    ref = lax.reduce_window(conv, -jnp.inf, lax.max,
                            (1, 1, 2, 2), (1, 1, 2, 2), "VALID")

    assert out.shape == (N, COUT, 4, 4), out.shape
    assert jnp.allclose(out, ref, atol=5e-4, rtol=5e-4), "mismatch vs reference"
    print("KERNEL_OK")
</pallas_src>

<mosaic_0001>
module attributes {stable_mosaic.version = 11 : i64} {
  func.func @_c2_kernel(%arg0: i32, %arg1: memref<2x16x1200xf32, #tpu.memory_space<vmem>>, %arg2: memref<1200x512xf32, #tpu.memory_space<vmem>>, %arg3: memref<1x256xf32, #tpu.memory_space<vmem>>, %arg4: memref<16x256xf32, #tpu.memory_space<vmem>>) attributes {dimension_semantics = [#tpu.dimension_semantics<parallel>], iteration_bounds = array<i64: 1>, scalar_prefetch = 0 : i64, scratch_operands = 0 : i64, tpu.core_type = #tpu.core_type<tc>, window_params = [{transform_indices = @transform_0, window_bounds = array<i64: 2, 16, 1200>}, {pipeline_mode = #tpu.pipeline_mode<synchronous>, transform_indices = @transform_1, window_bounds = array<i64: 1200, 512>}, {pipeline_mode = #tpu.pipeline_mode<synchronous>, transform_indices = @transform_2, window_bounds = array<i64: 1, 256>}, {transform_indices = @transform_3, window_bounds = array<i64: 16, 256>}]} {
    %c0 = arith.constant 0 : index
    %c0_0 = arith.constant 0 : index
    %c0_1 = arith.constant 0 : index
    %0 = vector.load %arg1[%c0, %c0_0, %c0_1] : memref<2x16x1200xf32, #tpu.memory_space<vmem>>, vector<1x16x1200xf32>
    %1 = vector.shape_cast %0 : vector<1x16x1200xf32> to vector<16x1200xf32>
    %c0_2 = arith.constant 0 : index
    %c0_3 = arith.constant 0 : index
    %2 = vector.load %arg2[%c0_2, %c0_3] : memref<1200x512xf32, #tpu.memory_space<vmem>>, vector<1200x512xf32>
    %cst = arith.constant dense<0.000000e+00> : vector<16x512xf32>
    %3 = tpu.matmul %1, %2, %cst {dimension_numbers = #tpu.dot_dimension_numbers<[1], [0], [0], [1], [0, 0, 1, 1], [], []>} : vector<16x1200xf32>, vector<1200x512xf32>, vector<16x512xf32> -> vector<16x512xf32>
    %c1 = arith.constant 1 : index
    %c0_4 = arith.constant 0 : index
    %c0_5 = arith.constant 0 : index
    %4 = vector.load %arg1[%c1, %c0_4, %c0_5] : memref<2x16x1200xf32, #tpu.memory_space<vmem>>, vector<1x16x1200xf32>
    %5 = vector.shape_cast %4 : vector<1x16x1200xf32> to vector<16x1200xf32>
    %c0_6 = arith.constant 0 : index
    %c0_7 = arith.constant 0 : index
    %6 = vector.load %arg2[%c0_6, %c0_7] : memref<1200x512xf32, #tpu.memory_space<vmem>>, vector<1200x512xf32>
    %cst_8 = arith.constant dense<0.000000e+00> : vector<16x512xf32>
    %7 = tpu.matmul %5, %6, %cst_8 {dimension_numbers = #tpu.dot_dimension_numbers<[1], [0], [0], [1], [0, 0, 1, 1], [], []>} : vector<16x1200xf32>, vector<1200x512xf32>, vector<16x512xf32> -> vector<16x512xf32>
    %8 = vector.extract_strided_slice %3 {offsets = [0, 0], sizes = [16, 256], strides = [1, 1]} : vector<16x512xf32> to vector<16x256xf32>
    %9 = vector.extract_strided_slice %3 {offsets = [0, 256], sizes = [16, 256], strides = [1, 1]} : vector<16x512xf32> to vector<16x256xf32>
    %10 = arith.maximumf %8, %9 : vector<16x256xf32>
    %11 = vector.extract_strided_slice %7 {offsets = [0, 0], sizes = [16, 256], strides = [1, 1]} : vector<16x512xf32> to vector<16x256xf32>
    %12 = vector.extract_strided_slice %7 {offsets = [0, 256], sizes = [16, 256], strides = [1, 1]} : vector<16x512xf32> to vector<16x256xf32>
    %13 = arith.maximumf %11, %12 : vector<16x256xf32>
    %14 = arith.maximumf %10, %13 : vector<16x256xf32>
    %c0_9 = arith.constant 0 : index
    %c0_10 = arith.constant 0 : index
    %15 = vector.load %arg3[%c0_9, %c0_10] : memref<1x256xf32, #tpu.memory_space<vmem>>, vector<1x256xf32>
    %16 = vector.broadcast %15 : vector<1x256xf32> to vector<16x256xf32>
    %17 = arith.addf %14, %16 : vector<16x256xf32>
    %cst_11 = arith.constant 0.000000e+00 : f32
    %18 = vector.broadcast %cst_11 : f32 to vector<16x256xf32>
    %19 = arith.maximumf %17, %18 : vector<16x256xf32>
    %c0_12 = arith.constant 0 : index
    %c0_13 = arith.constant 0 : index
    %20 = vector.load %arg4[%c0_12, %c0_13] : memref<16x256xf32, #tpu.memory_space<vmem>>, vector<16x256xf32>
    tpu.vector_store %arg4[%c0_12, %c0_13], %19 {strides = array<i32>} : memref<16x256xf32, #tpu.memory_space<vmem>>, vector<16x256xf32>,
    return
  }
  func.func @transform_0(%arg0: i32) -> (i32, i32, i32) {
    %c0_i32 = arith.constant 0 : i32
    %c0_i32_0 = arith.constant 0 : i32
    %c0_i32_1 = arith.constant 0 : i32
    return %c0_i32, %arg0, %c0_i32_0 : i32, i32, i32
  }
  func.func @transform_1(%arg0: i32) -> (i32, i32) {
    %c0_i32 = arith.constant 0 : i32
    %c0_i32_0 = arith.constant 0 : i32
    %c0_i32_1 = arith.constant 0 : i32
    return %c0_i32, %c0_i32_0 : i32, i32
  }
  func.func @transform_2(%arg0: i32) -> (i32, i32) {
    %c0_i32 = arith.constant 0 : i32
    %c0_i32_0 = arith.constant 0 : i32
    %c0_i32_1 = arith.constant 0 : i32
    return %c0_i32, %c0_i32_0 : i32, i32
  }
  func.func @transform_3(%arg0: i32) -> (i32, i32) {
    %c0_i32 = arith.constant 0 : i32
    %c0_i32_0 = arith.constant 0 : i32
    return %arg0, %c0_i32 : i32, i32
  }
}

</mosaic_0001>

<bundles_post_ra>
// kernel: tile.8
= control target key start
LH: loop header
LB: loop body
LE: loop exit
PB: predicated region body
PF: predicated region fallthrough
CT: control target
= control target key end

     0   :  { %s22_s0 = inlined_call_operand.vmem [shape: f32[64], index: 0, kind: input, shape index: {}]   ;;  %s23_s1 = inlined_call_operand.vmem [shape: f32[4,64], index: 1, kind: output, shape index: {}]  }
   0x1   :  { %v4_v0 = vld [vmem:[%s22_s0] ss:$0 sm:$0xff] }
   0x2   :  { %5 = vst [vmem:[%s23_s1] sm:$0xf] %v4_v0 }

// kernel: tile.9
= control target key start
LH: loop header
LB: loop body
LE: loop exit
PB: predicated region body
PF: predicated region fallthrough
CT: control target
= control target key end

     0   :  { %s7_s8 = smov 3  ;;  %vm9_vm0 = vcmask 523264   ;;  %s34_s9 = smov 64   ;;  %vm16_vm1 = vcmask 1048064   ;;  %s54_s0 = inlined_call_operand.vmem [shape: f32[4,64], index: 0, kind: input, shape index: {}]   ;;  %s55_s1 = inlined_call_operand.vmem [shape: f32[1,256], index: 1, kind: output, shape index: {}]  }
   0x1   :  { %v5_v0 = vld [vmem:[%s54_s0] sm:$0xf]  ;;  %s12_s0 = smov 3 }
   0x2   :  { %6 = vst [vmem:[#allocation1] sm:$0xf] %v5_v0 }
   0x9   :  { %v13_v1 = vld [vmem:[#allocation1 + $0x1] ss:$2 sm:%s12_s0]   ;;  %v8_v2 = vld [vmem:[#allocation1] ss:$2 sm:%s7_s8]  }
   0xa   :  { %14 = vrot.lane.b32.xlu0 %v13_v1, %s34_s9  ;;  %10 = vst.msk [vmem:[#allocation0] ss:$8 sm:$0x3] %vm9_vm0, %v8_v2  }
  0x7c   :  { %v15_v3 = vpop.permute.xlu0 %14  }
  0x7d   :  { %17 = vst.msk [vmem:[#allocation0] ss:$8 sm:$0x3] %vm16_vm1, %v15_v3  }
  0x84   :  { %v22_v4 = vld [vmem:[#allocation0] sm:$0x1]  ;;  %v27_v5 = vld [vmem:[#allocation0 + $0x8] sm:$0x1] }
  0x85   :  { %25 = vst [vmem:[%s55_s1] sm:$0x1] %v22_v4  ;;  %32 = vst [vmem:[%s55_s1 + $0x1] sm:$0x1] %v27_v5 }

// kernel: c2_forward.1
= control target key start
LH: loop header
LB: loop body
LE: loop exit
PB: predicated region body
PF: predicated region fallthrough
CT: control target
= control target key end

     0   :  { %vm634_vm0 = vcmask 392192   ;;  %s6901_s1 = inlined_call_operand.vmem [shape: f32[1200,512], index: 1, kind: input, shape index: {}]   ;;  %s6902_s0 = inlined_call_operand.vmem [shape: f32[2,16,1200], index: 0, kind: input, shape index: {}]   ;;  %s6903_s2 = inlined_call_operand.vmem [shape: f32[1,256], index: 2, kind: input, shape index: {}]   ;;  %s6904_s3 = inlined_call_operand.vmem [shape: f32[16,256], index: 3, kind: output, shape index: {}]  }
   0x1   :  { %v95_v0 = vld [vmem:[%s6901_s1 + $0x1e8] sm:$0xff]  ;;  %v94_v2 = vld [vmem:[%s6901_s1 + $0x1e0] sm:$0xff] }
   0x2   :  { %v223_v1 = vld [vmem:[%s6901_s1 + $0x5e8] sm:$0xff]  ;;  %641 = vmatprep.subr.mxu0 %v95_v0  ;;  %v222_v3 = vld [vmem:[%s6901_s1 + $0x5e0] sm:$0xff] }
   0x3   :  { %718 = vmatprep.subr.mxu1 %v223_v1  ;;  %v91_v4 = vld [vmem:[%s6901_s1 + $0x1c8] sm:$0xff]  ;;  %642 = vmatpush1.msra.mxu0 %v94_v2  ;;  %v90_v6 = vld [vmem:[%s6901_s1 + $0x1c0] sm:$0xff] }
   0x4   :  { %v219_v5 = vld [vmem:[%s6901_s1 + $0x5c8] sm:$0xff]  ;;  %719 = vmatpush1.msra.mxu1 %v222_v3  ;;  %v218_v7 = vld [vmem:[%s6901_s1 + $0x5c0] sm:$0xff]  ;;  %643 = vmatprep.subr.mxu0 %v91_v4 }
   0x5   :  { %v87_v8 = vld [vmem:[%s6901_s1 + $0x1a8] sm:$0xff]  ;;  %720 = vmatprep.subr.mxu1 %v219_v5  ;;  %v86_v10 = vld [vmem:[%s6901_s1 + $0x1a0] sm:$0xff]  ;;  %644 = vmatpush1.msra.mxu0 %v90_v6 }
   0x6   :  { %v215_v9 = vld [vmem:[%s6901_s1 + $0x5a8] sm:$0xff]  ;;  %v214_v11 = vld [vmem:[%s6901_s1 + $0x5a0] sm:$0xff]  ;;  %721 = vmatpush1.msra.mxu1 %v218_v7  ;;  %645 = vmatprep.subr.mxu0 %v87_v8 }
   0x7   :  { %v83_v12 = vld [vmem:[%s6901_s1 + $0x188] sm:$0xff]  ;;  %722 = vmatprep.subr.mxu1 %v215_v9  ;;  %v82_v14 = vld [vmem:[%s6901_s1 + $0x180] sm:$0xff]  ;;  %646 = vmatpush1.msra.mxu0 %v86_v10 }
   0x8   :  { %v211_v13 = vld [vmem:[%s6901_s1 + $0x588] sm:$0xff]  ;;  %v210_v15 = vld [vmem:[%s6901_s1 + $0x580] sm:$0xff]  ;;  %723 = vmatpush1.msra.mxu1 %v214_v11  ;;  %647 = vmatprep.subr.mxu0 %v83_v12 }
   0x9   :  { %v79_v16 = vld [vmem:[%s6901_s1 + $0x168] sm:$0xff]  ;;  %724 = vmatprep.subr.mxu1 %v211_v13  ;;  %v78_v18 = vld [vmem:[%s6901_s1 + $0x160] sm:$0xff]  ;;  %648 = vmatpush1.msra.mxu0 %v82_v14 }
   0xa   :  { %v207_v17 = vld [vmem:[%s6901_s1 + $0x568] sm:$0xff]  ;;  %v206_v19 = vld [vmem:[%s6901_s1 + $0x560] sm:$0xff]  ;;  %725 = vmatpush1.msra.mxu1 %v210_v15  ;;  %649 = vmatprep.subr.mxu0 %v79_v16 }
   0xb   :  { %v75_v20 = vld [vmem:[%s6901_s1 + $0x148] sm:$0xff]  ;;  %726 = vmatprep.subr.mxu1 %v207_v17  ;;  %v74_v22 = vld [vmem:[%s6901_s1 + $0x140] sm:$0xff]  ;;  %650 = vmatpush1.msra.mxu0 %v78_v18 }
   0xc   :  { %v203_v21 = vld [vmem:[%s6901_s1 + $0x548] sm:$0xff]  ;;  %v202_v23 = vld [vmem:[%s6901_s1 + $0x540] sm:$0xff]  ;;  %727 = vmatpush1.msra.mxu1 %v206_v19  ;;  %651 = vmatprep.subr.mxu0 %v75_v20 }
   0xd   :  { %v71_v24 = vld [vmem:[%s6901_s1 + $0x128] sm:$0xff]  ;;  %728 = vmatprep.subr.mxu1 %v203_v21  ;;  %v70_v26 = vld [vmem:[%s6901_s1 + $0x120] sm:$0xff]  ;;  %652 = vmatpush1.msra.mxu0 %v74_v22 }
   0xe   :  { %v199_v25 = vld [vmem:[%s6901_s1 + $0x528] sm:$0xff]  ;;  %v198_v27 = vld [vmem:[%s6901_s1 + $0x520] sm:$0xff]  ;;  %729 = vmatpush1.msra.mxu1 %v202_v23  ;;  %653 = vmatprep.subr.mxu0 %v71_v24 }
   0xf   :  { %v67_v28 = vld [vmem:[%s6901_s1 + $0x108] sm:$0xff]  ;;  %730 = vmatprep.subr.mxu1 %v199_v25  ;;  %v66_v30 = vld [vmem:[%s6901_s1 + $0x100] sm:$0xff]  ;;  %654 = vmatpush1.msra.mxu0 %v70_v26 }
  0x10   :  { %v195_v29 = vld [vmem:[%s6901_s1 + $0x508] sm:$0xff]  ;;  %v194_v31 = vld [vmem:[%s6901_s1 + $0x500] sm:$0xff]  ;;  %731 = vmatpush1.msra.mxu1 %v198_v27  ;;  %655 = vmatprep.subr.mxu0 %v67_v28 }
  0x11   :  { %v63_v32 = vld [vmem:[%s6901_s1 + $0xe8] sm:$0xff]  ;;  %732 = vmatprep.subr.mxu1 %v195_v29  ;;  %v62_v34 = vld [vmem:[%s6901_s1 + $0xe0] sm:$0xff]  ;;  %656 = vmatpush1.msra.mxu0 %v66_v30 }
  0x12   :  { %v191_v33 = vld [vmem:[%s6901_s1 + $0x4e8] sm:$0xff]  ;;  %v190_v35 = vld [vmem:[%s6901_s1 + $0x4e0] sm:$0xff]  ;;  %733 = vmatpush1.msra.mxu1 %v194_v31  ;;  %657 = vmatprep.subr.mxu0 %v63_v32 }
  0x13   :  { %v59_v36 = vld [vmem:[%s6901_s1 + $0xc8] sm:$0xff]  ;;  %734 = vmatprep.subr.mxu1 %v191_v33  ;;  %v58_v38 = vld [vmem:[%s6901_s1 + $0xc0] sm:$0xff]  ;;  %658 = vmatpush1.msra.mxu0 %v62_v34 }
  0x14   :  { %v187_v37 = vld [vmem:[%s6901_s1 + $0x4c8] sm:$0xff]  ;;  %v186_v39 = vld [vmem:[%s6901_s1 + $0x4c0] sm:$0xff]  ;;  %735 = vmatpush1.msra.mxu1 %v190_v35  ;;  %659 = vmatprep.subr.mxu0 %v59_v36 }
  0x15   :  { %v55_v40 = vld [vmem:[%s6901_s1 + $0xa8] sm:$0xff]  ;;  %736 = vmatprep.subr.mxu1 %v187_v37  ;;  %v54_v42 = vld [vmem:[%s6901_s1 + $0xa0] sm:$0xff]  ;;  %660 = vmatpush1.msra.mxu0 %v58_v38 }
  0x16   :  { %v183_v41 = vld [vmem:[%s6901_s1 + $0x4a8] sm:$0xff]  ;;  %v182_v43 = vld [vmem:[%s6901_s1 + $0x4a0] sm:$0xff]  ;;  %737 = vmatpush1.msra.mxu1 %v186_v39  ;;  %661 = vmatprep.subr.mxu0 %v55_v40 }
  0x17   :  { %v51_v44 = vld [vmem:[%s6901_s1 + $0x88] sm:$0xff]  ;;  %738 = vmatprep.subr.mxu1 %v183_v41  ;;  %v50_v46 = vld [vmem:[%s6901_s1 + $0x80] sm:$0xff]  ;;  %662 = vmatpush1.msra.mxu0 %v54_v42 }
  0x18   :  { %v179_v45 = vld [vmem:[%s6901_s1 + $0x488] sm:$0xff]  ;;  %v178_v47 = vld [vmem:[%s6901_s1 + $0x480] sm:$0xff]  ;;  %739 = vmatpush1.msra.mxu1 %v182_v43  ;;  %663 = vmatprep.subr.mxu0 %v51_v44 }
  0x19   :  { %v47_v48 = vld [vmem:[%s6901_s1 + $0x68] sm:$0xff]  ;;  %740 = vmatprep.subr.mxu1 %v179_v45  ;;  %v46_v50 = vld [vmem:[%s6901_s1 + $0x60] sm:$0xff]  ;;  %664 = vmatpush1.msra.mxu0 %v50_v46 }
  0x1a   :  { %v175_v49 = vld [vmem:[%s6901_s1 + $0x468] sm:$0xff]  ;;  %v174_v51 = vld [vmem:[%s6901_s1 + $0x460] sm:$0xff]  ;;  %741 = vmatpush1.msra.mxu1 %v178_v47  ;;  %665 = vmatprep.subr.mxu0 %v47_v48 }
  0x1b   :  { %v43_v52 = vld [vmem:[%s6901_s1 + $0x48] sm:$0xff]  ;;  %742 = vmatprep.subr.mxu1 %v175_v49  ;;  %v42_v54 = vld [vmem:[%s6901_s1 + $0x40] sm:$0xff]  ;;  %666 = vmatpush1.msra.mxu0 %v46_v50 }
  0x1c   :  { %v171_v53 = vld [vmem:[%s6901_s1 + $0x448] sm:$0xff]  ;;  %v170_v55 = vld [vmem:[%s6901_s1 + $0x440] sm:$0xff]  ;;  %743 = vmatpush1.msra.mxu1 %v174_v51  ;;  %667 = vmatprep.subr.mxu0 %v43_v52 }
  0x1d   :  { %v39_v56 = vld [vmem:[%s6901_s1 + $0x28] sm:$0xff]  ;;  %744 = vmatprep.subr.mxu1 %v171_v53  ;;  %v38_v58 = vld [vmem:[%s6901_s1 + $0x20] sm:$0xff]  ;;  %668 = vmatpush1.msra.mxu0 %v42_v54 }
  0x1e   :  { %v167_v57 = vld [vmem:[%s6901_s1 + $0x428] sm:$0xff]  ;;  %v166_v59 = vld [vmem:[%s6901_s1 + $0x420] sm:$0xff]  ;;  %745 = vmatpush1.msra.mxu1 %v170_v55  ;;  %669 = vmatprep.subr.mxu0 %v39_v56 }
  0x1f   :  { %v35_v60 = vld [vmem:[%s6901_s1 + $0x8] sm:$0xff]  ;;  %746 = vmatprep.subr.mxu1 %v167_v57  ;;  %v34_v62 = vld [vmem:[%s6901_s1] sm:$0xff]  ;;  %670 = vmatpush1.msra.mxu0 %v38_v58 }
  0x20   :  { %v163_v61 = vld [vmem:[%s6901_s1 + $0x408] sm:$0xff]  ;;  %v162_v63 = vld [vmem:[%s6901_s1 + $0x400] sm:$0xff]  ;;  %747 = vmatpush1.msra.mxu1 %v166_v59  ;;  %671 = vmatprep.subr.mxu0 %v35_v60 }
  0x21   :  { %v159_v0 = vld [vmem:[%s6901_s1 + $0x3e8] sm:$0xff]  ;;  %748 = vmatprep.subr.mxu1 %v163_v61  ;;  %v158_v2 = vld [vmem:[%s6901_s1 + $0x3e0] sm:$0xff]  ;;  %672 = vmatpush1.msra.mxu0 %v34_v62 }
  0x22   :  { %v287_v1 = vld [vmem:[%s6901_s1 + $0x7e8] sm:$0xff]  ;;  %v286_v3 = vld [vmem:[%s6901_s1 + $0x7e0] sm:$0xff]  ;;  %749 = vmatpush1.msra.mxu1 %v162_v63  ;;  %673 = vmatprep.subr.mxu0 %v159_v0 }
  0x23   :  { %v155_v4 = vld [vmem:[%s6901_s1 + $0x3c8] sm:$0xff]  ;;  %750 = vmatprep.subr.mxu1 %v287_v1  ;;  %v154_v6 = vld [vmem:[%s6901_s1 + $0x3c0] sm:$0xff]  ;;  %674 = vmatpush2.msra.mxu0 %v158_v2  ;;  %v17_v1 = vld [vmem:[%s6902_s0 + $0x18] sm:$0xff] }
  0x24   :  { %v283_v5 = vld [vmem:[%s6901_s1 + $0x7c8] sm:$0xff]  ;;  %v282_v7 = vld [vmem:[%s6901_s1 + $0x7c0] sm:$0xff]  ;;  %751 = vmatpush2.msra.mxu1 %v286_v3  ;;  %675 = vmatprep.subr.mxu0 %v155_v4  ;;  %v16_v3 = vld [vmem:[%s6902_s0 + $0x10] sm:$0xff] }
  0x25   :  { %v151_v8 = vld [vmem:[%s6901_s1 + $0x3a8] sm:$0xff]  ;;  %752 = vmatprep.subr.mxu1 %v283_v5  ;;  %v150_v10 = vld [vmem:[%s6901_s1 + $0x3a0] sm:$0xff]  ;;  %676 = vmatpush2.msra.mxu0 %v154_v6 }
  0x26   :  { %v279_v9 = vld [vmem:[%s6901_s1 + $0x7a8] sm:$0xff]  ;;  %v278_v11 = vld [vmem:[%s6901_s1 + $0x7a0] sm:$0xff]  ;;  %753 = vmatpush2.msra.mxu1 %v282_v7  ;;  %677 = vmatprep.subr.mxu0 %v151_v8 }
  0x27   :  { %v147_v12 = vld [vmem:[%s6901_s1 + $0x388] sm:$0xff]  ;;  %754 = vmatprep.subr.mxu1 %v279_v9  ;;  %v146_v14 = vld [vmem:[%s6901_s1 + $0x380] sm:$0xff]  ;;  %678 = vmatpush2.msra.mxu0 %v150_v10 }
  0x28   :  { %v275_v13 = vld [vmem:[%s6901_s1 + $0x788] sm:$0xff]  ;;  %v274_v15 = vld [vmem:[%s6901_s1 + $0x780] sm:$0xff]  ;;  %755 = vmatpush2.msra.mxu1 %v278_v11  ;;  %679 = vmatprep.subr.mxu0 %v147_v12 }
  0x29   :  { %v143_v16 = vld [vmem:[%s6901_s1 + $0x368] sm:$0xff]  ;;  %756 = vmatprep.subr.mxu1 %v275_v13  ;;  %v142_v18 = vld [vmem:[%s6901_s1 + $0x360] sm:$0xff]  ;;  %680 = vmatpush2.msra.mxu0 %v146_v14 }
  0x2a   :  { %v271_v17 = vld [vmem:[%s6901_s1 + $0x768] sm:$0xff]  ;;  %v270_v19 = vld [vmem:[%s6901_s1 + $0x760] sm:$0xff]  ;;  %757 = vmatpush2.msra.mxu1 %v274_v15  ;;  %681 = vmatprep.subr.mxu0 %v143_v16 }
  0x2b   :  { %v139_v20 = vld [vmem:[%s6901_s1 + $0x348] sm:$0xff]  ;;  %758 = vmatprep.subr.mxu1 %v271_v17  ;;  %v138_v22 = vld [vmem:[%s6901_s1 + $0x340] sm:$0xff]  ;;  %682 = vmatpush2.msra.mxu0 %v142_v18 }
  0x2c   :  { %v267_v21 = vld [vmem:[%s6901_s1 + $0x748] sm:$0xff]  ;;  %v266_v23 = vld [vmem:[%s6901_s1 + $0x740] sm:$0xff]  ;;  %759 = vmatpush2.msra.mxu1 %v270_v19  ;;  %683 = vmatprep.subr.mxu0 %v139_v20 }
  0x2d   :  { %v135_v24 = vld [vmem:[%s6901_s1 + $0x328] sm:$0xff]  ;;  %760 = vmatprep.subr.mxu1 %v267_v21  ;;  %v134_v26 = vld [vmem:[%s6901_s1 + $0x320] sm:$0xff]  ;;  %684 = vmatpush2.msra.mxu0 %v138_v22 }
  0x2e   :  { %v263_v25 = vld [vmem:[%s6901_s1 + $0x728] sm:$0xff]  ;;  %v262_v27 = vld [vmem:[%s6901_s1 + $0x720] sm:$0xff]  ;;  %761 = vmatpush2.msra.mxu1 %v266_v23  ;;  %685 = vmatprep.subr.mxu0 %v135_v24 }
  0x2f   :  { %v131_v28 = vld [vmem:[%s6901_s1 + $0x308] sm:$0xff]  ;;  %762 = vmatprep.subr.mxu1 %v263_v25  ;;  %v130_v30 = vld [vmem:[%s6901_s1 + $0x300] sm:$0xff]  ;;  %686 = vmatpush2.msra.mxu0 %v134_v26 }
  0x30   :  { %v259_v29 = vld [vmem:[%s6901_s1 + $0x708] sm:$0xff]  ;;  %v258_v31 = vld [vmem:[%s6901_s1 + $0x700] sm:$0xff]  ;;  %763 = vmatpush2.msra.mxu1 %v262_v27  ;;  %687 = vmatprep.subr.mxu0 %v131_v28 }
  0x31   :  { %v127_v32 = vld [vmem:[%s6901_s1 + $0x2e8] sm:$0xff]  ;;  %764 = vmatprep.subr.mxu1 %v259_v29  ;;  %v126_v34 = vld [vmem:[%s6901_s1 + $0x2e0] sm:$0xff]  ;;  %688 = vmatpush2.msra.mxu0 %v130_v30 }
  0x32   :  { %v255_v33 = vld [vmem:[%s6901_s1 + $0x6e8] sm:$0xff]  ;;  %v254_v35 = vld [vmem:[%s6901_s1 + $0x6e0] sm:$0xff]  ;;  %765 = vmatpush2.msra.mxu1 %v258_v31  ;;  %689 = vmatprep.subr.mxu0 %v127_v32 }
  0x33   :  { %v123_v36 = vld [vmem:[%s6901_s1 + $0x2c8] sm:$0xff]  ;;  %766 = vmatprep.subr.mxu1 %v255_v33  ;;  %v122_v38 = vld [vmem:[%s6901_s1 + $0x2c0] sm:$0xff]  ;;  %690 = vmatpush2.msra.mxu0 %v126_v34 }
  0x34   :  { %v251_v37 = vld [vmem:[%s6901_s1 + $0x6c8] sm:$0xff]  ;;  %v250_v39 = vld [vmem:[%s6901_s1 + $0x6c0] sm:$0xff]  ;;  %767 = vmatpush2.msra.mxu1 %v254_v35  ;;  %691 = vmatprep.subr.mxu0 %v123_v36 }
  0x35   :  { %v119_v40 = vld [vmem:[%s6901_s1 + $0x2a8] sm:$0xff]  ;;  %768 = vmatprep.subr.mxu1 %v251_v37  ;;  %v118_v42 = vld [vmem:[%s6901_s1 + $0x2a0] sm:$0xff]  ;;  %692 = vmatpush2.msra.mxu0 %v122_v38 }
  0x36   :  { %v247_v41 = vld [vmem:[%s6901_s1 + $0x6a8] sm:$0xff]  ;;  %v246_v43 = vld [vmem:[%s6901_s1 + $0x6a0] sm:$0xff]  ;;  %769 = vmatpush2.msra.mxu1 %v250_v39  ;;  %693 = vmatprep.subr.mxu0 %v119_v40 }
  0x37   :  { %v115_v44 = vld [vmem:[%s6901_s1 + $0x288] sm:$0xff]  ;;  %770 = vmatprep.subr.mxu1 %v247_v41  ;;  %v114_v46 = vld [vmem:[%s6901_s1 + $0x280] sm:$0xff]  ;;  %694 = vmatpush2.msra.mxu0 %v118_v42 }
  0x38   :  { %v243_v45 = vld [vmem:[%s6901_s1 + $0x688] sm:$0xff]  ;;  %v242_v47 = vld [vmem:[%s6901_s1 + $0x680] sm:$0xff]  ;;  %771 = vmatpush2.msra.mxu1 %v246_v43  ;;  %695 = vmatprep.subr.mxu0 %v115_v44 }
  0x39   :  { %v111_v48 = vld [vmem:[%s6901_s1 + $0x268] sm:$0xff]  ;;  %772 = vmatprep.subr.mxu1 %v243_v45  ;;  %v110_v50 = vld [vmem:[%s6901_s1 + $0x260] sm:$0xff]  ;;  %696 = vmatpush2.msra.mxu0 %v114_v46 }
  0x3a   :  { %v239_v49 = vld [vmem:[%s6901_s1 + $0x668] sm:$0xff]  ;;  %v238_v51 = vld [vmem:[%s6901_s1 + $0x660] sm:$0xff]  ;;  %773 = vmatpush2.msra.mxu1 %v242_v47  ;;  %697 = vmatprep.subr.mxu0 %v111_v48 }
  0x3b   :  { %v107_v52 = vld [vmem:[%s6901_s1 + $0x248] sm:$0xff]  ;;  %774 = vmatprep.subr.mxu1 %v239_v49  ;;  %v106_v54 = vld [vmem:[%s6901_s1 + $0x240] sm:$0xff]  ;;  %698 = vmatpush2.msra.mxu0 %v110_v50 }
  0x3c   :  { %v235_v53 = vld [vmem:[%s6901_s1 + $0x648] sm:$0xff]  ;;  %v234_v55 = vld [vmem:[%s6901_s1 + $0x640] sm:$0xff]  ;;  %775 = vmatpush2.msra.mxu1 %v238_v51  ;;  %699 = vmatprep.subr.mxu0 %v107_v52 }
  0x3d   :  { %v103_v56 = vld [vmem:[%s6901_s1 + $0x228] sm:$0xff]  ;;  %776 = vmatprep.subr.mxu1 %v235_v53  ;;  %v102_v58 = vld [vmem:[%s6901_s1 + $0x220] sm:$0xff]  ;;  %700 = vmatpush2.msra.mxu0 %v106_v54 }
  0x3e   :  { %v231_v57 = vld [vmem:[%s6901_s1 + $0x628] sm:$0xff]  ;;  %v230_v59 = vld [vmem:[%s6901_s1 + $0x620] sm:$0xff]  ;;  %777 = vmatpush2.msra.mxu1 %v234_v55  ;;  %701 = vmatprep.subr.mxu0 %v103_v56 }
  0x3f   :  { %v99_v60 = vld [vmem:[%s6901_s1 + $0x208] sm:$0xff]  ;;  %778 = vmatprep.subr.mxu1 %v231_v57  ;;  %v98_v62 = vld [vmem:[%s6901_s1 + $0x200] sm:$0xff]  ;;  %702 = vmatpush2.msra.mxu0 %v102_v58 }
  0x40   :  { %v227_v61 = vld [vmem:[%s6901_s1 + $0x608] sm:$0xff]  ;;  %779 = vmatpush2.msra.mxu1 %v230_v59  ;;  %v226_v0 = vld [vmem:[%s6901_s1 + $0x600] sm:$0xff]  ;;  %703 = vmatprep.subr.mxu0 %v99_v60 }
  0x41   :  { %v15_v63 = vld [vmem:[%s6902_s0 + $0x8] sm:$0xff]  ;;  %780 = vmatprep.subr.mxu1 %v227_v61  ;;  %v14_v2 = vld [vmem:[%s6902_s0] sm:$0xff]  ;;  %704 = vmatpush2.msra.mxu0 %v98_v62 }
  0x42   :  { %705 = vmatprep.mubr.f32.mxu0 %v15_v63  ;;  %v351_v4 = vld [vmem:[%s6901_s1 + $0x9e8] sm:$0xff]  ;;  %781 = vmatpush2.msra.mxu1 %v226_v0  ;;  %v350_v6 = vld [vmem:[%s6901_s1 + $0x9e0] sm:$0xff] }
  0x43   :  { %v479_v5 = vld [vmem:[%s6901_s1 + $0xde8] sm:$0xff]  ;;  %782 = vmatprep.mubr.f32.mxu1 %v17_v1  ;;  %v478_v7 = vld [vmem:[%s6901_s1 + $0xde0] sm:$0xff]  ;;  %706 = vmatmul.mubr.f32.vlgmr.msra.gmra.mxu0 %v14_v2 }
  0x44   :  { %783 = vmatmul.mubr.f32.vlgmr.msra.gmra.mxu1 %v16_v3  ;;  %v347_v8 = vld [vmem:[%s6901_s1 + $0x9c8] sm:$0xff]  ;;  %795 = vmatprep.subr.mxu0 %v351_v4  ;;  %v346_v10 = vld [vmem:[%s6901_s1 + $0x9c0] sm:$0xff] }
  0x45   :  { %v475_v9 = vld [vmem:[%s6901_s1 + $0xdc8] sm:$0xff]  ;;  %872 = vmatprep.subr.mxu1 %v479_v5  ;;  %v474_v11 = vld [vmem:[%s6901_s1 + $0xdc0] sm:$0xff]  ;;  %796 = vmatpush1.msra.mxu0 %v350_v6 }
  0x46   :  { %873 = vmatpush1.msra.mxu1 %v478_v7  ;;  %v343_v12 = vld [vmem:[%s6901_s1 + $0x9a8] sm:$0xff]  ;;  %797 = vmatprep.subr.mxu0 %v347_v8  ;;  %v342_v14 = vld [vmem:[%s6901_s1 + $0x9a0] sm:$0xff] }
  0x47   :  { %v471_v13 = vld [vmem:[%s6901_s1 + $0xda8] sm:$0xff]  ;;  %874 = vmatprep.subr.mxu1 %v475_v9  ;;  %v470_v15 = vld [vmem:[%s6901_s1 + $0xda0] sm:$0xff]  ;;  %798 = vmatpush1.msra.mxu0 %v346_v10 }
  0x48   :  { %875 = vmatpush1.msra.mxu1 %v474_v11  ;;  %v339_v16 = vld [vmem:[%s6901_s1 + $0x988] sm:$0xff]  ;;  %799 = vmatprep.subr.mxu0 %v343_v12  ;;  %v338_v18 = vld [vmem:[%s6901_s1 + $0x980] sm:$0xff] }
  0x49   :  { %v467_v17 = vld [vmem:[%s6901_s1 + $0xd88] sm:$0xff]  ;;  %876 = vmatprep.subr.mxu1 %v471_v13  ;;  %v466_v19 = vld [vmem:[%s6901_s1 + $0xd80] sm:$0xff]  ;;  %800 = vmatpush1.msra.mxu0 %v342_v14 }
  0x4a   :  { %877 = vmatpush1.msra.mxu1 %v470_v15  ;;  %v335_v20 = vld [vmem:[%s6901_s1 + $0x968] sm:$0xff]  ;;  %801 = vmatprep.subr.mxu0 %v339_v16  ;;  %v334_v22 = vld [vmem:[%s6901_s1 + $0x960] sm:$0xff] }
  0x4b   :  { %v463_v21 = vld [vmem:[%s6901_s1 + $0xd68] sm:$0xff]  ;;  %878 = vmatprep.subr.mxu1 %v467_v17  ;;  %v462_v23 = vld [vmem:[%s6901_s1 + $0xd60] sm:$0xff]  ;;  %802 = vmatpush1.msra.mxu0 %v338_v18 }
  0x4c   :  { %879 = vmatpush1.msra.mxu1 %v466_v19  ;;  %v331_v24 = vld [vmem:[%s6901_s1 + $0x948] sm:$0xff]  ;;  %803 = vmatprep.subr.mxu0 %v335_v20  ;;  %v330_v26 = vld [vmem:[%s6901_s1 + $0x940] sm:$0xff] }
  0x4d   :  { %v459_v25 = vld [vmem:[%s6901_s1 + $0xd48] sm:$0xff]  ;;  %880 = vmatprep.subr.mxu1 %v463_v21  ;;  %v458_v27 = vld [vmem:[%s6901_s1 + $0xd40] sm:$0xff]  ;;  %804 = vmatpush1.msra.mxu0 %v334_v22 }
  0x4e   :  { %881 = vmatpush1.msra.mxu1 %v462_v23  ;;  %v327_v28 = vld [vmem:[%s6901_s1 + $0x928] sm:$0xff]  ;;  %805 = vmatprep.subr.mxu0 %v331_v24  ;;  %v326_v30 = vld [vmem:[%s6901_s1 + $0x920] sm:$0xff] }
  0x4f   :  { %v455_v29 = vld [vmem:[%s6901_s1 + $0xd28] sm:$0xff]  ;;  %882 = vmatprep.subr.mxu1 %v459_v25  ;;  %v454_v31 = vld [vmem:[%s6901_s1 + $0xd20] sm:$0xff]  ;;  %806 = vmatpush1.msra.mxu0 %v330_v26 }
  0x50   :  { %883 = vmatpush1.msra.mxu1 %v458_v27  ;;  %v323_v32 = vld [vmem:[%s6901_s1 + $0x908] sm:$0xff]  ;;  %807 = vmatprep.subr.mxu0 %v327_v28  ;;  %v322_v34 = vld [vmem:[%s6901_s1 + $0x900] sm:$0xff] }
  0x51   :  { %v451_v33 = vld [vmem:[%s6901_s1 + $0xd08] sm:$0xff]  ;;  %884 = vmatprep.subr.mxu1 %v455_v29  ;;  %v450_v35 = vld [vmem:[%s6901_s1 + $0xd00] sm:$0xff]  ;;  %808 = vmatpush1.msra.mxu0 %v326_v30 }
  0x52   :  { %885 = vmatpush1.msra.mxu1 %v454_v31  ;;  %v319_v36 = vld [vmem:[%s6901_s1 + $0x8e8] sm:$0xff]  ;;  %809 = vmatprep.subr.mxu0 %v323_v32  ;;  %v318_v38 = vld [vmem:[%s6901_s1 + $0x8e0] sm:$0xff] }
  0x53   :  { %v447_v37 = vld [vmem:[%s6901_s1 + $0xce8] sm:$0xff]  ;;  %886 = vmatprep.subr.mxu1 %v451_v33  ;;  %v446_v39 = vld [vmem:[%s6901_s1 + $0xce0] sm:$0xff]  ;;  %810 = vmatpush1.msra.mxu0 %v322_v34 }
  0x54   :  { %887 = vmatpush1.msra.mxu1 %v450_v35  ;;  %v315_v40 = vld [vmem:[%s6901_s1 + $0x8c8] sm:$0xff]  ;;  %811 = vmatprep.subr.mxu0 %v319_v36  ;;  %v314_v42 = vld [vmem:[%s6901_s1 + $0x8c0] sm:$0xff] }
  0x55   :  { %v443_v41 = vld [vmem:[%s6901_s1 + $0xcc8] sm:$0xff]  ;;  %888 = vmatprep.subr.mxu1 %v447_v37  ;;  %v442_v43 = vld [vmem:[%s6901_s1 + $0xcc0] sm:$0xff]  ;;  %812 = vmatpush1.msra.mxu0 %v318_v38 }
  0x56   :  { %889 = vmatpush1.msra.mxu1 %v446_v39  ;;  %v311_v44 = vld [vmem:[%s6901_s1 + $0x8a8] sm:$0xff]  ;;  %813 = vmatprep.subr.mxu0 %v315_v40  ;;  %v310_v46 = vld [vmem:[%s6901_s1 + $0x8a0] sm:$0xff] }
  0x57   :  { %v439_v45 = vld [vmem:[%s6901_s1 + $0xca8] sm:$0xff]  ;;  %890 = vmatprep.subr.mxu1 %v443_v41  ;;  %v438_v47 = vld [vmem:[%s6901_s1 + $0xca0] sm:$0xff]  ;;  %814 = vmatpush1.msra.mxu0 %v314_v42 }
  0x58   :  { %891 = vmatpush1.msra.mxu1 %v442_v43  ;;  %v307_v48 = vld [vmem:[%s6901_s1 + $0x888] sm:$0xff]  ;;  %815 = vmatprep.subr.mxu0 %v311_v44  ;;  %v306_v50 = vld [vmem:[%s6901_s1 + $0x880] sm:$0xff] }
  0x59   :  { %v435_v49 = vld [vmem:[%s6901_s1 + $0xc88] sm:$0xff]  ;;  %892 = vmatprep.subr.mxu1 %v439_v45  ;;  %v434_v51 = vld [vmem:[%s6901_s1 + $0xc80] sm:$0xff]  ;;  %816 = vmatpush1.msra.mxu0 %v310_v46 }
  0x5a   :  { %893 = vmatpush1.msra.mxu1 %v438_v47  ;;  %v303_v52 = vld [vmem:[%s6901_s1 + $0x868] sm:$0xff]  ;;  %817 = vmatprep.subr.mxu0 %v307_v48  ;;  %v302_v54 = vld [vmem:[%s6901_s1 + $0x860] sm:$0xff] }
  0x5b   :  { %v431_v53 = vld [vmem:[%s6901_s1 + $0xc68] sm:$0xff]  ;;  %894 = vmatprep.subr.mxu1 %v435_v49  ;;  %v430_v55 = vld [vmem:[%s6901_s1 + $0xc60] sm:$0xff]  ;;  %818 = vmatpush1.msra.mxu0 %v306_v50 }
  0x5c   :  { %895 = vmatpush1.msra.mxu1 %v434_v51  ;;  %v299_v56 = vld [vmem:[%s6901_s1 + $0x848] sm:$0xff]  ;;  %819 = vmatprep.subr.mxu0 %v303_v52  ;;  %v298_v58 = vld [vmem:[%s6901_s1 + $0x840] sm:$0xff] }
  0x5d   :  { %v427_v57 = vld [vmem:[%s6901_s1 + $0xc48] sm:$0xff]  ;;  %896 = vmatprep.subr.mxu1 %v431_v53  ;;  %v426_v59 = vld [vmem:[%s6901_s1 + $0xc40] sm:$0xff]  ;;  %820 = vmatpush1.msra.mxu0 %v302_v54 }
  0x5e   :  { %897 = vmatpush1.msra.mxu1 %v430_v55  ;;  %v295_v60 = vld [vmem:[%s6901_s1 + $0x828] sm:$0xff]  ;;  %821 = vmatprep.subr.mxu0 %v299_v56  ;;  %v294_v62 = vld [vmem:[%s6901_s1 + $0x820] sm:$0xff]  ;;  %v25_v56 = vld [vmem:[%s6902_s0 + $0x58] sm:$0xff] }
  0x5f   :  { %v423_v61 = vld [vmem:[%s6901_s1 + $0xc28] sm:$0xff]  ;;  %898 = vmatprep.subr.mxu1 %v427_v57  ;;  %v422_v63 = vld [vmem:[%s6901_s1 + $0xc20] sm:$0xff]  ;;  %822 = vmatpush1.msra.mxu0 %v298_v58 }
  0x60   :  { %899 = vmatpush1.msra.mxu1 %v426_v59  ;;  %v291_v0 = vld [vmem:[%s6901_s1 + $0x808] sm:$0xff]  ;;  %823 = vmatprep.subr.mxu0 %v295_v60  ;;  %v290_v2 = vld [vmem:[%s6901_s1 + $0x800] sm:$0xff]  ;;  %v24_v60 = vld [vmem:[%s6902_s0 + $0x50] sm:$0xff] }
  0x61   :  { %v419_v1 = vld [vmem:[%s6901_s1 + $0xc08] sm:$0xff]  ;;  %900 = vmatprep.subr.mxu1 %v423_v61  ;;  %v418_v3 = vld [vmem:[%s6901_s1 + $0xc00] sm:$0xff]  ;;  %824 = vmatpush1.msra.mxu0 %v294_v62 }
  0x62   :  { %901 = vmatpush1.msra.mxu1 %v422_v63  ;;  %v415_v4 = vld [vmem:[%s6901_s1 + $0xbe8] sm:$0xff]  ;;  %825 = vmatprep.subr.mxu0 %v291_v0  ;;  %v414_v6 = vld [vmem:[%s6901_s1 + $0xbe0] sm:$0xff] }
  0x63   :  { %v543_v5 = vld [vmem:[%s6901_s1 + $0xfe8] sm:$0xff]  ;;  %902 = vmatprep.subr.mxu1 %v419_v1  ;;  %v542_v7 = vld [vmem:[%s6901_s1 + $0xfe0] sm:$0xff]  ;;  %826 = vmatpush1.msra.mxu0 %v290_v2 }
  0x64   :  { %903 = vmatpush1.msra.mxu1 %v418_v3  ;;  %v411_v8 = vld [vmem:[%s6901_s1 + $0xbc8] sm:$0xff]  ;;  %827 = vmatprep.subr.mxu0 %v415_v4  ;;  %v410_v10 = vld [vmem:[%s6901_s1 + $0xbc0] sm:$0xff] }
  0x65   :  { %v539_v9 = vld [vmem:[%s6901_s1 + $0xfc8] sm:$0xff]  ;;  %904 = vmatprep.subr.mxu1 %v543_v5  ;;  %v538_v11 = vld [vmem:[%s6901_s1 + $0xfc0] sm:$0xff]  ;;  %828 = vmatpush2.msra.mxu0 %v414_v6 }
  0x66   :  { %905 = vmatpush2.msra.mxu1 %v542_v7  ;;  %v407_v12 = vld [vmem:[%s6901_s1 + $0xba8] sm:$0xff]  ;;  %829 = vmatprep.subr.mxu0 %v411_v8  ;;  %v406_v14 = vld [vmem:[%s6901_s1 + $0xba0] sm:$0xff] }
  0x67   :  { %v535_v13 = vld [vmem:[%s6901_s1 + $0xfa8] sm:$0xff]  ;;  %906 = vmatprep.subr.mxu1 %v539_v9  ;;  %v534_v15 = vld [vmem:[%s6901_s1 + $0xfa0] sm:$0xff]  ;;  %830 = vmatpush2.msra.mxu0 %v410_v10  ;;  %v21_v10 = vld [vmem:[%s6902_s0 + $0x38] sm:$0xff] }
  0x68   :  { %907 = vmatpush2.msra.mxu1 %v538_v11  ;;  %v403_v16 = vld [vmem:[%s6901_s1 + $0xb88] sm:$0xff]  ;;  %831 = vmatprep.subr.mxu0 %v407_v12  ;;  %v402_v18 = vld [vmem:[%s6901_s1 + $0xb80] sm:$0xff]  ;;  %v97_v12 = vld [vmem:[%s6901_s1 + $0x1f8] sm:$0xff] }
  0x69   :  { %v531_v17 = vld [vmem:[%s6901_s1 + $0xf88] sm:$0xff]  ;;  %908 = vmatprep.subr.mxu1 %v535_v13  ;;  %v530_v19 = vld [vmem:[%s6901_s1 + $0xf80] sm:$0xff]  ;;  %832 = vmatpush2.msra.mxu0 %v406_v14  ;;  %v20_v13 = vld [vmem:[%s6902_s0 + $0x30] sm:$0xff] }
  0x6a   :  { %909 = vmatpush2.msra.mxu1 %v534_v15  ;;  %v399_v20 = vld [vmem:[%s6901_s1 + $0xb68] sm:$0xff]  ;;  %833 = vmatprep.subr.mxu0 %v403_v16  ;;  %v398_v22 = vld [vmem:[%s6901_s1 + $0xb60] sm:$0xff]  ;;  %v96_v15 = vld [vmem:[%s6901_s1 + $0x1f0] sm:$0xff] }
  0x6b   :  { %v527_v21 = vld [vmem:[%s6901_s1 + $0xf68] sm:$0xff]  ;;  %910 = vmatprep.subr.mxu1 %v531_v17  ;;  %v526_v23 = vld [vmem:[%s6901_s1 + $0xf60] sm:$0xff]  ;;  %834 = vmatpush2.msra.mxu0 %v402_v18  ;;  %v93_v17 = vld [vmem:[%s6901_s1 + $0x1d8] sm:$0xff] }
  0x6c   :  { %911 = vmatpush2.msra.mxu1 %v530_v19  ;;  %v395_v24 = vld [vmem:[%s6901_s1 + $0xb48] sm:$0xff]  ;;  %835 = vmatprep.subr.mxu0 %v399_v20  ;;  %v394_v26 = vld [vmem:[%s6901_s1 + $0xb40] sm:$0xff]  ;;  %v29_v18 = vld [vmem:[%s6902_s0 + $0x78] sm:$0xff] }
  0x6d   :  { %v523_v25 = vld [vmem:[%s6901_s1 + $0xf48] sm:$0xff]  ;;  %912 = vmatprep.subr.mxu1 %v527_v21  ;;  %v522_v27 = vld [vmem:[%s6901_s1 + $0xf40] sm:$0xff]  ;;  %836 = vmatpush2.msra.mxu0 %v398_v22  ;;  %v92_v20 = vld [vmem:[%s6901_s1 + $0x1d0] sm:$0xff] }
  0x6e   :  { %913 = vmatpush2.msra.mxu1 %v526_v23  ;;  %v391_v28 = vld [vmem:[%s6901_s1 + $0xb28] sm:$0xff]  ;;  %837 = vmatprep.subr.mxu0 %v395_v24  ;;  %v390_v30 = vld [vmem:[%s6901_s1 + $0xb20] sm:$0xff]  ;;  %v28_v21 = vld [vmem:[%s6902_s0 + $0x70] sm:$0xff] }
  0x6f   :  { %v519_v29 = vld [vmem:[%s6901_s1 + $0xf28] sm:$0xff]  ;;  %914 = vmatprep.subr.mxu1 %v523_v25  ;;  %v518_v31 = vld [vmem:[%s6901_s1 + $0xf20] sm:$0xff]  ;;  %838 = vmatpush2.msra.mxu0 %v394_v26  ;;  %v89_v23 = vld [vmem:[%s6901_s1 + $0x1b8] sm:$0xff] }
  0x70   :  { %915 = vmatpush2.msra.mxu1 %v522_v27  ;;  %v387_v32 = vld [vmem:[%s6901_s1 + $0xb08] sm:$0xff]  ;;  %839 = vmatprep.subr.mxu0 %v391_v28  ;;  %v386_v34 = vld [vmem:[%s6901_s1 + $0xb00] sm:$0xff]  ;;  %v88_v26 = vld [vmem:[%s6901_s1 + $0x1b0] sm:$0xff] }
  0x71   :  { %v515_v33 = vld [vmem:[%s6901_s1 + $0xf08] sm:$0xff]  ;;  %916 = vmatprep.subr.mxu1 %v519_v29  ;;  %v514_v35 = vld [vmem:[%s6901_s1 + $0xf00] sm:$0xff]  ;;  %840 = vmatpush2.msra.mxu0 %v390_v30  ;;  %v85_v29 = vld [vmem:[%s6901_s1 + $0x198] sm:$0xff] }
  0x72   :  { %917 = vmatpush2.msra.mxu1 %v518_v31  ;;  %v383_v36 = vld [vmem:[%s6901_s1 + $0xae8] sm:$0xff]  ;;  %841 = vmatprep.subr.mxu0 %v387_v32  ;;  %v382_v38 = vld [vmem:[%s6901_s1 + $0xae0] sm:$0xff]  ;;  %v84_v31 = vld [vmem:[%s6901_s1 + $0x190] sm:$0xff] }
  0x73   :  { %v511_v37 = vld [vmem:[%s6901_s1 + $0xee8] sm:$0xff]  ;;  %918 = vmatprep.subr.mxu1 %v515_v33  ;;  %v510_v39 = vld [vmem:[%s6901_s1 + $0xee0] sm:$0xff]  ;;  %842 = vmatpush2.msra.mxu0 %v386_v34  ;;  %v81_v33 = vld [vmem:[%s6901_s1 + $0x178] sm:$0xff] }
  0x74   :  { %919 = vmatpush2.msra.mxu1 %v514_v35  ;;  %v379_v40 = vld [vmem:[%s6901_s1 + $0xac8] sm:$0xff]  ;;  %843 = vmatprep.subr.mxu0 %v383_v36  ;;  %v378_v42 = vld [vmem:[%s6901_s1 + $0xac0] sm:$0xff]  ;;  %v80_v35 = vld [vmem:[%s6901_s1 + $0x170] sm:$0xff] }
  0x75   :  { %v507_v41 = vld [vmem:[%s6901_s1 + $0xec8] sm:$0xff]  ;;  %920 = vmatprep.subr.mxu1 %v511_v37  ;;  %v506_v43 = vld [vmem:[%s6901_s1 + $0xec0] sm:$0xff]  ;;  %844 = vmatpush2.msra.mxu0 %v382_v38  ;;  %v77_v37 = vld [vmem:[%s6901_s1 + $0x158] sm:$0xff] }
  0x76   :  { %921 = vmatpush2.msra.mxu1 %v510_v39  ;;  %v375_v44 = vld [vmem:[%s6901_s1 + $0xaa8] sm:$0xff]  ;;  %845 = vmatprep.subr.mxu0 %v379_v40  ;;  %v374_v46 = vld [vmem:[%s6901_s1 + $0xaa0] sm:$0xff]  ;;  %v76_v39 = vld [vmem:[%s6901_s1 + $0x150] sm:$0xff] }
  0x77   :  { %v503_v45 = vld [vmem:[%s6901_s1 + $0xea8] sm:$0xff]  ;;  %922 = vmatprep.subr.mxu1 %v507_v41  ;;  %v502_v47 = vld [vmem:[%s6901_s1 + $0xea0] sm:$0xff]  ;;  %846 = vmatpush2.msra.mxu0 %v378_v42  ;;  %v73_v41 = vld [vmem:[%s6901_s1 + $0x138] sm:$0xff] }
  0x78   :  { %923 = vmatpush2.msra.mxu1 %v506_v43  ;;  %v371_v48 = vld [vmem:[%s6901_s1 + $0xa88] sm:$0xff]  ;;  %847 = vmatprep.subr.mxu0 %v375_v44  ;;  %v370_v50 = vld [vmem:[%s6901_s1 + $0xa80] sm:$0xff]  ;;  %v72_v43 = vld [vmem:[%s6901_s1 + $0x130] sm:$0xff] }
  0x79   :  { %v499_v49 = vld [vmem:[%s6901_s1 + $0xe88] sm:$0xff]  ;;  %924 = vmatprep.subr.mxu1 %v503_v45  ;;  %v498_v51 = vld [vmem:[%s6901_s1 + $0xe80] sm:$0xff]  ;;  %848 = vmatpush2.msra.mxu0 %v374_v46  ;;  %v69_v45 = vld [vmem:[%s6901_s1 + $0x118] sm:$0xff] }
  0x7a   :  { %925 = vmatpush2.msra.mxu1 %v502_v47  ;;  %v367_v52 = vld [vmem:[%s6901_s1 + $0xa68] sm:$0xff]  ;;  %849 = vmatprep.subr.mxu0 %v371_v48  ;;  %v366_v54 = vld [vmem:[%s6901_s1 + $0xa60] sm:$0xff]  ;;  %v68_v47 = vld [vmem:[%s6901_s1 + $0x110] sm:$0xff] }
  0x7b   :  { %v495_v53 = vld [vmem:[%s6901_s1 + $0xe68] sm:$0xff]  ;;  %926 = vmatprep.subr.mxu1 %v499_v49  ;;  %v494_v55 = vld [vmem:[%s6901_s1 + $0xe60] sm:$0xff]  ;;  %850 = vmatpush2.msra.mxu0 %v370_v50  ;;  %v65_v49 = vld [vmem:[%s6901_s1 + $0xf8] sm:$0xff] }
  0x7c   :  { %927 = vmatpush2.msra.mxu1 %v498_v51  ;;  %v27_v57 = vld [vmem:[%s6902_s0 + $0x68] sm:$0xff]  ;;  %851 = vmatprep.subr.mxu0 %v367_v52  ;;  %v26_v61 = vld [vmem:[%s6902_s0 + $0x60] sm:$0xff]  ;;  %v64_v51 = vld [vmem:[%s6901_s1 + $0xf0] sm:$0xff] }
  0x7d   :  { %928 = vmatprep.subr.mxu1 %v495_v53  ;;  %v363_v58 = vld [vmem:[%s6901_s1 + $0xa48] sm:$0xff]  ;;  %852 = vmatpush2.msra.mxu0 %v366_v54  ;;  %v362_v62 = vld [vmem:[%s6901_s1 + $0xa40] sm:$0xff]  ;;  %v61_v53 = vld [vmem:[%s6901_s1 + $0xd8] sm:$0xff] }
  0x7e   :  { %v491_v59 = vld [vmem:[%s6901_s1 + $0xe48] sm:$0xff]  ;;  %929 = vmatpush2.msra.mxu1 %v494_v55  ;;  %711 = vmatprep.mubr.f32.mxu0 %v25_v56  ;;  %v490_v63 = vld [vmem:[%s6901_s1 + $0xe40] sm:$0xff]  ;;  %v60_v55 = vld [vmem:[%s6901_s1 + $0xd0] sm:$0xff] }
  0x7f   :  { %788 = vmatprep.mubr.f32.mxu1 %v27_v57  ;;  %853 = vmatprep.subr.mxu0 %v363_v58  ;;  %v359_v0 = vld [vmem:[%s6901_s1 + $0xa28] sm:$0xff]  ;;  %v358_v2 = vld [vmem:[%s6901_s1 + $0xa20] sm:$0xff]  ;;  %v57_v57 = vld [vmem:[%s6901_s1 + $0xb8] sm:$0xff] }
  0x80   :  { %930 = vmatprep.subr.mxu1 %v491_v59  ;;  %v487_v1 = vld [vmem:[%s6901_s1 + $0xe28] sm:$0xff]  ;;  %712 = vmatmul.mubr.f32.gmra.mxu0 %v24_v60  ;;  %v486_v3 = vld [vmem:[%s6901_s1 + $0xe20] sm:$0xff]  ;;  %v56_v59 = vld [vmem:[%s6901_s1 + $0xb0] sm:$0xff] }
  0x81   :  { %789 = vmatmul.mubr.f32.gmra.mxu1 %v26_v61  ;;  %854 = vmatpush2.msra.mxu0 %v362_v62  ;;  %v355_v4 = vld [vmem:[%s6901_s1 + $0xa08] sm:$0xff]  ;;  %v354_v6 = vld [vmem:[%s6901_s1 + $0xa00] sm:$0xff]  ;;  %v53_v61 = vld [vmem:[%s6901_s1 + $0x98] sm:$0xff] }
  0x82   :  { %931 = vmatpush2.msra.mxu1 %v490_v63  ;;  %v483_v5 = vld [vmem:[%s6901_s1 + $0xe08] sm:$0xff]  ;;  %855 = vmatprep.subr.mxu0 %v359_v0  ;;  %v482_v8 = vld [vmem:[%s6901_s1 + $0xe00] sm:$0xff]  ;;  %v52_v63 = vld [vmem:[%s6901_s1 + $0x90] sm:$0xff] }
  0x83   :  { %932 = vmatprep.subr.mxu1 %v487_v1  ;;  %v19_v7 = vld [vmem:[%s6902_s0 + $0x28] sm:$0xff]  ;;  %856 = vmatpush2.msra.mxu0 %v358_v2  ;;  %v18_v9 = vld [vmem:[%s6902_s0 + $0x20] sm:$0xff]  ;;  %v49_v1 = vld [vmem:[%s6901_s1 + $0x78] sm:$0xff] }
  0x84   :  { %933 = vmatpush2.msra.mxu1 %v486_v3  ;;  %857 = vmatprep.subr.mxu0 %v355_v4  ;;  %v607_v11 = vld [vmem:[%s6901_s1 + $0x11e8] sm:$0xff]  ;;  %v606_v14 = vld [vmem:[%s6901_s1 + $0x11e0] sm:$0xff]  ;;  %v48_v3 = vld [vmem:[%s6901_s1 + $0x70] sm:$0xff] }
  0x85   :  { %934 = vmatprep.subr.mxu1 %v483_v5  ;;  %858 = vmatpush2.msra.mxu0 %v354_v6  ;;  %v603_v16 = vld [vmem:[%s6901_s1 + $0x11c8] sm:$0xff]  ;;  %v602_v19 = vld [vmem:[%s6901_s1 + $0x11c0] sm:$0xff]  ;;  %v45_v5 = vld [vmem:[%s6901_s1 + $0x58] sm:$0xff] }
  0x86   :  { %859 = vmatprep.mubr.f32.mxu0 %v19_v7  ;;  %935 = vmatpush2.msra.mxu1 %v482_v8  ;;  %v599_v22 = vld [vmem:[%s6901_s1 + $0x11a8] sm:$0xff]  ;;  %v598_v25 = vld [vmem:[%s6901_s1 + $0x11a0] sm:$0xff]  ;;  %v44_v7 = vld [vmem:[%s6901_s1 + $0x50] sm:$0xff] }
  0x87   :  { %860 = vmatmul.mubr.f32.vlgmr.msra.gmra.mxu0 %v18_v9  ;;  %936 = vmatprep.mubr.f32.mxu1 %v21_v10  ;;  %v31_v24 = vld [vmem:[%s6902_s0 + $0x88] sm:$0xff]  ;;  %v30_v28 = vld [vmem:[%s6902_s0 + $0x80] sm:$0xff]  ;;  %v41_v9 = vld [vmem:[%s6901_s1 + $0x38] sm:$0xff] }
  0x88   :  { %949 = vmatprep.subr.mxu0 %v607_v11  ;;  %1026 = vmatprep.subr.mxu1 %v97_v12  ;;  %v595_v27 = vld [vmem:[%s6901_s1 + $0x1188] sm:$0xff]  ;;  %v594_v30 = vld [vmem:[%s6901_s1 + $0x1180] sm:$0xff]  ;;  %v40_v11 = vld [vmem:[%s6901_s1 + $0x30] sm:$0xff] }
  0x89   :  { %937 = vmatmul.mubr.f32.vlgmr.msra.gmra.mxu1 %v20_v13  ;;  %950 = vmatpush1.msra.mxu0 %v606_v14  ;;  %v591_v32 = vld [vmem:[%s6901_s1 + $0x1168] sm:$0xff]  ;;  %v590_v34 = vld [vmem:[%s6901_s1 + $0x1160] sm:$0xff]  ;;  %v37_v13 = vld [vmem:[%s6901_s1 + $0x18] sm:$0xff] }
  0x8a   :  { %1027 = vmatpush1.msra.mxu1 %v96_v15  ;;  %951 = vmatprep.subr.mxu0 %v603_v16  ;;  %v587_v36 = vld [vmem:[%s6901_s1 + $0x1148] sm:$0xff]  ;;  %v586_v38 = vld [vmem:[%s6901_s1 + $0x1140] sm:$0xff]  ;;  %v36_v15 = vld [vmem:[%s6901_s1 + $0x10] sm:$0xff] }
  0x8b   :  { %1028 = vmatprep.subr.mxu1 %v93_v17  ;;  %865 = vmatprep.mubr.f32.mxu0 %v29_v18  ;;  %v583_v40 = vld [vmem:[%s6901_s1 + $0x1128] sm:$0xff]  ;;  %v582_v42 = vld [vmem:[%s6901_s1 + $0x1120] sm:$0xff]  ;;  %v161_v17 = vld [vmem:[%s6901_s1 + $0x3f8] sm:$0xff] }
  0x8c   :  { %952 = vmatpush1.msra.mxu0 %v602_v19  ;;  %1029 = vmatpush1.msra.mxu1 %v92_v20  ;;  %v579_v44 = vld [vmem:[%s6901_s1 + $0x1108] sm:$0xff]  ;;  %v578_v46 = vld [vmem:[%s6901_s1 + $0x1100] sm:$0xff]  ;;  %v160_v19 = vld [vmem:[%s6901_s1 + $0x3f0] sm:$0xff] }
  0x8d   :  { %866 = vmatmul.mubr.f32.gmra.mxu0 %v28_v21  ;;  %953 = vmatprep.subr.mxu0 %v599_v22  ;;  %v575_v48 = vld [vmem:[%s6901_s1 + $0x10e8] sm:$0xff]  ;;  %v574_v50 = vld [vmem:[%s6901_s1 + $0x10e0] sm:$0xff]  ;;  %v157_v21 = vld [vmem:[%s6901_s1 + $0x3d8] sm:$0xff] }
  0x8e   :  { %1030 = vmatprep.subr.mxu1 %v89_v23  ;;  %942 = vmatprep.mubr.f32.mxu1 %v31_v24  ;;  %v571_v52 = vld [vmem:[%s6901_s1 + $0x10c8] sm:$0xff]  ;;  %v570_v54 = vld [vmem:[%s6901_s1 + $0x10c0] sm:$0xff]  ;;  %v156_v23 = vld [vmem:[%s6901_s1 + $0x3d0] sm:$0xff] }
  0x8f   :  { %954 = vmatpush1.msra.mxu0 %v598_v25  ;;  %1031 = vmatpush1.msra.mxu1 %v88_v26  ;;  %v567_v56 = vld [vmem:[%s6901_s1 + $0x10a8] sm:$0xff]  ;;  %v566_v58 = vld [vmem:[%s6901_s1 + $0x10a0] sm:$0xff]  ;;  %v153_v25 = vld [vmem:[%s6901_s1 + $0x3b8] sm:$0xff] }
  0x90   :  { %955 = vmatprep.subr.mxu0 %v595_v27  ;;  %943 = vmatmul.mubr.f32.gmra.mxu1 %v30_v28  ;;  %v563_v60 = vld [vmem:[%s6901_s1 + $0x1088] sm:$0xff]  ;;  %v562_v62 = vld [vmem:[%s6901_s1 + $0x1080] sm:$0xff]  ;;  %v152_v27 = vld [vmem:[%s6901_s1 + $0x3b0] sm:$0xff] }
  0x91   :  { %1032 = vmatprep.subr.mxu1 %v85_v29  ;;  %956 = vmatpush1.msra.mxu0 %v594_v30  ;;  %v559_v0 = vld [vmem:[%s6901_s1 + $0x1068] sm:$0xff]  ;;  %v558_v2 = vld [vmem:[%s6901_s1 + $0x1060] sm:$0xff]  ;;  %v149_v29 = vld [vmem:[%s6901_s1 + $0x398] sm:$0xff] }
  0x92   :  { %1033 = vmatpush1.msra.mxu1 %v84_v31  ;;  %957 = vmatprep.subr.mxu0 %v591_v32  ;;  %v555_v4 = vld [vmem:[%s6901_s1 + $0x1048] sm:$0xff]  ;;  %v554_v6 = vld [vmem:[%s6901_s1 + $0x1040] sm:$0xff]  ;;  %v148_v31 = vld [vmem:[%s6901_s1 + $0x390] sm:$0xff] }
  0x93   :  { %1034 = vmatprep.subr.mxu1 %v81_v33  ;;  %958 = vmatpush1.msra.mxu0 %v590_v34  ;;  %v551_v8 = vld [vmem:[%s6901_s1 + $0x1028] sm:$0xff]  ;;  %v550_v10 = vld [vmem:[%s6901_s1 + $0x1020] sm:$0xff]  ;;  %v145_v33 = vld [vmem:[%s6901_s1 + $0x378] sm:$0xff] }
  0x94   :  { %1035 = vmatpush1.msra.mxu1 %v80_v35  ;;  %959 = vmatprep.subr.mxu0 %v587_v36  ;;  %v547_v12 = vld [vmem:[%s6901_s1 + $0x1008] sm:$0xff]  ;;  %v546_v14 = vld [vmem:[%s6901_s1 + $0x1000] sm:$0xff]  ;;  %v144_v35 = vld [vmem:[%s6901_s1 + $0x370] sm:$0xff] }
  0x95   :  { %1036 = vmatprep.subr.mxu1 %v77_v37  ;;  %960 = vmatpush1.msra.mxu0 %v586_v38  ;;  %v631_v16 = vld [vmem:[%s6901_s1 + $0x12a8] sm:$0xff]  ;;  %v630_v18 = vld [vmem:[%s6901_s1 + $0x12a0] sm:$0xff]  ;;  %v141_v37 = vld [vmem:[%s6901_s1 + $0x358] sm:$0xff] }
  0x96   :  { %1037 = vmatpush1.msra.mxu1 %v76_v39  ;;  %961 = vmatprep.subr.mxu0 %v583_v40  ;;  %v627_v20 = vld [vmem:[%s6901_s1 + $0x1288] sm:$0xff]  ;;  %v626_v22 = vld [vmem:[%s6901_s1 + $0x1280] sm:$0xff]  ;;  %v140_v40 = vld [vmem:[%s6901_s1 + $0x350] sm:$0xff] }
  0x97   :  { %1038 = vmatprep.subr.mxu1 %v73_v41  ;;  %962 = vmatpush1.msra.mxu0 %v582_v42  ;;  %v623_v24 = vld [vmem:[%s6901_s1 + $0x1268] sm:$0xff]  ;;  %v622_v26 = vld [vmem:[%s6901_s1 + $0x1260] sm:$0xff]  ;;  %v137_v42 = vld [vmem:[%s6901_s1 + $0x338] sm:$0xff] }
  0x98   :  { %1039 = vmatpush1.msra.mxu1 %v72_v43  ;;  %963 = vmatprep.subr.mxu0 %v579_v44  ;;  %v619_v28 = vld [vmem:[%s6901_s1 + $0x1248] sm:$0xff]  ;;  %v618_v30 = vld [vmem:[%s6901_s1 + $0x1240] sm:$0xff]  ;;  %v225_v43 = vld [vmem:[%s6901_s1 + $0x5f8] sm:$0xff] }
  0x99   :  { %1040 = vmatprep.subr.mxu1 %v69_v45  ;;  %964 = vmatpush1.msra.mxu0 %v578_v46  ;;  %v615_v32 = vld [vmem:[%s6901_s1 + $0x1228] sm:$0xff]  ;;  %v614_v34 = vld [vmem:[%s6901_s1 + $0x1220] sm:$0xff]  ;;  %v136_v44 = vld [vmem:[%s6901_s1 + $0x330] sm:$0xff] }
  0x9a   :  { %1041 = vmatpush1.msra.mxu1 %v68_v47  ;;  %965 = vmatprep.subr.mxu0 %v575_v48  ;;  %v611_v36 = vld [vmem:[%s6901_s1 + $0x1208] sm:$0xff]  ;;  %v610_v38 = vld [vmem:[%s6901_s1 + $0x1200] sm:$0xff]  ;;  %v224_v45 = vld [vmem:[%s6901_s1 + $0x5f0] sm:$0xff] }
  0x9b   :  { %1042 = vmatprep.subr.mxu1 %v65_v49  ;;  %966 = vmatpush1.msra.mxu0 %v574_v50  ;;  %v23_v39 = vld [vmem:[%s6902_s0 + $0x48] sm:$0xff]  ;;  %v22_v41 = vld [vmem:[%s6902_s0 + $0x40] sm:$0xff]  ;;  %v133_v46 = vld [vmem:[%s6901_s1 + $0x318] sm:$0xff] }
  0x9c   :  { %1043 = vmatpush1.msra.mxu1 %v64_v51  ;;  %967 = vmatprep.subr.mxu0 %v571_v52  ;;  %v221_v47 = vld [vmem:[%s6901_s1 + $0x5d8] sm:$0xff]  ;;  %v132_v49 = vld [vmem:[%s6901_s1 + $0x310] sm:$0xff] }
  0x9d   :  { %1044 = vmatprep.subr.mxu1 %v61_v53  ;;  %968 = vmatpush1.msra.mxu0 %v570_v54  ;;  %v33_v48 = vld [vmem:[%s6902_s0 + $0x98] sm:$0xff]  ;;  %v220_v50 = vld [vmem:[%s6901_s1 + $0x5d0] sm:$0xff] }
  0x9e   :  { %1045 = vmatpush1.msra.mxu1 %v60_v55  ;;  %969 = vmatprep.subr.mxu0 %v567_v56  ;;  %v129_v51 = vld [vmem:[%s6901_s1 + $0x2f8] sm:$0xff]  ;;  %v32_v52 = vld [vmem:[%s6902_s0 + $0x90] sm:$0xff] }
  0x9f   :  { %1046 = vmatprep.subr.mxu1 %v57_v57  ;;  %970 = vmatpush1.msra.mxu0 %v566_v58  ;;  %v217_v53 = vld [vmem:[%s6901_s1 + $0x5b8] sm:$0xff]  ;;  %v128_v54 = vld [vmem:[%s6901_s1 + $0x2f0] sm:$0xff] }
  0xa0   :  { %1047 = vmatpush1.msra.mxu1 %v56_v59  ;;  %971 = vmatprep.subr.mxu0 %v563_v60  ;;  %v216_v55 = vld [vmem:[%s6901_s1 + $0x5b0] sm:$0xff]  ;;  %v125_v56 = vld [vmem:[%s6901_s1 + $0x2d8] sm:$0xff] }
  0xa1   :  { %1048 = vmatprep.subr.mxu1 %v53_v61  ;;  %972 = vmatpush1.msra.mxu0 %v562_v62  ;;  %v213_v57 = vld [vmem:[%s6901_s1 + $0x598] sm:$0xff]  ;;  %v124_v58 = vld [vmem:[%s6901_s1 + $0x2d0] sm:$0xff] }
  0xa2   :  { %1049 = vmatpush1.msra.mxu1 %v52_v63  ;;  %973 = vmatprep.subr.mxu0 %v559_v0  ;;  %v212_v59 = vld [vmem:[%s6901_s1 + $0x590] sm:$0xff]  ;;  %v121_v60 = vld [vmem:[%s6901_s1 + $0x2b8] sm:$0xff] }
  0xa3   :  { %1050 = vmatprep.subr.mxu1 %v49_v1  ;;  %974 = vmatpush1.msra.mxu0 %v558_v2  ;;  %v209_v61 = vld [vmem:[%s6901_s1 + $0x578] sm:$0xff]  ;;  %v120_v62 = vld [vmem:[%s6901_s1 + $0x2b0] sm:$0xff] }
  0xa4   :  { %1051 = vmatpush1.msra.mxu1 %v48_v3  ;;  %975 = vmatprep.subr.mxu0 %v555_v4  ;;  %v208_v63 = vld [vmem:[%s6901_s1 + $0x570] sm:$0xff]  ;;  %v117_v0 = vld [vmem:[%s6901_s1 + $0x298] sm:$0xff] }
  0xa5   :  { %1052 = vmatprep.subr.mxu1 %v45_v5  ;;  %976 = vmatpush1.msra.mxu0 %v554_v6  ;;  %v205_v1 = vld [vmem:[%s6901_s1 + $0x558] sm:$0xff]  ;;  %v116_v2 = vld [vmem:[%s6901_s1 + $0x290] sm:$0xff] }
  0xa6   :  { %1053 = vmatpush1.msra.mxu1 %v44_v7  ;;  %977 = vmatprep.subr.mxu0 %v551_v8  ;;  %v204_v3 = vld [vmem:[%s6901_s1 + $0x550] sm:$0xff]  ;;  %v113_v4 = vld [vmem:[%s6901_s1 + $0x278] sm:$0xff] }
  0xa7   :  { %1054 = vmatprep.subr.mxu1 %v41_v9  ;;  %978 = vmatpush1.msra.mxu0 %v550_v10  ;;  %v201_v5 = vld [vmem:[%s6901_s1 + $0x538] sm:$0xff]  ;;  %v112_v6 = vld [vmem:[%s6901_s1 + $0x270] sm:$0xff] }
  0xa8   :  { %1055 = vmatpush1.msra.mxu1 %v40_v11  ;;  %979 = vmatprep.subr.mxu0 %v547_v12  ;;  %v200_v7 = vld [vmem:[%s6901_s1 + $0x530] sm:$0xff]  ;;  %v109_v8 = vld [vmem:[%s6901_s1 + $0x258] sm:$0xff] }
  0xa9   :  { %1056 = vmatprep.subr.mxu1 %v37_v13  ;;  %980 = vmatpush1.msra.mxu0 %v546_v14  ;;  %v197_v9 = vld [vmem:[%s6901_s1 + $0x518] sm:$0xff]  ;;  %v108_v10 = vld [vmem:[%s6901_s1 + $0x250] sm:$0xff] }
  0xaa   :  { %1057 = vmatpush1.msra.mxu1 %v36_v15  ;;  %1001 = vmatprep.subr.mxu0 %v631_v16  ;;  %v196_v11 = vld [vmem:[%s6901_s1 + $0x510] sm:$0xff]  ;;  %v105_v12 = vld [vmem:[%s6901_s1 + $0x238] sm:$0xff] }
  0xab   :  { %1058 = vmatprep.subr.mxu1 %v161_v17  ;;  %1002 = vmatpush2.msra.mxu0 %v630_v18  ;;  %v193_v13 = vld [vmem:[%s6901_s1 + $0x4f8] sm:$0xff]  ;;  %v104_v14 = vld [vmem:[%s6901_s1 + $0x230] sm:$0xff] }
  0xac   :  { %1059 = vmatpush2.msra.mxu1 %v160_v19  ;;  %1003 = vmatprep.subr.mxu0 %v627_v20  ;;  %v192_v15 = vld [vmem:[%s6901_s1 + $0x4f0] sm:$0xff]  ;;  %v101_v16 = vld [vmem:[%s6901_s1 + $0x218] sm:$0xff] }
  0xad   :  { %1060 = vmatprep.subr.mxu1 %v157_v21  ;;  %1004 = vmatpush2.msra.mxu0 %v626_v22  ;;  %v189_v17 = vld [vmem:[%s6901_s1 + $0x4d8] sm:$0xff]  ;;  %v100_v18 = vld [vmem:[%s6901_s1 + $0x210] sm:$0xff] }
  0xae   :  { %1061 = vmatpush2.msra.mxu1 %v156_v23  ;;  %1005 = vmatprep.subr.mxu0 %v623_v24  ;;  %v188_v19 = vld [vmem:[%s6901_s1 + $0x4d0] sm:$0xff]  ;;  %v185_v20 = vld [vmem:[%s6901_s1 + $0x4b8] sm:$0xff]  ;;  %v2276_v24 = vld [vmem:[%s6902_s0 + $0x8] sm:$0xff] }
  0xaf   :  { %1062 = vmatprep.subr.mxu1 %v153_v25  ;;  %1006 = vmatpush2.msra.mxu0 %v622_v26  ;;  %v353_v21 = vld [vmem:[%s6901_s1 + $0x9f8] sm:$0xff]  ;;  %v184_v22 = vld [vmem:[%s6901_s1 + $0x4b0] sm:$0xff] }
  0xb0   :  { %1063 = vmatpush2.msra.mxu1 %v152_v27  ;;  %1007 = vmatprep.subr.mxu0 %v619_v28  ;;  %v352_v23 = vld [vmem:[%s6901_s1 + $0x9f0] sm:$0xff]  ;;  %v181_v25 = vld [vmem:[%s6901_s1 + $0x498] sm:$0xff]  ;;  %v2277_v27 = vld [vmem:[%s6902_s0] sm:$0xff] }
  0xb1   :  { %1064 = vmatprep.subr.mxu1 %v149_v29  ;;  %1008 = vmatpush2.msra.mxu0 %v618_v30  ;;  %v349_v26 = vld [vmem:[%s6901_s1 + $0x9d8] sm:$0xff]  ;;  %v180_v28 = vld [vmem:[%s6901_s1 + $0x490] sm:$0xff] }
  0xb2   :  { %1065 = vmatpush2.msra.mxu1 %v148_v31  ;;  %1009 = vmatprep.subr.mxu0 %v615_v32  ;;  %v348_v29 = vld [vmem:[%s6901_s1 + $0x9d0] sm:$0xff]  ;;  %v177_v30 = vld [vmem:[%s6901_s1 + $0x478] sm:$0xff] }
  0xb3   :  { %1066 = vmatprep.subr.mxu1 %v145_v33  ;;  %1010 = vmatpush2.msra.mxu0 %v614_v34  ;;  %v345_v31 = vld [vmem:[%s6901_s1 + $0x9b8] sm:$0xff]  ;;  %v176_v32 = vld [vmem:[%s6901_s1 + $0x470] sm:$0xff] }
  0xb4   :  { %1067 = vmatpush2.msra.mxu1 %v144_v35  ;;  %1011 = vmatprep.subr.mxu0 %v611_v36  ;;  %v344_v33 = vld [vmem:[%s6901_s1 + $0x9b0] sm:$0xff]  ;;  %v173_v34 = vld [vmem:[%s6901_s1 + $0x458] sm:$0xff] }
  0xb5   :  { %1068 = vmatprep.subr.mxu1 %v141_v37  ;;  %1012 = vmatpush2.msra.mxu0 %v610_v38  ;;  %v341_v35 = vld [vmem:[%s6901_s1 + $0x998] sm:$0xff]  ;;  %v172_v36 = vld [vmem:[%s6901_s1 + $0x450] sm:$0xff] }
  0xb6   :  { %2248 = vmatprep.mubr.msk.f32.mxu0 %vm634_vm0, %v23_v39  ;;  %1069 = vmatpush2.msra.mxu1 %v140_v40  ;;  %v340_v37 = vld [vmem:[%s6901_s1 + $0x990] sm:$0xff]  ;;  %v169_v38 = vld [vmem:[%s6901_s1 + $0x438] sm:$0xff] }
  0xb7   :  { %1014 = vmatmul.mubr.f32.vlgmr.msra.gmra.mxu0 %v22_v41  ;;  %1070 = vmatprep.subr.mxu1 %v137_v42  ;;  %v337_v39 = vld [vmem:[%s6901_s1 + $0x978] sm:$0xff]  ;;  %v168_v40 = vld [vmem:[%s6901_s1 + $0x430] sm:$0xff] }
  0xb8   :  { %1103 = vmatprep.subr.mxu0 %v225_v43  ;;  %1071 = vmatpush2.msra.mxu1 %v136_v44  ;;  %v336_v41 = vld [vmem:[%s6901_s1 + $0x970] sm:$0xff]  ;;  %v165_v42 = vld [vmem:[%s6901_s1 + $0x418] sm:$0xff] }
  0xb9   :  { %1104 = vmatpush1.msra.mxu0 %v224_v45  ;;  %1072 = vmatprep.subr.mxu1 %v133_v46  ;;  %v333_v43 = vld [vmem:[%s6901_s1 + $0x958] sm:$0xff]  ;;  %v164_v44 = vld [vmem:[%s6901_s1 + $0x410] sm:$0xff] }
  0xba   :  { %1105 = vmatprep.subr.mxu0 %v221_v47  ;;  %2249 = vmatprep.mubr.msk.f32.mxu0 %vm634_vm0, %v33_v48  ;;  %v332_v45 = vld [vmem:[%s6901_s1 + $0x950] sm:$0xff]  ;;  %v289_v46 = vld [vmem:[%s6901_s1 + $0x7f8] sm:$0xff] }
  0xbb   :  { %1073 = vmatpush2.msra.mxu1 %v132_v49  ;;  %1106 = vmatpush1.msra.mxu0 %v220_v50  ;;  %v329_v47 = vld [vmem:[%s6901_s1 + $0x938] sm:$0xff]  ;;  %v288_v48 = vld [vmem:[%s6901_s1 + $0x7f0] sm:$0xff] }
  0xbc   :  { %1074 = vmatprep.subr.mxu1 %v129_v51  ;;  %1020 = vmatmul.mubr.f32.gmra.mxu0 %v32_v52  ;;  %v328_v49 = vld [vmem:[%s6901_s1 + $0x930] sm:$0xff]  ;;  %v285_v50 = vld [vmem:[%s6901_s1 + $0x7d8] sm:$0xff] }
  0xbd   :  { %1107 = vmatprep.subr.mxu0 %v217_v53  ;;  %1075 = vmatpush2.msra.mxu1 %v128_v54  ;;  %v325_v51 = vld [vmem:[%s6901_s1 + $0x918] sm:$0xff]  ;;  %v284_v52 = vld [vmem:[%s6901_s1 + $0x7d0] sm:$0xff] }
  0xbe   :  { %1108 = vmatpush1.msra.mxu0 %v216_v55  ;;  %1076 = vmatprep.subr.mxu1 %v125_v56  ;;  %v324_v53 = vld [vmem:[%s6901_s1 + $0x910] sm:$0xff]  ;;  %v281_v54 = vld [vmem:[%s6901_s1 + $0x7b8] sm:$0xff] }
  0xbf   :  { %1109 = vmatprep.subr.mxu0 %v213_v57  ;;  %1077 = vmatpush2.msra.mxu1 %v124_v58  ;;  %v321_v55 = vld [vmem:[%s6901_s1 + $0x8f8] sm:$0xff]  ;;  %v280_v56 = vld [vmem:[%s6901_s1 + $0x7b0] sm:$0xff] }
  0xc0   :  { %1110 = vmatpush1.msra.mxu0 %v212_v59  ;;  %1078 = vmatprep.subr.mxu1 %v121_v60  ;;  %v320_v57 = vld [vmem:[%s6901_s1 + $0x8f0] sm:$0xff]  ;;  %v277_v58 = vld [vmem:[%s6901_s1 + $0x798] sm:$0xff] }
  0xc1   :  { %1111 = vmatprep.subr.mxu0 %v209_v61  ;;  %1079 = vmatpush2.msra.mxu1 %v120_v62  ;;  %v317_v59 = vld [vmem:[%s6901_s1 + $0x8d8] sm:$0xff]  ;;  %v276_v60 = vld [vmem:[%s6901_s1 + $0x790] sm:$0xff] }
  0xc2   :  { %1112 = vmatpush1.msra.mxu0 %v208_v63  ;;  %1080 = vmatprep.subr.mxu1 %v117_v0  ;;  %v316_v61 = vld [vmem:[%s6901_s1 + $0x8d0] sm:$0xff]  ;;  %v273_v62 = vld [vmem:[%s6901_s1 + $0x778] sm:$0xff] }
  0xc3   :  { %1113 = vmatprep.subr.mxu0 %v205_v1  ;;  %1081 = vmatpush2.msra.mxu1 %v116_v2  ;;  %v313_v63 = vld [vmem:[%s6901_s1 + $0x8b8] sm:$0xff]  ;;  %v272_v0 = vld [vmem:[%s6901_s1 + $0x770] sm:$0xff] }
  0xc4   :  { %1114 = vmatpush1.msra.mxu0 %v204_v3  ;;  %1082 = vmatprep.subr.mxu1 %v113_v4  ;;  %v312_v1 = vld [vmem:[%s6901_s1 + $0x8b0] sm:$0xff]  ;;  %v269_v2 = vld [vmem:[%s6901_s1 + $0x758] sm:$0xff] }
  0xc5   :  { %1115 = vmatprep.subr.mxu0 %v201_v5  ;;  %1083 = vmatpush2.msra.mxu1 %v112_v6  ;;  %v309_v3 = vld [vmem:[%s6901_s1 + $0x898] sm:$0xff]  ;;  %v268_v4 = vld [vmem:[%s6901_s1 + $0x750] sm:$0xff] }
  0xc6   :  { %1116 = vmatpush1.msra.mxu0 %v200_v7  ;;  %1084 = vmatprep.subr.mxu1 %v109_v8  ;;  %v308_v5 = vld [vmem:[%s6901_s1 + $0x890] sm:$0xff]  ;;  %v265_v6 = vld [vmem:[%s6901_s1 + $0x738] sm:$0xff] }
  0xc7   :  { %1117 = vmatprep.subr.mxu0 %v197_v9  ;;  %1085 = vmatpush2.msra.mxu1 %v108_v10  ;;  %v305_v7 = vld [vmem:[%s6901_s1 + $0x878] sm:$0xff]  ;;  %v264_v8 = vld [vmem:[%s6901_s1 + $0x730] sm:$0xff] }
  0xc8   :  { %1118 = vmatpush1.msra.mxu0 %v196_v11  ;;  %1086 = vmatprep.subr.mxu1 %v105_v12  ;;  %v304_v9 = vld [vmem:[%s6901_s1 + $0x870] sm:$0xff]  ;;  %v261_v10 = vld [vmem:[%s6901_s1 + $0x718] sm:$0xff] }
  0xc9   :  { %1119 = vmatprep.subr.mxu0 %v193_v13  ;;  %1087 = vmatpush2.msra.mxu1 %v104_v14  ;;  %v301_v11 = vld [vmem:[%s6901_s1 + $0x858] sm:$0xff]  ;;  %v260_v12 = vld [vmem:[%s6901_s1 + $0x710] sm:$0xff] }
  0xca   :  { %1120 = vmatpush1.msra.mxu0 %v192_v15  ;;  %1088 = vmatprep.subr.mxu1 %v101_v16  ;;  %v300_v13 = vld [vmem:[%s6901_s1 + $0x850] sm:$0xff]  ;;  %v257_v14 = vld [vmem:[%s6901_s1 + $0x6f8] sm:$0xff] }
  0xcb   :  { %1121 = vmatprep.subr.mxu0 %v189_v17  ;;  %1089 = vmatpush2.msra.mxu1 %v100_v18  ;;  %v297_v15 = vld [vmem:[%s6901_s1 + $0x838] sm:$0xff]  ;;  %v256_v16 = vld [vmem:[%s6901_s1 + $0x6f0] sm:$0xff] }
  0xcc   :  { %1122 = vmatpush1.msra.mxu0 %v188_v19  ;;  %1090 = vmatprep.mubr.f32.mxu1 %v2276_v24  ;;  %v296_v17 = vld [vmem:[%s6901_s1 + $0x830] sm:$0xff]  ;;  %v253_v18 = vld [vmem:[%s6901_s1 + $0x6d8] sm:$0xff] }
  0xcd   :  { %1123 = vmatprep.subr.mxu0 %v185_v20  ;;  %1180 = vmatprep.subr.mxu1 %v353_v21  ;;  %v293_v19 = vld [vmem:[%s6901_s1 + $0x818] sm:$0xff]  ;;  %v252_v20 = vld [vmem:[%s6901_s1 + $0x6d0] sm:$0xff] }
  0xce   :  { %1091 = vmatmul.mubr.f32.vlgmr.msra.gmra.mxu1 %v2277_v27  ;;  %1124 = vmatpush1.msra.mxu0 %v184_v22  ;;  %v292_v21 = vld [vmem:[%s6901_s1 + $0x810] sm:$0xff]  ;;  %v249_v22 = vld [vmem:[%s6901_s1 + $0x6b8] sm:$0xff] }
  0xcf   :  { %1181 = vmatpush1.msra.mxu1 %v352_v23  ;;  %1125 = vmatprep.subr.mxu0 %v181_v25  ;;  %v417_v23 = vld [vmem:[%s6901_s1 + $0xbf8] sm:$0xff]  ;;  %v248_v24 = vld [vmem:[%s6901_s1 + $0x6b0] sm:$0xff] }
  0xd0   :  { %1182 = vmatprep.subr.mxu1 %v349_v26  ;;  %1126 = vmatpush1.msra.mxu0 %v180_v28  ;;  %v416_v25 = vld [vmem:[%s6901_s1 + $0xbf0] sm:$0xff]  ;;  %v245_v26 = vld [vmem:[%s6901_s1 + $0x698] sm:$0xff] }
  0xd1   :  { %1183 = vmatpush1.msra.mxu1 %v348_v29  ;;  %1127 = vmatprep.subr.mxu0 %v177_v30  ;;  %v413_v27 = vld [vmem:[%s6901_s1 + $0xbd8] sm:$0xff]  ;;  %v244_v28 = vld [vmem:[%s6901_s1 + $0x690] sm:$0xff] }
  0xd2   :  { %1184 = vmatprep.subr.mxu1 %v345_v31  ;;  %1128 = vmatpush1.msra.mxu0 %v176_v32  ;;  %v412_v29 = vld [vmem:[%s6901_s1 + $0xbd0] sm:$0xff]  ;;  %v241_v30 = vld [vmem:[%s6901_s1 + $0x678] sm:$0xff] }
  0xd3   :  { %1185 = vmatpush1.msra.mxu1 %v344_v33  ;;  %1129 = vmatprep.subr.mxu0 %v173_v34  ;;  %v409_v31 = vld [vmem:[%s6901_s1 + $0xbb8] sm:$0xff]  ;;  %v240_v32 = vld [vmem:[%s6901_s1 + $0x670] sm:$0xff] }
  0xd4   :  { %1186 = vmatprep.subr.mxu1 %v341_v35  ;;  %1130 = vmatpush1.msra.mxu0 %v172_v36  ;;  %v408_v33 = vld [vmem:[%s6901_s1 + $0xbb0] sm:$0xff]  ;;  %v237_v34 = vld [vmem:[%s6901_s1 + $0x658] sm:$0xff] }
  0xd5   :  { %1187 = vmatpush1.msra.mxu1 %v340_v37  ;;  %1131 = vmatprep.subr.mxu0 %v169_v38  ;;  %v405_v35 = vld [vmem:[%s6901_s1 + $0xb98] sm:$0xff]  ;;  %v236_v36 = vld [vmem:[%s6901_s1 + $0x650] sm:$0xff] }
  0xd6   :  { %1188 = vmatprep.subr.mxu1 %v337_v39  ;;  %1132 = vmatpush1.msra.mxu0 %v168_v40  ;;  %v404_v37 = vld [vmem:[%s6901_s1 + $0xb90] sm:$0xff]  ;;  %v233_v38 = vld [vmem:[%s6901_s1 + $0x638] sm:$0xff] }
  0xd7   :  { %1189 = vmatpush1.msra.mxu1 %v336_v41  ;;  %1133 = vmatprep.subr.mxu0 %v165_v42  ;;  %v401_v39 = vld [vmem:[%s6901_s1 + $0xb78] sm:$0xff]  ;;  %v232_v40 = vld [vmem:[%s6901_s1 + $0x630] sm:$0xff] }
  0xd8   :  { %1190 = vmatprep.subr.mxu1 %v333_v43  ;;  %1134 = vmatpush1.msra.mxu0 %v164_v44  ;;  %v400_v41 = vld [vmem:[%s6901_s1 + $0xb70] sm:$0xff]  ;;  %v229_v42 = vld [vmem:[%s6901_s1 + $0x618] sm:$0xff] }
  0xd9   :  { %1191 = vmatpush1.msra.mxu1 %v332_v45  ;;  %1135 = vmatprep.subr.mxu0 %v289_v46  ;;  %v397_v43 = vld [vmem:[%s6901_s1 + $0xb58] sm:$0xff]  ;;  %v228_v44 = vld [vmem:[%s6901_s1 + $0x610] sm:$0xff] }
  0xda   :  { %1192 = vmatprep.subr.mxu1 %v329_v47  ;;  %1136 = vmatpush2.msra.mxu0 %v288_v48  ;;  %v396_v45 = vld [vmem:[%s6901_s1 + $0xb50] sm:$0xff]  ;;  %v393_v46 = vld [vmem:[%s6901_s1 + $0xb38] sm:$0xff] }
  0xdb   :  { %1193 = vmatpush1.msra.mxu1 %v328_v49  ;;  %1137 = vmatprep.subr.mxu0 %v285_v50  ;;  %v481_v47 = vld [vmem:[%s6901_s1 + $0xdf8] sm:$0xff]  ;;  %v392_v49 = vld [vmem:[%s6901_s1 + $0xb30] sm:$0xff] }
  0xdc   :  { %1194 = vmatprep.subr.mxu1 %v325_v51  ;;  %1138 = vmatpush2.msra.mxu0 %v284_v52  ;;  %v2278_v48 = vld [vmem:[%s6902_s0 + $0x18] sm:$0xff]  ;;  %v480_v50 = vld [vmem:[%s6901_s1 + $0xdf0] sm:$0xff] }
  0xdd   :  { %1195 = vmatpush1.msra.mxu1 %v324_v53  ;;  %1139 = vmatprep.subr.mxu0 %v281_v54  ;;  %v2279_v51 = vld [vmem:[%s6902_s0 + $0x10] sm:$0xff]  ;;  %v389_v52 = vld [vmem:[%s6901_s1 + $0xb18] sm:$0xff] }
  0xde   :  { %1196 = vmatprep.subr.mxu1 %v321_v55  ;;  %1140 = vmatpush2.msra.mxu0 %v280_v56  ;;  %v477_v53 = vld [vmem:[%s6901_s1 + $0xdd8] sm:$0xff]  ;;  %v388_v54 = vld [vmem:[%s6901_s1 + $0xb10] sm:$0xff] }
  0xdf   :  { %1197 = vmatpush1.msra.mxu1 %v320_v57  ;;  %1141 = vmatprep.subr.mxu0 %v277_v58  ;;  %v476_v55 = vld [vmem:[%s6901_s1 + $0xdd0] sm:$0xff]  ;;  %v385_v56 = vld [vmem:[%s6901_s1 + $0xaf8] sm:$0xff] }
  0xe0   :  { %1198 = vmatprep.subr.mxu1 %v317_v59  ;;  %1142 = vmatpush2.msra.mxu0 %v276_v60  ;;  %v473_v57 = vld [vmem:[%s6901_s1 + $0xdb8] sm:$0xff]  ;;  %v384_v58 = vld [vmem:[%s6901_s1 + $0xaf0] sm:$0xff] }
  0xe1   :  { %1199 = vmatpush1.msra.mxu1 %v316_v61  ;;  %1143 = vmatprep.subr.mxu0 %v273_v62  ;;  %v472_v59 = vld [vmem:[%s6901_s1 + $0xdb0] sm:$0xff]  ;;  %v381_v60 = vld [vmem:[%s6901_s1 + $0xad8] sm:$0xff] }
  0xe2   :  { %1200 = vmatprep.subr.mxu1 %v313_v63  ;;  %1144 = vmatpush2.msra.mxu0 %v272_v0  ;;  %v469_v61 = vld [vmem:[%s6901_s1 + $0xd98] sm:$0xff]  ;;  %v380_v62 = vld [vmem:[%s6901_s1 + $0xad0] sm:$0xff] }
  0xe3   :  { %1201 = vmatpush1.msra.mxu1 %v312_v1  ;;  %1145 = vmatprep.subr.mxu0 %v269_v2  ;;  %v468_v63 = vld [vmem:[%s6901_s1 + $0xd90] sm:$0xff]  ;;  %v377_v0 = vld [vmem:[%s6901_s1 + $0xab8] sm:$0xff] }
  0xe4   :  { %1202 = vmatprep.subr.mxu1 %v309_v3  ;;  %1146 = vmatpush2.msra.mxu0 %v268_v4  ;;  %v465_v1 = vld [vmem:[%s6901_s1 + $0xd78] sm:$0xff]  ;;  %v376_v2 = vld [vmem:[%s6901_s1 + $0xab0] sm:$0xff] }
  0xe5   :  { %1203 = vmatpush1.msra.mxu1 %v308_v5  ;;  %1147 = vmatprep.subr.mxu0 %v265_v6  ;;  %v464_v3 = vld [vmem:[%s6901_s1 + $0xd70] sm:$0xff]  ;;  %v373_v4 = vld [vmem:[%s6901_s1 + $0xa98] sm:$0xff] }
  0xe6   :  { %1204 = vmatprep.subr.mxu1 %v305_v7  ;;  %1148 = vmatpush2.msra.mxu0 %v264_v8  ;;  %v461_v5 = vld [vmem:[%s6901_s1 + $0xd58] sm:$0xff]  ;;  %v372_v6 = vld [vmem:[%s6901_s1 + $0xa90] sm:$0xff] }
  0xe7   :  { %1205 = vmatpush1.msra.mxu1 %v304_v9  ;;  %1149 = vmatprep.subr.mxu0 %v261_v10  ;;  %v460_v7 = vld [vmem:[%s6901_s1 + $0xd50] sm:$0xff]  ;;  %v369_v8 = vld [vmem:[%s6901_s1 + $0xa78] sm:$0xff] }
  0xe8   :  { %1206 = vmatprep.subr.mxu1 %v301_v11  ;;  %1150 = vmatpush2.msra.mxu0 %v260_v12  ;;  %v457_v9 = vld [vmem:[%s6901_s1 + $0xd38] sm:$0xff]  ;;  %v368_v12 = vld [vmem:[%s6901_s1 + $0xa70] sm:$0xff] }
  0xe9   :  { %1207 = vmatpush1.msra.mxu1 %v300_v13  ;;  %1151 = vmatprep.subr.mxu0 %v257_v14  ;;  %v456_v13 = vld [vmem:[%s6901_s1 + $0xd30] sm:$0xff] }
  0xea   :  { %1208 = vmatprep.subr.mxu1 %v297_v15  ;;  %1152 = vmatpush2.msra.mxu0 %v256_v16  ;;  %v365_v15 = vld [vmem:[%s6901_s1 + $0xa58] sm:$0xff] }
  0xeb   :  { %1209 = vmatpush1.msra.mxu1 %v296_v17  ;;  %1153 = vmatprep.subr.mxu0 %v253_v18  ;;  %v453_v16 = vld [vmem:[%s6901_s1 + $0xd18] sm:$0xff] }
  0xec   :  { %1210 = vmatprep.subr.mxu1 %v293_v19  ;;  %1154 = vmatpush2.msra.mxu0 %v252_v20  ;;  %v364_v19 = vld [vmem:[%s6901_s1 + $0xa50] sm:$0xff] }
  0xed   :  { %1211 = vmatpush1.msra.mxu1 %v292_v21  ;;  %1155 = vmatprep.subr.mxu0 %v249_v22  ;;  %v452_v21 = vld [vmem:[%s6901_s1 + $0xd10] sm:$0xff]  ;;  %v361_v22 = vld [vmem:[%s6901_s1 + $0xa38] sm:$0xff] }
  0xee   :  { %1212 = vmatprep.subr.mxu1 %v417_v23  ;;  %1156 = vmatpush2.msra.mxu0 %v248_v24  ;;  %v2280_v23 = vld [vmem:[%s6902_s0 + $0x58] sm:$0xff] }
  0xef   :  { %1213 = vmatpush2.msra.mxu1 %v416_v25  ;;  %1157 = vmatprep.subr.mxu0 %v245_v26  ;;  %v449_v24 = vld [vmem:[%s6901_s1 + $0xcf8] sm:$0xff]  ;;  %v2281_v25 = vld [vmem:[%s6902_s0 + $0x50] sm:$0xff] }
  0xf0   :  { %1214 = vmatprep.subr.mxu1 %v413_v27  ;;  %1158 = vmatpush2.msra.mxu0 %v244_v28  ;;  %v360_v26 = vld [vmem:[%s6901_s1 + $0xa30] sm:$0xff]  ;;  %v2282_v28 = vld [vmem:[%s6902_s0 + $0x68] sm:$0xff] }
  0xf1   :  { %1215 = vmatpush2.msra.mxu1 %v412_v29  ;;  %1159 = vmatprep.subr.mxu0 %v241_v30  ;;  %v448_v27 = vld [vmem:[%s6901_s1 + $0xcf0] sm:$0xff]  ;;  %v357_v29 = vld [vmem:[%s6901_s1 + $0xa18] sm:$0xff] }
  0xf2   :  { %1216 = vmatprep.subr.mxu1 %v409_v31  ;;  %1160 = vmatpush2.msra.mxu0 %v240_v32  ;;  %v445_v30 = vld [vmem:[%s6901_s1 + $0xcd8] sm:$0xff]  ;;  %v2283_v31 = vld [vmem:[%s6902_s0 + $0x60] sm:$0xff]  ;;  %v356_v32 = vld [vmem:[%s6901_s1 + $0xa10] sm:$0xff] }
  0xf3   :  { %1217 = vmatpush2.msra.mxu1 %v408_v33  ;;  %1161 = vmatprep.subr.mxu0 %v237_v34  ;;  %v444_v33 = vld [vmem:[%s6901_s1 + $0xcd0] sm:$0xff]  ;;  %v441_v34 = vld [vmem:[%s6901_s1 + $0xcb8] sm:$0xff] }
  0xf4   :  { %1218 = vmatprep.subr.mxu1 %v405_v35  ;;  %1162 = vmatpush2.msra.mxu0 %v236_v36  ;;  %v609_v35 = vld [vmem:[%s6901_s1 + $0x11f8] sm:$0xff]  ;;  %v2284_v36 = vld [vmem:[%s6902_s0 + $0x28] sm:$0xff] }
  0xf5   :  { %1219 = vmatpush2.msra.mxu1 %v404_v37  ;;  %1163 = vmatprep.subr.mxu0 %v233_v38  ;;  %v440_v37 = vld [vmem:[%s6901_s1 + $0xcb0] sm:$0xff] }
  0xf6   :  { %1220 = vmatprep.subr.mxu1 %v401_v39  ;;  %1164 = vmatpush2.msra.mxu0 %v232_v40  ;;  %v608_v38 = vld [vmem:[%s6901_s1 + $0x11f0] sm:$0xff]  ;;  %v2285_v39 = vld [vmem:[%s6902_s0 + $0x20] sm:$0xff]  ;;  %v437_v40 = vld [vmem:[%s6901_s1 + $0xc98] sm:$0xff] }
  0xf7   :  { %1221 = vmatpush2.msra.mxu1 %v400_v41  ;;  %1165 = vmatprep.subr.mxu0 %v229_v42  ;;  %v605_v41 = vld [vmem:[%s6901_s1 + $0x11d8] sm:$0xff]  ;;  %v436_v42 = vld [vmem:[%s6901_s1 + $0xc90] sm:$0xff] }
  0xf8   :  { %1222 = vmatprep.subr.mxu1 %v397_v43  ;;  %1166 = vmatpush2.msra.mxu0 %v228_v44  ;;  %v604_v43 = vld [vmem:[%s6901_s1 + $0x11d0] sm:$0xff]  ;;  %v433_v44 = vld [vmem:[%s6901_s1 + $0xc78] sm:$0xff] }
  0xf9   :  { %1167 = vmatprep.mubr.f32.mxu0 %v2278_v48  ;;  %1223 = vmatpush2.msra.mxu1 %v396_v45  ;;  %v601_v45 = vld [vmem:[%s6901_s1 + $0x11b8] sm:$0xff]  ;;  %v600_v48 = vld [vmem:[%s6901_s1 + $0x11b0] sm:$0xff] }
  0xfa   :  { %1168 = vmatmul.mubr.f32.vlgmr.msra.gmra.mxu0 %v2279_v51  ;;  %1224 = vmatprep.subr.mxu1 %v393_v46  ;;  %v2286_v46 = vld [vmem:[%s6902_s0 + $0x78] sm:$0xff]  ;;  %v2287_v51 = vld [vmem:[%s6902_s0 + $0x70] sm:$0xff] }
  0xfb   :  { %1257 = vmatprep.subr.mxu0 %v481_v47  ;;  %1225 = vmatpush2.msra.mxu1 %v392_v49  ;;  %v432_v47 = vld [vmem:[%s6901_s1 + $0xc70] sm:$0xff]  ;;  %v429_v49 = vld [vmem:[%s6901_s1 + $0xc58] sm:$0xff] }
  0xfc   :  { %1258 = vmatpush1.msra.mxu0 %v480_v50  ;;  %1226 = vmatprep.subr.mxu1 %v389_v52  ;;  %v597_v50 = vld [vmem:[%s6901_s1 + $0x1198] sm:$0xff]  ;;  %v428_v52 = vld [vmem:[%s6901_s1 + $0xc50] sm:$0xff] }
  0xfd   :  { %1259 = vmatprep.subr.mxu0 %v477_v53  ;;  %1227 = vmatpush2.msra.mxu1 %v388_v54  ;;  %v596_v53 = vld [vmem:[%s6901_s1 + $0x1190] sm:$0xff]  ;;  %v425_v54 = vld [vmem:[%s6901_s1 + $0xc38] sm:$0xff] }
  0xfe   :  { %1260 = vmatpush1.msra.mxu0 %v476_v55  ;;  %1228 = vmatprep.subr.mxu1 %v385_v56  ;;  %v593_v55 = vld [vmem:[%s6901_s1 + $0x1178] sm:$0xff]  ;;  %v424_v56 = vld [vmem:[%s6901_s1 + $0xc30] sm:$0xff] }
  0xff   :  { %1261 = vmatprep.subr.mxu0 %v473_v57  ;;  %1229 = vmatpush2.msra.mxu1 %v384_v58  ;;  %v592_v57 = vld [vmem:[%s6901_s1 + $0x1170] sm:$0xff]  ;;  %v421_v58 = vld [vmem:[%s6901_s1 + $0xc18] sm:$0xff] }
 0x100   :  { %1262 = vmatpush1.msra.mxu0 %v472_v59  ;;  %1230 = vmatprep.subr.mxu1 %v381_v60  ;;  %v589_v59 = vld [vmem:[%s6901_s1 + $0x1158] sm:$0xff]  ;;  %v420_v60 = vld [vmem:[%s6901_s1 + $0xc10] sm:$0xff] }
 0x101   :  { %1263 = vmatprep.subr.mxu0 %v469_v61  ;;  %1231 = vmatpush2.msra.mxu1 %v380_v62  ;;  %v588_v61 = vld [vmem:[%s6901_s1 + $0x1150] sm:$0xff]  ;;  %v545_v62 = vld [vmem:[%s6901_s1 + $0xff8] sm:$0xff] }
 0x102   :  { %1264 = vmatpush1.msra.mxu0 %v468_v63  ;;  %1232 = vmatprep.subr.mxu1 %v377_v0  ;;  %v585_v63 = vld [vmem:[%s6901_s1 + $0x1138] sm:$0xff]  ;;  %v544_v0 = vld [vmem:[%s6901_s1 + $0xff0] sm:$0xff] }
 0x103   :  { %1265 = vmatprep.subr.mxu0 %v465_v1  ;;  %1233 = vmatpush2.msra.mxu1 %v376_v2  ;;  %v707_v10 = vpop.f32.mrf.mxu0  ;;  %v584_v1 = vld [vmem:[%s6901_s1 + $0x1130] sm:$0xff]  ;;  %v541_v2 = vld [vmem:[%s6901_s1 + $0xfd8] sm:$0xff] }
 0x104   :  { %1266 = vmatpush1.msra.mxu0 %v464_v3  ;;  %v784_v11 = vpop.f32.mrf.mxu1  ;;  %1234 = vmatprep.subr.mxu1 %v373_v4  ;;  %v581_v3 = vld [vmem:[%s6901_s1 + $0x1118] sm:$0xff]  ;;  %v540_v4 = vld [vmem:[%s6901_s1 + $0xfd0] sm:$0xff] }
 0x105   :  { %1267 = vmatprep.subr.mxu0 %v461_v5  ;;  %v4490_v14 = vadd.f32 %v784_v11, %v707_v10  ;;  %1235 = vmatpush2.msra.mxu1 %v372_v6  ;;  %v709_v17 = vpop.f32.mrf.mxu0  ;;  %v580_v5 = vld [vmem:[%s6901_s1 + $0x1110] sm:$0xff]  ;;  %v537_v6 = vld [vmem:[%s6901_s1 + $0xfb8] sm:$0xff] }
 0x106   :  { %1268 = vmatpush1.msra.mxu0 %v460_v7  ;;  %v786_v18 = vpop.f32.mrf.mxu1  ;;  %1236 = vmatprep.subr.mxu1 %v369_v8  ;;  %v577_v7 = vld [vmem:[%s6901_s1 + $0x10f8] sm:$0xff]  ;;  %v536_v8 = vld [vmem:[%s6901_s1 + $0xfb0] sm:$0xff] }
 0x107   :  { %1269 = vmatprep.subr.mxu0 %v457_v9  ;;  %v4501_v20 = vadd.f32 %v786_v18, %v709_v17  ;;  %1237 = vmatpush2.msra.mxu1 %v368_v12  ;;  %v576_v9 = vld [vmem:[%s6901_s1 + $0x10f0] sm:$0xff]  ;;  %v533_v10 = vld [vmem:[%s6901_s1 + $0xf98] sm:$0xff] }
 0x108   :  { %1270 = vmatpush1.msra.mxu0 %v456_v13  ;;  %1238 = vmatprep.subr.mxu1 %v365_v15  ;;  %v573_v11 = vld [vmem:[%s6901_s1 + $0x10d8] sm:$0xff]  ;;  %v532_v12 = vld [vmem:[%s6901_s1 + $0xf90] sm:$0xff] }
 0x109   :  { %1271 = vmatprep.subr.mxu0 %v453_v16  ;;  %1096 = vmatprep.mubr.f32.mxu1 %v2280_v23  ;;  %v572_v13 = vld [vmem:[%s6901_s1 + $0x10d0] sm:$0xff]  ;;  %v529_v15 = vld [vmem:[%s6901_s1 + $0xf78] sm:$0xff] }
 0x10a   :  { %1239 = vmatpush2.msra.mxu1 %v364_v19  ;;  %1272 = vmatpush1.msra.mxu0 %v452_v21  ;;  %v569_v16 = vld [vmem:[%s6901_s1 + $0x10b8] sm:$0xff]  ;;  %v528_v17 = vld [vmem:[%s6901_s1 + $0xf70] sm:$0xff] }
 0x10b   :  { %1097 = vmatmul.mubr.f32.gmra.mxu1 %v2281_v25  ;;  %1173 = vmatprep.mubr.f32.mxu0 %v2282_v28  ;;  %v568_v18 = vld [vmem:[%s6901_s1 + $0x10b0] sm:$0xff]  ;;  %v525_v19 = vld [vmem:[%s6901_s1 + $0xf58] sm:$0xff] }
 0x10c   :  { %1240 = vmatprep.subr.mxu1 %v361_v22  ;;  %1273 = vmatprep.subr.mxu0 %v449_v24  ;;  %v565_v21 = vld [vmem:[%s6901_s1 + $0x1098] sm:$0xff]  ;;  %v524_v22 = vld [vmem:[%s6901_s1 + $0xf50] sm:$0xff] }
 0x10d   :  { %1174 = vmatmul.mubr.f32.gmra.mxu0 %v2283_v31  ;;  %1241 = vmatpush2.msra.mxu1 %v360_v26  ;;  %v564_v23 = vld [vmem:[%s6901_s1 + $0x1090] sm:$0xff]  ;;  %v521_v24 = vld [vmem:[%s6901_s1 + $0xf38] sm:$0xff] }
 0x10e   :  { %1274 = vmatpush1.msra.mxu0 %v448_v27  ;;  %1242 = vmatprep.subr.mxu1 %v357_v29  ;;  %v561_v25 = vld [vmem:[%s6901_s1 + $0x1078] sm:$0xff]  ;;  %v520_v26 = vld [vmem:[%s6901_s1 + $0xf30] sm:$0xff] }
 0x10f   :  { %1275 = vmatprep.subr.mxu0 %v445_v30  ;;  %1243 = vmatpush2.msra.mxu1 %v356_v32  ;;  %v560_v27 = vld [vmem:[%s6901_s1 + $0x1070] sm:$0xff]  ;;  %v517_v28 = vld [vmem:[%s6901_s1 + $0xf18] sm:$0xff] }
 0x110   :  { %1244 = vmatprep.mubr.f32.mxu1 %v2284_v36  ;;  %1276 = vmatpush1.msra.mxu0 %v444_v33  ;;  %v557_v29 = vld [vmem:[%s6901_s1 + $0x1058] sm:$0xff]  ;;  %v516_v30 = vld [vmem:[%s6901_s1 + $0xf10] sm:$0xff] }
 0x111   :  { %1245 = vmatmul.mubr.f32.vlgmr.msra.gmra.mxu1 %v2285_v39  ;;  %1277 = vmatprep.subr.mxu0 %v441_v34  ;;  %v556_v31 = vld [vmem:[%s6901_s1 + $0x1050] sm:$0xff]  ;;  %v513_v32 = vld [vmem:[%s6901_s1 + $0xef8] sm:$0xff] }
 0x112   :  { %1334 = vmatprep.subr.mxu1 %v609_v35  ;;  %1278 = vmatpush1.msra.mxu0 %v440_v37  ;;  %v553_v33 = vld [vmem:[%s6901_s1 + $0x1038] sm:$0xff]  ;;  %v512_v34 = vld [vmem:[%s6901_s1 + $0xef0] sm:$0xff] }
 0x113   :  { %1335 = vmatpush1.msra.mxu1 %v608_v38  ;;  %1279 = vmatprep.subr.mxu0 %v437_v40  ;;  %v552_v35 = vld [vmem:[%s6901_s1 + $0x1030] sm:$0xff]  ;;  %v509_v36 = vld [vmem:[%s6901_s1 + $0xed8] sm:$0xff] }
 0x114   :  { %1336 = vmatprep.subr.mxu1 %v605_v41  ;;  %1250 = vmatprep.mubr.f32.mxu1 %v2286_v46  ;;  %v549_v37 = vld [vmem:[%s6901_s1 + $0x1018] sm:$0xff]  ;;  %v508_v38 = vld [vmem:[%s6901_s1 + $0xed0] sm:$0xff] }
 0x115   :  { %1280 = vmatpush1.msra.mxu0 %v436_v42  ;;  %1337 = vmatpush1.msra.mxu1 %v604_v43  ;;  %v548_v39 = vld [vmem:[%s6901_s1 + $0x1010] sm:$0xff]  ;;  %v505_v40 = vld [vmem:[%s6901_s1 + $0xeb8] sm:$0xff] }
 0x116   :  { %1281 = vmatprep.subr.mxu0 %v433_v44  ;;  %1251 = vmatmul.mubr.f32.gmra.mxu1 %v2287_v51  ;;  %v633_v41 = vld [vmem:[%s6901_s1 + $0x12b8] sm:$0xff]  ;;  %v504_v42 = vld [vmem:[%s6901_s1 + $0xeb0] sm:$0xff] }
 0x117   :  { %1338 = vmatprep.subr.mxu1 %v601_v45  ;;  %1282 = vmatpush1.msra.mxu0 %v432_v47  ;;  %v632_v43 = vld [vmem:[%s6901_s1 + $0x12b0] sm:$0xff]  ;;  %v501_v44 = vld [vmem:[%s6901_s1 + $0xe98] sm:$0xff] }
 0x118   :  { %1339 = vmatpush1.msra.mxu1 %v600_v48  ;;  %1283 = vmatprep.subr.mxu0 %v429_v49  ;;  %v629_v45 = vld [vmem:[%s6901_s1 + $0x1298] sm:$0xff]  ;;  %v500_v46 = vld [vmem:[%s6901_s1 + $0xe90] sm:$0xff] }
 0x119   :  { %1340 = vmatprep.subr.mxu1 %v597_v50  ;;  %1284 = vmatpush1.msra.mxu0 %v428_v52  ;;  %v628_v47 = vld [vmem:[%s6901_s1 + $0x1290] sm:$0xff]  ;;  %v497_v48 = vld [vmem:[%s6901_s1 + $0xe78] sm:$0xff] }
 0x11a   :  { %1341 = vmatpush1.msra.mxu1 %v596_v53  ;;  %1285 = vmatprep.subr.mxu0 %v425_v54  ;;  %v625_v49 = vld [vmem:[%s6901_s1 + $0x1278] sm:$0xff]  ;;  %v496_v50 = vld [vmem:[%s6901_s1 + $0xe70] sm:$0xff] }
 0x11b   :  { %1342 = vmatprep.subr.mxu1 %v593_v55  ;;  %1286 = vmatpush1.msra.mxu0 %v424_v56  ;;  %v624_v51 = vld [vmem:[%s6901_s1 + $0x1270] sm:$0xff]  ;;  %v493_v52 = vld [vmem:[%s6901_s1 + $0xe58] sm:$0xff] }
 0x11c   :  { %1343 = vmatpush1.msra.mxu1 %v592_v57  ;;  %1287 = vmatprep.subr.mxu0 %v421_v58  ;;  %v621_v53 = vld [vmem:[%s6901_s1 + $0x1258] sm:$0xff]  ;;  %v492_v54 = vld [vmem:[%s6901_s1 + $0xe50] sm:$0xff] }
 0x11d   :  { %1344 = vmatprep.subr.mxu1 %v589_v59  ;;  %1288 = vmatpush1.msra.mxu0 %v420_v60  ;;  %v620_v55 = vld [vmem:[%s6901_s1 + $0x1250] sm:$0xff]  ;;  %v489_v56 = vld [vmem:[%s6901_s1 + $0xe38] sm:$0xff] }
 0x11e   :  { %1345 = vmatpush1.msra.mxu1 %v588_v61  ;;  %1289 = vmatprep.subr.mxu0 %v545_v62  ;;  %v617_v57 = vld [vmem:[%s6901_s1 + $0x1238] sm:$0xff]  ;;  %v488_v58 = vld [vmem:[%s6901_s1 + $0xe30] sm:$0xff] }
 0x11f   :  { %1346 = vmatprep.subr.mxu1 %v585_v63  ;;  %1290 = vmatpush2.msra.mxu0 %v544_v0  ;;  %v616_v59 = vld [vmem:[%s6901_s1 + $0x1230] sm:$0xff]  ;;  %v485_v60 = vld [vmem:[%s6901_s1 + $0xe18] sm:$0xff] }
 0x120   :  { %1347 = vmatpush1.msra.mxu1 %v584_v1  ;;  %1291 = vmatprep.subr.mxu0 %v541_v2  ;;  %v613_v61 = vld [vmem:[%s6901_s1 + $0x1218] sm:$0xff]  ;;  %v484_v62 = vld [vmem:[%s6901_s1 + $0xe10] sm:$0xff]  ;;  %v2290_v2 = vld [vmem:[%s6902_s0 + $0x48] sm:$0xff] }
 0x121   :  { %1348 = vmatprep.subr.mxu1 %v581_v3  ;;  %1292 = vmatpush2.msra.mxu0 %v540_v4  ;;  %v612_v63 = vld [vmem:[%s6901_s1 + $0x1210] sm:$0xff]  ;;  %v2288_v0 = vld [vmem:[%s6902_s0 + $0x38] sm:$0xff]  ;;  %v2291_v3 = vld [vmem:[%s6901_s1 + $0x1e8] sm:$0xff] }
 0x122   :  { %1349 = vmatpush1.msra.mxu1 %v580_v5  ;;  %1293 = vmatprep.subr.mxu0 %v537_v6  ;;  %v2289_v1 = vld [vmem:[%s6902_s0 + $0x30] sm:$0xff]  ;;  %v2292_v4 = vld [vmem:[%s6901_s1 + $0x5e8] sm:$0xff]  ;;  %v2293_v5 = vld [vmem:[%s6902_s0 + $0x40] sm:$0xff] }
 0x123   :  { %1350 = vmatprep.subr.mxu1 %v577_v7  ;;  %1294 = vmatpush2.msra.mxu0 %v536_v8  ;;  %v2294_v8 = vld [vmem:[%s6901_s1 + $0x1e0] sm:$0xff] }
 0x124   :  { %1351 = vmatpush1.msra.mxu1 %v576_v9  ;;  %1295 = vmatprep.subr.mxu0 %v533_v10  ;;  %v2295_v9 = vld [vmem:[%s6901_s1 + $0x5e0] sm:$0xff] }
 0x125   :  { %1352 = vmatprep.subr.mxu1 %v573_v11  ;;  %1296 = vmatpush2.msra.mxu0 %v532_v12  ;;  %v2296_v11 = vld [vmem:[%s6901_s1 + $0x1c8] sm:$0xff] }
 0x126   :  { %1353 = vmatpush1.msra.mxu1 %v572_v13  ;;  %1297 = vmatprep.subr.mxu0 %v529_v15  ;;  %v2297_v12 = vld [vmem:[%s6901_s1 + $0x5c8] sm:$0xff] }
 0x127   :  { %1354 = vmatprep.subr.mxu1 %v569_v16  ;;  %1298 = vmatpush2.msra.mxu0 %v528_v17  ;;  %v2298_v16 = vld [vmem:[%s6902_s0 + $0x88] sm:$0xff]  ;;  %v2299_v17 = vld [vmem:[%s6901_s1 + $0x1c0] sm:$0xff] }
 0x128   :  { %1355 = vmatpush1.msra.mxu1 %v568_v18  ;;  %1299 = vmatprep.subr.mxu0 %v525_v19  ;;  %v2300_v19 = vld [vmem:[%s6901_s1 + $0x5c0] sm:$0xff] }
 0x129   :  { %1356 = vmatprep.subr.mxu1 %v565_v21  ;;  %1300 = vmatpush2.msra.mxu0 %v524_v22  ;;  %v2301_v21 = vld [vmem:[%s6902_s0 + $0x80] sm:$0xff]  ;;  %v2302_v22 = vld [vmem:[%s6901_s1 + $0x1a8] sm:$0xff] }
 0x12a   :  { %1357 = vmatpush1.msra.mxu1 %v564_v23  ;;  %1301 = vmatprep.subr.mxu0 %v521_v24  ;;  %v2303_v23 = vld [vmem:[%s6901_s1 + $0x5a8] sm:$0xff]  ;;  %v2304_v24 = vld [vmem:[%s6902_s0 + $0x98] sm:$0xff] }
 0x12b   :  { %1358 = vmatprep.subr.mxu1 %v561_v25  ;;  %1302 = vmatpush2.msra.mxu0 %v520_v26  ;;  %v2305_v25 = vld [vmem:[%s6901_s1 + $0x1a0] sm:$0xff] }
 0x12c   :  { %1359 = vmatpush1.msra.mxu1 %v560_v27  ;;  %1303 = vmatprep.subr.mxu0 %v517_v28  ;;  %v2306_v26 = vld [vmem:[%s6901_s1 + $0x5a0] sm:$0xff]  ;;  %v2307_v27 = vld [vmem:[%s6901_s1 + $0x188] sm:$0xff]  ;;  %v2308_v28 = vld [vmem:[%s6902_s0 + $0x90] sm:$0xff] }
 0x12d   :  { %1360 = vmatprep.subr.mxu1 %v557_v29  ;;  %1304 = vmatpush2.msra.mxu0 %v516_v30  ;;  %v2309_v29 = vld [vmem:[%s6901_s1 + $0x588] sm:$0xff]  ;;  %v2310_v30 = vld [vmem:[%s6901_s1 + $0x180] sm:$0xff] }
 0x12e   :  { %1361 = vmatpush1.msra.mxu1 %v556_v31  ;;  %1305 = vmatprep.subr.mxu0 %v513_v32  ;;  %v2311_v31 = vld [vmem:[%s6901_s1 + $0x580] sm:$0xff]  ;;  %v2312_v32 = vld [vmem:[%s6901_s1 + $0x168] sm:$0xff] }
 0x12f   :  { %1362 = vmatprep.subr.mxu1 %v553_v33  ;;  %1306 = vmatpush2.msra.mxu0 %v512_v34  ;;  %v2313_v33 = vld [vmem:[%s6901_s1 + $0x568] sm:$0xff]  ;;  %v2314_v34 = vld [vmem:[%s6901_s1 + $0x160] sm:$0xff] }
 0x130   :  { %1363 = vmatpush1.msra.mxu1 %v552_v35  ;;  %1307 = vmatprep.subr.mxu0 %v509_v36  ;;  %v2315_v35 = vld [vmem:[%s6901_s1 + $0x560] sm:$0xff]  ;;  %v2316_v36 = vld [vmem:[%s6901_s1 + $0x148] sm:$0xff] }
 0x131   :  { %1364 = vmatprep.subr.mxu1 %v549_v37  ;;  %1308 = vmatpush2.msra.mxu0 %v508_v38  ;;  %v2317_v37 = vld [vmem:[%s6901_s1 + $0x548] sm:$0xff]  ;;  %v2318_v38 = vld [vmem:[%s6901_s1 + $0x140] sm:$0xff] }
 0x132   :  { %1365 = vmatpush1.msra.mxu1 %v548_v39  ;;  %1309 = vmatprep.subr.mxu0 %v505_v40  ;;  %v2319_v39 = vld [vmem:[%s6901_s1 + $0x540] sm:$0xff]  ;;  %v2320_v40 = vld [vmem:[%s6901_s1 + $0x128] sm:$0xff] }
 0x133   :  { %1386 = vmatprep.subr.mxu1 %v633_v41  ;;  %1310 = vmatpush2.msra.mxu0 %v504_v42  ;;  %v2321_v41 = vld [vmem:[%s6901_s1 + $0x528] sm:$0xff]  ;;  %v2322_v42 = vld [vmem:[%s6901_s1 + $0x120] sm:$0xff] }
 0x134   :  { %1387 = vmatpush2.msra.mxu1 %v632_v43  ;;  %1311 = vmatprep.subr.mxu0 %v501_v44  ;;  %v2323_v43 = vld [vmem:[%s6901_s1 + $0x520] sm:$0xff]  ;;  %v2324_v44 = vld [vmem:[%s6901_s1 + $0x108] sm:$0xff] }
 0x135   :  { %1388 = vmatprep.subr.mxu1 %v629_v45  ;;  %1312 = vmatpush2.msra.mxu0 %v500_v46  ;;  %v2325_v45 = vld [vmem:[%s6901_s1 + $0x508] sm:$0xff]  ;;  %v2326_v46 = vld [vmem:[%s6901_s1 + $0x100] sm:$0xff] }
 0x136   :  { %1389 = vmatpush2.msra.mxu1 %v628_v47  ;;  %1313 = vmatprep.subr.mxu0 %v497_v48  ;;  %v2327_v47 = vld [vmem:[%s6901_s1 + $0x500] sm:$0xff]  ;;  %v2328_v48 = vld [vmem:[%s6901_s1 + $0xe8] sm:$0xff] }
 0x137   :  { %1390 = vmatprep.subr.mxu1 %v625_v49  ;;  %1314 = vmatpush2.msra.mxu0 %v496_v50  ;;  %v2329_v49 = vld [vmem:[%s6901_s1 + $0x4e8] sm:$0xff]  ;;  %v2330_v50 = vld [vmem:[%s6901_s1 + $0xe0] sm:$0xff] }
 0x138   :  { %1391 = vmatpush2.msra.mxu1 %v624_v51  ;;  %1315 = vmatprep.subr.mxu0 %v493_v52  ;;  %v2331_v51 = vld [vmem:[%s6901_s1 + $0x4e0] sm:$0xff]  ;;  %v2332_v52 = vld [vmem:[%s6901_s1 + $0xc8] sm:$0xff] }
 0x139   :  { %1392 = vmatprep.subr.mxu1 %v621_v53  ;;  %1316 = vmatpush2.msra.mxu0 %v492_v54  ;;  %v2333_v53 = vld [vmem:[%s6901_s1 + $0x4c8] sm:$0xff]  ;;  %v2334_v54 = vld [vmem:[%s6901_s1 + $0xc0] sm:$0xff] }
 0x13a   :  { %1393 = vmatpush2.msra.mxu1 %v620_v55  ;;  %1317 = vmatprep.subr.mxu0 %v489_v56  ;;  %v2335_v55 = vld [vmem:[%s6901_s1 + $0x4c0] sm:$0xff]  ;;  %v2336_v56 = vld [vmem:[%s6901_s1 + $0xa8] sm:$0xff] }
 0x13b   :  { %1394 = vmatprep.subr.mxu1 %v617_v57  ;;  %1318 = vmatpush2.msra.mxu0 %v488_v58  ;;  %v2337_v57 = vld [vmem:[%s6901_s1 + $0x4a8] sm:$0xff]  ;;  %v2338_v58 = vld [vmem:[%s6901_s1 + $0xa0] sm:$0xff] }
 0x13c   :  { %1395 = vmatpush2.msra.mxu1 %v616_v59  ;;  %1319 = vmatprep.subr.mxu0 %v485_v60  ;;  %v2339_v59 = vld [vmem:[%s6901_s1 + $0x4a0] sm:$0xff]  ;;  %v2340_v60 = vld [vmem:[%s6901_s1 + $0x88] sm:$0xff] }
 0x13d   :  { %1396 = vmatprep.subr.mxu1 %v613_v61  ;;  %1320 = vmatpush2.msra.mxu0 %v484_v62  ;;  %v2341_v61 = vld [vmem:[%s6901_s1 + $0x488] sm:$0xff]  ;;  %v2342_v62 = vld [vmem:[%s6901_s1 + $0x80] sm:$0xff] }
 0x13e   :  { %1321 = vmatprep.mubr.f32.mxu0 %v2288_v0  ;;  %1397 = vmatpush2.msra.mxu1 %v612_v63  ;;  %v2343_v63 = vld [vmem:[%s6901_s1 + $0x480] sm:$0xff]  ;;  %v2344_v0 = vld [vmem:[%s6901_s1 + $0x68] sm:$0xff] }
 0x13f   :  { %1322 = vmatmul.mubr.f32.vlgmr.msra.gmra.mxu0 %v2289_v1  ;;  %2250 = vmatprep.mubr.msk.f32.mxu1 %vm634_vm0, %v2290_v2  ;;  %v2345_v1 = vld [vmem:[%s6901_s1 + $0x468] sm:$0xff]  ;;  %v2346_v2 = vld [vmem:[%s6901_s1 + $0x60] sm:$0xff] }
 0x140   :  { %1438 = vmatprep.subr.mxu0 %v2291_v3  ;;  %1515 = vmatprep.subr.mxu1 %v2292_v4  ;;  %v713_v6 = vpop.f32.mrf.mxu0  ;;  %v2347_v3 = vld [vmem:[%s6901_s1 + $0x460] sm:$0xff]  ;;  %v2348_v4 = vld [vmem:[%s6901_s1 + $0x48] sm:$0xff] }
 0x141   :  { %1399 = vmatmul.mubr.f32.vlgmr.msra.gmra.mxu1 %v2293_v5  ;;  %v790_v7 = vpop.f32.mrf.mxu1  ;;  %1439 = vmatpush1.msra.mxu0 %v2294_v8  ;;  %v2349_v5 = vld [vmem:[%s6901_s1 + $0x448] sm:$0xff] }
 0x142   :  { %1516 = vmatpush1.msra.mxu1 %v2295_v9  ;;  %v4843_v10 = vadd.f32 %v790_v7, %v713_v6  ;;  %1440 = vmatprep.subr.mxu0 %v2296_v11  ;;  %v715_v13 = vpop.f32.mrf.mxu0  ;;  %v2350_v6 = vld [vmem:[%s6901_s1 + $0x40] sm:$0xff]  ;;  %v2352_v8 = vld [vmem:[%s6901_s1 + $0x28] sm:$0xff] }
 0x143   :  { %1517 = vmatprep.subr.mxu1 %v2297_v12  ;;  %v792_v15 = vpop.f32.mrf.mxu1  ;;  %1327 = vmatprep.mubr.f32.mxu0 %v2298_v16  ;;  %v2351_v7 = vld [vmem:[%s6901_s1 + $0x440] sm:$0xff]  ;;  %v2353_v9 = vld [vmem:[%s6901_s1 + $0x428] sm:$0xff] }
 0x144   :  { %1441 = vmatpush1.msra.mxu0 %v2299_v17  ;;  %v4857_v18 = vadd.f32 %v792_v15, %v715_v13  ;;  %1518 = vmatpush1.msra.mxu1 %v2300_v19  ;;  %v2354_v11 = vld [vmem:[%s6901_s1 + $0x20] sm:$0xff]  ;;  %v2356_v13 = vld [vmem:[%s6901_s1 + $0x8] sm:$0xff] }
 0x145   :  { %1328 = vmatmul.mubr.f32.gmra.mxu0 %v2301_v21  ;;  %1442 = vmatprep.subr.mxu0 %v2302_v22  ;;  %v2355_v12 = vld [vmem:[%s6901_s1 + $0x420] sm:$0xff]  ;;  %v2357_v15 = vld [vmem:[%s6901_s1 + $0x408] sm:$0xff] }
 0x146   :  { %1519 = vmatprep.subr.mxu1 %v2303_v23  ;;  %2251 = vmatprep.mubr.msk.f32.mxu1 %vm634_vm0, %v2304_v24  ;;  %v2358_v16 = vld [vmem:[%s6901_s1] sm:$0xff]  ;;  %v2360_v19 = vld [vmem:[%s6901_s1 + $0x3e8] sm:$0xff] }
 0x147   :  { %1443 = vmatpush1.msra.mxu0 %v2305_v25  ;;  %1520 = vmatpush1.msra.mxu1 %v2306_v26  ;;  %v2359_v17 = vld [vmem:[%s6901_s1 + $0x400] sm:$0xff]  ;;  %v2361_v21 = vld [vmem:[%s6901_s1 + $0x7e8] sm:$0xff] }
 0x148   :  { %1444 = vmatprep.subr.mxu0 %v2307_v27  ;;  %1405 = vmatmul.mubr.f32.gmra.mxu1 %v2308_v28  ;;  %v2362_v22 = vld [vmem:[%s6901_s1 + $0x3e0] sm:$0xff]  ;;  %v2364_v24 = vld [vmem:[%s6901_s1 + $0x3c8] sm:$0xff] }
 0x149   :  { %1521 = vmatprep.subr.mxu1 %v2309_v29  ;;  %1445 = vmatpush1.msra.mxu0 %v2310_v30  ;;  %v2363_v23 = vld [vmem:[%s6901_s1 + $0x7e0] sm:$0xff]  ;;  %v2365_v25 = vld [vmem:[%s6901_s1 + $0x7c8] sm:$0xff] }
 0x14a   :  { %1522 = vmatpush1.msra.mxu1 %v2311_v31  ;;  %1446 = vmatprep.subr.mxu0 %v2312_v32  ;;  %v2366_v26 = vld [vmem:[%s6901_s1 + $0x3c0] sm:$0xff]  ;;  %v2368_v28 = vld [vmem:[%s6901_s1 + $0x3a8] sm:$0xff] }
 0x14b   :  { %1523 = vmatprep.subr.mxu1 %v2313_v33  ;;  %1447 = vmatpush1.msra.mxu0 %v2314_v34  ;;  %v2367_v27 = vld [vmem:[%s6901_s1 + $0x7c0] sm:$0xff]  ;;  %v2369_v29 = vld [vmem:[%s6901_s1 + $0x7a8] sm:$0xff] }
 0x14c   :  { %1524 = vmatpush1.msra.mxu1 %v2315_v35  ;;  %1448 = vmatprep.subr.mxu0 %v2316_v36  ;;  %v2370_v30 = vld [vmem:[%s6901_s1 + $0x3a0] sm:$0xff]  ;;  %v2372_v32 = vld [vmem:[%s6901_s1 + $0x388] sm:$0xff] }
 0x14d   :  { %1525 = vmatprep.subr.mxu1 %v2317_v37  ;;  %1449 = vmatpush1.msra.mxu0 %v2318_v38  ;;  %v2371_v31 = vld [vmem:[%s6901_s1 + $0x7a0] sm:$0xff]  ;;  %v2373_v33 = vld [vmem:[%s6901_s1 + $0x788] sm:$0xff] }
 0x14e   :  { %1526 = vmatpush1.msra.mxu1 %v2319_v39  ;;  %1450 = vmatprep.subr.mxu0 %v2320_v40  ;;  %v2374_v34 = vld [vmem:[%s6901_s1 + $0x380] sm:$0xff]  ;;  %v2376_v36 = vld [vmem:[%s6901_s1 + $0x368] sm:$0xff] }
 0x14f   :  { %1527 = vmatprep.subr.mxu1 %v2321_v41  ;;  %1451 = vmatpush1.msra.mxu0 %v2322_v42  ;;  %v2375_v35 = vld [vmem:[%s6901_s1 + $0x780] sm:$0xff]  ;;  %v2377_v37 = vld [vmem:[%s6901_s1 + $0x768] sm:$0xff] }
 0x150   :  { %1528 = vmatpush1.msra.mxu1 %v2323_v43  ;;  %1452 = vmatprep.subr.mxu0 %v2324_v44  ;;  %v2378_v38 = vld [vmem:[%s6901_s1 + $0x360] sm:$0xff]  ;;  %v2380_v40 = vld [vmem:[%s6901_s1 + $0x348] sm:$0xff] }
 0x151   :  { %1529 = vmatprep.subr.mxu1 %v2325_v45  ;;  %1453 = vmatpush1.msra.mxu0 %v2326_v46  ;;  %v2379_v39 = vld [vmem:[%s6901_s1 + $0x760] sm:$0xff]  ;;  %v2381_v41 = vld [vmem:[%s6901_s1 + $0x748] sm:$0xff] }
 0x152   :  { %1530 = vmatpush1.msra.mxu1 %v2327_v47  ;;  %1454 = vmatprep.subr.mxu0 %v2328_v48  ;;  %v2382_v42 = vld [vmem:[%s6901_s1 + $0x340] sm:$0xff]  ;;  %v2384_v44 = vld [vmem:[%s6901_s1 + $0x328] sm:$0xff] }
 0x153   :  { %1531 = vmatprep.subr.mxu1 %v2329_v49  ;;  %1455 = vmatpush1.msra.mxu0 %v2330_v50  ;;  %v2383_v43 = vld [vmem:[%s6901_s1 + $0x740] sm:$0xff]  ;;  %v2385_v45 = vld [vmem:[%s6901_s1 + $0x728] sm:$0xff] }
 0x154   :  { %1532 = vmatpush1.msra.mxu1 %v2331_v51  ;;  %1456 = vmatprep.subr.mxu0 %v2332_v52  ;;  %v2386_v46 = vld [vmem:[%s6901_s1 + $0x320] sm:$0xff]  ;;  %v2388_v48 = vld [vmem:[%s6901_s1 + $0x308] sm:$0xff] }
 0x155   :  { %1533 = vmatprep.subr.mxu1 %v2333_v53  ;;  %1457 = vmatpush1.msra.mxu0 %v2334_v54  ;;  %v2387_v47 = vld [vmem:[%s6901_s1 + $0x720] sm:$0xff]  ;;  %v2389_v49 = vld [vmem:[%s6901_s1 + $0x708] sm:$0xff] }
 0x156   :  { %1534 = vmatpush1.msra.mxu1 %v2335_v55  ;;  %1458 = vmatprep.subr.mxu0 %v2336_v56  ;;  %v2390_v50 = vld [vmem:[%s6901_s1 + $0x300] sm:$0xff]  ;;  %v2392_v52 = vld [vmem:[%s6901_s1 + $0x2e8] sm:$0xff] }
 0x157   :  { %1535 = vmatprep.subr.mxu1 %v2337_v57  ;;  %1459 = vmatpush1.msra.mxu0 %v2338_v58  ;;  %v2391_v51 = vld [vmem:[%s6901_s1 + $0x700] sm:$0xff]  ;;  %v2393_v53 = vld [vmem:[%s6901_s1 + $0x6e8] sm:$0xff] }
 0x158   :  { %1536 = vmatpush1.msra.mxu1 %v2339_v59  ;;  %1460 = vmatprep.subr.mxu0 %v2340_v60  ;;  %v2394_v54 = vld [vmem:[%s6901_s1 + $0x2e0] sm:$0xff]  ;;  %v2396_v56 = vld [vmem:[%s6901_s1 + $0x2c8] sm:$0xff] }
 0x159   :  { %1537 = vmatprep.subr.mxu1 %v2341_v61  ;;  %1461 = vmatpush1.msra.mxu0 %v2342_v62  ;;  %v2395_v55 = vld [vmem:[%s6901_s1 + $0x6e0] sm:$0xff]  ;;  %v2397_v57 = vld [vmem:[%s6901_s1 + $0x6c8] sm:$0xff] }
 0x15a   :  { %1538 = vmatpush1.msra.mxu1 %v2343_v63  ;;  %1462 = vmatprep.subr.mxu0 %v2344_v0  ;;  %v2398_v58 = vld [vmem:[%s6901_s1 + $0x2c0] sm:$0xff]  ;;  %v2400_v60 = vld [vmem:[%s6901_s1 + $0x2a8] sm:$0xff] }
 0x15b   :  { %1539 = vmatprep.subr.mxu1 %v2345_v1  ;;  %1463 = vmatpush1.msra.mxu0 %v2346_v2  ;;  %v2399_v59 = vld [vmem:[%s6901_s1 + $0x6c0] sm:$0xff]  ;;  %v2401_v61 = vld [vmem:[%s6901_s1 + $0x6a8] sm:$0xff] }
 0x15c   :  { %1540 = vmatpush1.msra.mxu1 %v2347_v3  ;;  %1464 = vmatprep.subr.mxu0 %v2348_v4  ;;  %v2402_v62 = vld [vmem:[%s6901_s1 + $0x2a0] sm:$0xff]  ;;  %v2404_v0 = vld [vmem:[%s6901_s1 + $0x288] sm:$0xff] }
 0x15d   :  { %1541 = vmatprep.subr.mxu1 %v2349_v5  ;;  %1465 = vmatpush1.msra.mxu0 %v2350_v6  ;;  %v2403_v63 = vld [vmem:[%s6901_s1 + $0x6a0] sm:$0xff]  ;;  %v2405_v1 = vld [vmem:[%s6901_s1 + $0x688] sm:$0xff] }
 0x15e   :  { %1542 = vmatpush1.msra.mxu1 %v2351_v7  ;;  %1466 = vmatprep.subr.mxu0 %v2352_v8  ;;  %v2406_v2 = vld [vmem:[%s6901_s1 + $0x280] sm:$0xff]  ;;  %v2408_v4 = vld [vmem:[%s6901_s1 + $0x268] sm:$0xff] }
 0x15f   :  { %1543 = vmatprep.subr.mxu1 %v2353_v9  ;;  %1467 = vmatpush1.msra.mxu0 %v2354_v11  ;;  %v2407_v3 = vld [vmem:[%s6901_s1 + $0x680] sm:$0xff]  ;;  %v2409_v5 = vld [vmem:[%s6901_s1 + $0x668] sm:$0xff] }
 0x160   :  { %1544 = vmatpush1.msra.mxu1 %v2355_v12  ;;  %1468 = vmatprep.subr.mxu0 %v2356_v13  ;;  %v2410_v6 = vld [vmem:[%s6901_s1 + $0x260] sm:$0xff]  ;;  %v2412_v8 = vld [vmem:[%s6901_s1 + $0x248] sm:$0xff] }
 0x161   :  { %1545 = vmatprep.subr.mxu1 %v2357_v15  ;;  %1469 = vmatpush1.msra.mxu0 %v2358_v16  ;;  %v2411_v7 = vld [vmem:[%s6901_s1 + $0x660] sm:$0xff]  ;;  %v2413_v9 = vld [vmem:[%s6901_s1 + $0x648] sm:$0xff] }
 0x162   :  { %1546 = vmatpush1.msra.mxu1 %v2359_v17  ;;  %1470 = vmatprep.subr.mxu0 %v2360_v19  ;;  %v2414_v11 = vld [vmem:[%s6901_s1 + $0x240] sm:$0xff]  ;;  %v2416_v13 = vld [vmem:[%s6901_s1 + $0x228] sm:$0xff] }
 0x163   :  { %1547 = vmatprep.subr.mxu1 %v2361_v21  ;;  %1471 = vmatpush2.msra.mxu0 %v2362_v22  ;;  %v2415_v12 = vld [vmem:[%s6901_s1 + $0x640] sm:$0xff]  ;;  %v2417_v15 = vld [vmem:[%s6901_s1 + $0x628] sm:$0xff]  ;;  %v5228_v21 = vld [vmem:[%s6902_s0 + $0xb8] sm:$0xff] }
 0x164   :  { %1548 = vmatpush2.msra.mxu1 %v2363_v23  ;;  %1472 = vmatprep.subr.mxu0 %v2364_v24  ;;  %v5217_v16 = vld [vmem:[%s6902_s0 + $0xa8] sm:$0xff]  ;;  %v2418_v17 = vld [vmem:[%s6901_s1 + $0x220] sm:$0xff] }
 0x165   :  { %1549 = vmatprep.subr.mxu1 %v2365_v25  ;;  %1473 = vmatpush2.msra.mxu0 %v2366_v26  ;;  %v2419_v19 = vld [vmem:[%s6901_s1 + $0x620] sm:$0xff]  ;;  %v2420_v22 = vld [vmem:[%s6901_s1 + $0x208] sm:$0xff]  ;;  %v5244_v25 = vld [vmem:[%s6902_s0 + $0xb0] sm:$0xff] }
 0x166   :  { %1550 = vmatpush2.msra.mxu1 %v2367_v27  ;;  %1474 = vmatprep.subr.mxu0 %v2368_v28  ;;  %v2421_v23 = vld [vmem:[%s6901_s1 + $0x608] sm:$0xff]  ;;  %v5239_v24 = vld [vmem:[%s6902_s0 + $0xa0] sm:$0xff] }
 0x167   :  { %1551 = vmatprep.subr.mxu1 %v2369_v29  ;;  %1475 = vmatpush2.msra.mxu0 %v2370_v30  ;;  %v2422_v26 = vld [vmem:[%s6901_s1 + $0x200] sm:$0xff]  ;;  %v2424_v28 = vld [vmem:[%s6901_s1 + $0x9e8] sm:$0xff] }
 0x168   :  { %1552 = vmatpush2.msra.mxu1 %v2371_v31  ;;  %1476 = vmatprep.subr.mxu0 %v2372_v32  ;;  %v2423_v27 = vld [vmem:[%s6901_s1 + $0x600] sm:$0xff]  ;;  %v2425_v29 = vld [vmem:[%s6901_s1 + $0xde8] sm:$0xff] }
 0x169   :  { %1553 = vmatprep.subr.mxu1 %v2373_v33  ;;  %1477 = vmatpush2.msra.mxu0 %v2374_v34  ;;  %v2426_v30 = vld [vmem:[%s6901_s1 + $0x9e0] sm:$0xff]  ;;  %v2428_v32 = vld [vmem:[%s6901_s1 + $0x9c8] sm:$0xff] }
 0x16a   :  { %1554 = vmatpush2.msra.mxu1 %v2375_v35  ;;  %1478 = vmatprep.subr.mxu0 %v2376_v36  ;;  %v2427_v31 = vld [vmem:[%s6901_s1 + $0xde0] sm:$0xff]  ;;  %v2429_v33 = vld [vmem:[%s6901_s1 + $0xdc8] sm:$0xff] }
 0x16b   :  { %1555 = vmatprep.subr.mxu1 %v2377_v37  ;;  %1479 = vmatpush2.msra.mxu0 %v2378_v38  ;;  %v2430_v34 = vld [vmem:[%s6901_s1 + $0x9c0] sm:$0xff]  ;;  %v2432_v36 = vld [vmem:[%s6901_s1 + $0x9a8] sm:$0xff] }
 0x16c   :  { %1556 = vmatpush2.msra.mxu1 %v2379_v39  ;;  %1480 = vmatprep.subr.mxu0 %v2380_v40  ;;  %v2431_v35 = vld [vmem:[%s6901_s1 + $0xdc0] sm:$0xff]  ;;  %v2433_v37 = vld [vmem:[%s6901_s1 + $0xda8] sm:$0xff] }
 0x16d   :  { %1557 = vmatprep.subr.mxu1 %v2381_v41  ;;  %1481 = vmatpush2.msra.mxu0 %v2382_v42  ;;  %v2434_v38 = vld [vmem:[%s6901_s1 + $0x9a0] sm:$0xff]  ;;  %v2436_v40 = vld [vmem:[%s6901_s1 + $0x988] sm:$0xff] }
 0x16e   :  { %1558 = vmatpush2.msra.mxu1 %v2383_v43  ;;  %1482 = vmatprep.subr.mxu0 %v2384_v44  ;;  %v2435_v39 = vld [vmem:[%s6901_s1 + $0xda0] sm:$0xff]  ;;  %v2437_v41 = vld [vmem:[%s6901_s1 + $0xd88] sm:$0xff] }
 0x16f   :  { %1559 = vmatprep.subr.mxu1 %v2385_v45  ;;  %1483 = vmatpush2.msra.mxu0 %v2386_v46  ;;  %v2438_v42 = vld [vmem:[%s6901_s1 + $0x980] sm:$0xff]  ;;  %v2440_v44 = vld [vmem:[%s6901_s1 + $0x968] sm:$0xff] }
 0x170   :  { %1560 = vmatpush2.msra.mxu1 %v2387_v47  ;;  %1484 = vmatprep.subr.mxu0 %v2388_v48  ;;  %v2439_v43 = vld [vmem:[%s6901_s1 + $0xd80] sm:$0xff]  ;;  %v2441_v45 = vld [vmem:[%s6901_s1 + $0xd68] sm:$0xff] }
 0x171   :  { %1561 = vmatprep.subr.mxu1 %v2389_v49  ;;  %1485 = vmatpush2.msra.mxu0 %v2390_v50  ;;  %v2442_v46 = vld [vmem:[%s6901_s1 + $0x960] sm:$0xff]  ;;  %v2444_v48 = vld [vmem:[%s6901_s1 + $0x948] sm:$0xff] }
 0x172   :  { %1562 = vmatpush2.msra.mxu1 %v2391_v51  ;;  %1486 = vmatprep.subr.mxu0 %v2392_v52  ;;  %v2443_v47 = vld [vmem:[%s6901_s1 + $0xd60] sm:$0xff]  ;;  %v2445_v49 = vld [vmem:[%s6901_s1 + $0xd48] sm:$0xff] }
 0x173   :  { %1563 = vmatprep.subr.mxu1 %v2393_v53  ;;  %1487 = vmatpush2.msra.mxu0 %v2394_v54  ;;  %v2446_v50 = vld [vmem:[%s6901_s1 + $0x940] sm:$0xff]  ;;  %v2448_v52 = vld [vmem:[%s6901_s1 + $0x928] sm:$0xff] }
 0x174   :  { %1564 = vmatpush2.msra.mxu1 %v2395_v55  ;;  %1488 = vmatprep.subr.mxu0 %v2396_v56  ;;  %v2447_v51 = vld [vmem:[%s6901_s1 + $0xd40] sm:$0xff]  ;;  %v2449_v53 = vld [vmem:[%s6901_s1 + $0xd28] sm:$0xff] }
 0x175   :  { %1565 = vmatprep.subr.mxu1 %v2397_v57  ;;  %1489 = vmatpush2.msra.mxu0 %v2398_v58  ;;  %v2450_v54 = vld [vmem:[%s6901_s1 + $0x920] sm:$0xff]  ;;  %v2452_v56 = vld [vmem:[%s6901_s1 + $0x908] sm:$0xff] }
 0x176   :  { %1566 = vmatpush2.msra.mxu1 %v2399_v59  ;;  %1490 = vmatprep.subr.mxu0 %v2400_v60  ;;  %v2451_v55 = vld [vmem:[%s6901_s1 + $0xd20] sm:$0xff]  ;;  %v2453_v57 = vld [vmem:[%s6901_s1 + $0xd08] sm:$0xff] }
 0x177   :  { %1567 = vmatprep.subr.mxu1 %v2401_v61  ;;  %1491 = vmatpush2.msra.mxu0 %v2402_v62  ;;  %v2454_v58 = vld [vmem:[%s6901_s1 + $0x900] sm:$0xff]  ;;  %v2456_v60 = vld [vmem:[%s6901_s1 + $0x8e8] sm:$0xff] }
 0x178   :  { %1568 = vmatpush2.msra.mxu1 %v2403_v63  ;;  %1492 = vmatprep.subr.mxu0 %v2404_v0  ;;  %v2455_v59 = vld [vmem:[%s6901_s1 + $0xd00] sm:$0xff]  ;;  %v2457_v61 = vld [vmem:[%s6901_s1 + $0xce8] sm:$0xff] }
 0x179   :  { %1569 = vmatprep.subr.mxu1 %v2405_v1  ;;  %1493 = vmatpush2.msra.mxu0 %v2406_v2  ;;  %v2458_v62 = vld [vmem:[%s6901_s1 + $0x8e0] sm:$0xff]  ;;  %v2460_v0 = vld [vmem:[%s6901_s1 + $0x8c8] sm:$0xff] }
 0x17a   :  { %1570 = vmatpush2.msra.mxu1 %v2407_v3  ;;  %1494 = vmatprep.subr.mxu0 %v2408_v4  ;;  %v2459_v63 = vld [vmem:[%s6901_s1 + $0xce0] sm:$0xff]  ;;  %v2461_v1 = vld [vmem:[%s6901_s1 + $0xcc8] sm:$0xff] }
 0x17b   :  { %1571 = vmatprep.subr.mxu1 %v2409_v5  ;;  %1495 = vmatpush2.msra.mxu0 %v2410_v6  ;;  %v2462_v2 = vld [vmem:[%s6901_s1 + $0x8c0] sm:$0xff]  ;;  %v2464_v4 = vld [vmem:[%s6901_s1 + $0x8a8] sm:$0xff] }
 0x17c   :  { %1572 = vmatpush2.msra.mxu1 %v2411_v7  ;;  %1496 = vmatprep.subr.mxu0 %v2412_v8  ;;  %v2463_v3 = vld [vmem:[%s6901_s1 + $0xcc0] sm:$0xff]  ;;  %v2465_v5 = vld [vmem:[%s6901_s1 + $0xca8] sm:$0xff] }
 0x17d   :  { %1573 = vmatprep.subr.mxu1 %v2413_v9  ;;  %1497 = vmatpush2.msra.mxu0 %v2414_v11  ;;  %v2466_v6 = vld [vmem:[%s6901_s1 + $0x8a0] sm:$0xff]  ;;  %v2468_v8 = vld [vmem:[%s6901_s1 + $0x888] sm:$0xff] }
 0x17e   :  { %1574 = vmatpush2.msra.mxu1 %v2415_v12  ;;  %1498 = vmatprep.subr.mxu0 %v2416_v13  ;;  %v2467_v7 = vld [vmem:[%s6901_s1 + $0xca0] sm:$0xff]  ;;  %v2469_v9 = vld [vmem:[%s6901_s1 + $0xc88] sm:$0xff] }
 0x17f   :  { %1575 = vmatprep.subr.mxu1 %v2417_v15  ;;  %1499 = vmatpush2.msra.mxu0 %v2418_v17  ;;  %v2470_v11 = vld [vmem:[%s6901_s1 + $0x880] sm:$0xff]  ;;  %v2472_v13 = vld [vmem:[%s6901_s1 + $0x868] sm:$0xff] }
 0x180   :  { %1576 = vmatpush2.msra.mxu1 %v2419_v19  ;;  %1500 = vmatprep.subr.mxu0 %v2420_v22  ;;  %v2471_v12 = vld [vmem:[%s6901_s1 + $0xc80] sm:$0xff]  ;;  %v2473_v15 = vld [vmem:[%s6901_s1 + $0xc68] sm:$0xff] }
 0x181   :  { %1577 = vmatprep.subr.mxu1 %v2421_v23  ;;  %1501 = vmatpush2.msra.mxu0 %v2422_v26  ;;  %v2474_v17 = vld [vmem:[%s6901_s1 + $0x860] sm:$0xff]  ;;  %v2476_v22 = vld [vmem:[%s6901_s1 + $0x848] sm:$0xff] }
 0x182   :  { %1502 = vmatprep.mubr.f32.mxu0 %v5217_v16  ;;  %1578 = vmatpush2.msra.mxu1 %v2423_v27  ;;  %v2475_v19 = vld [vmem:[%s6901_s1 + $0xc60] sm:$0xff]  ;;  %v2477_v23 = vld [vmem:[%s6901_s1 + $0xc48] sm:$0xff] }
 0x183   :  { %1579 = vmatprep.mubr.f32.mxu1 %v5228_v21  ;;  %1503 = vmatmul.mubr.f32.vlgmr.msra.gmra.mxu0 %v5239_v24  ;;  %v2478_v26 = vld [vmem:[%s6901_s1 + $0x840] sm:$0xff] }
 0x184   :  { %1580 = vmatmul.mubr.f32.vlgmr.msra.gmra.mxu1 %v5244_v25  ;;  %1592 = vmatprep.subr.mxu0 %v2424_v28  ;;  %v2479_v27 = vld [vmem:[%s6901_s1 + $0xc40] sm:$0xff]  ;;  %v2480_v28 = vld [vmem:[%s6901_s1 + $0x828] sm:$0xff] }
 0x185   :  { %1669 = vmatprep.subr.mxu1 %v2425_v29  ;;  %1593 = vmatpush1.msra.mxu0 %v2426_v30  ;;  %v2481_v29 = vld [vmem:[%s6901_s1 + $0xc28] sm:$0xff]  ;;  %v2482_v30 = vld [vmem:[%s6901_s1 + $0x820] sm:$0xff] }
 0x186   :  { %1670 = vmatpush1.msra.mxu1 %v2427_v31  ;;  %1594 = vmatprep.subr.mxu0 %v2428_v32  ;;  %v2483_v31 = vld [vmem:[%s6901_s1 + $0xc20] sm:$0xff]  ;;  %v2484_v32 = vld [vmem:[%s6901_s1 + $0x808] sm:$0xff] }
 0x187   :  { %1671 = vmatprep.subr.mxu1 %v2429_v33  ;;  %1595 = vmatpush1.msra.mxu0 %v2430_v34  ;;  %v2485_v33 = vld [vmem:[%s6901_s1 + $0xc08] sm:$0xff]  ;;  %v2486_v34 = vld [vmem:[%s6901_s1 + $0x800] sm:$0xff] }
 0x188   :  { %1672 = vmatpush1.msra.mxu1 %v2431_v35  ;;  %1596 = vmatprep.subr.mxu0 %v2432_v36  ;;  %v2487_v35 = vld [vmem:[%s6901_s1 + $0xc00] sm:$0xff]  ;;  %v2488_v36 = vld [vmem:[%s6901_s1 + $0xbe8] sm:$0xff] }
 0x189   :  { %1673 = vmatprep.subr.mxu1 %v2433_v37  ;;  %1597 = vmatpush1.msra.mxu0 %v2434_v38  ;;  %v2489_v37 = vld [vmem:[%s6901_s1 + $0xfe8] sm:$0xff]  ;;  %v2490_v38 = vld [vmem:[%s6901_s1 + $0xbe0] sm:$0xff] }
 0x18a   :  { %1674 = vmatpush1.msra.mxu1 %v2435_v39  ;;  %1598 = vmatprep.subr.mxu0 %v2436_v40  ;;  %v2491_v39 = vld [vmem:[%s6901_s1 + $0xfe0] sm:$0xff]  ;;  %v2492_v40 = vld [vmem:[%s6901_s1 + $0xbc8] sm:$0xff] }
 0x18b   :  { %1675 = vmatprep.subr.mxu1 %v2437_v41  ;;  %1599 = vmatpush1.msra.mxu0 %v2438_v42  ;;  %v2493_v41 = vld [vmem:[%s6901_s1 + $0xfc8] sm:$0xff]  ;;  %v2494_v42 = vld [vmem:[%s6901_s1 + $0xbc0] sm:$0xff] }
 0x18c   :  { %1676 = vmatpush1.msra.mxu1 %v2439_v43  ;;  %1600 = vmatprep.subr.mxu0 %v2440_v44  ;;  %v2495_v43 = vld [vmem:[%s6901_s1 + $0xfc0] sm:$0xff]  ;;  %v2496_v44 = vld [vmem:[%s6901_s1 + $0xba8] sm:$0xff] }
 0x18d   :  { %1677 = vmatprep.subr.mxu1 %v2441_v45  ;;  %1601 = vmatpush1.msra.mxu0 %v2442_v46  ;;  %v2497_v45 = vld [vmem:[%s6901_s1 + $0xfa8] sm:$0xff]  ;;  %v2498_v46 = vld [vmem:[%s6901_s1 + $0xba0] sm:$0xff] }
 0x18e   :  { %1678 = vmatpush1.msra.mxu1 %v2443_v47  ;;  %1602 = vmatprep.subr.mxu0 %v2444_v48  ;;  %v2499_v47 = vld [vmem:[%s6901_s1 + $0xfa0] sm:$0xff]  ;;  %v2500_v48 = vld [vmem:[%s6901_s1 + $0xb88] sm:$0xff] }
 0x18f   :  { %1679 = vmatprep.subr.mxu1 %v2445_v49  ;;  %1603 = vmatpush1.msra.mxu0 %v2446_v50  ;;  %v2501_v49 = vld [vmem:[%s6901_s1 + $0xf88] sm:$0xff]  ;;  %v2502_v50 = vld [vmem:[%s6901_s1 + $0xb80] sm:$0xff] }
 0x190   :  { %1680 = vmatpush1.msra.mxu1 %v2447_v51  ;;  %1604 = vmatprep.subr.mxu0 %v2448_v52  ;;  %v2503_v51 = vld [vmem:[%s6901_s1 + $0xf80] sm:$0xff]  ;;  %v2504_v52 = vld [vmem:[%s6901_s1 + $0xb68] sm:$0xff] }
 0x191   :  { %1681 = vmatprep.subr.mxu1 %v2449_v53  ;;  %1605 = vmatpush1.msra.mxu0 %v2450_v54  ;;  %v2505_v53 = vld [vmem:[%s6901_s1 + $0xf68] sm:$0xff]  ;;  %v2506_v54 = vld [vmem:[%s6901_s1 + $0xb60] sm:$0xff] }
 0x192   :  { %1682 = vmatpush1.msra.mxu1 %v2451_v55  ;;  %1606 = vmatprep.subr.mxu0 %v2452_v56  ;;  %v2507_v55 = vld [vmem:[%s6901_s1 + $0xf60] sm:$0xff]  ;;  %v2508_v56 = vld [vmem:[%s6901_s1 + $0xb48] sm:$0xff] }
 0x193   :  { %1683 = vmatprep.subr.mxu1 %v2453_v57  ;;  %1607 = vmatpush1.msra.mxu0 %v2454_v58  ;;  %v2509_v57 = vld [vmem:[%s6901_s1 + $0xf48] sm:$0xff]  ;;  %v2510_v58 = vld [vmem:[%s6901_s1 + $0xb40] sm:$0xff] }
 0x194   :  { %1684 = vmatpush1.msra.mxu1 %v2455_v59  ;;  %1608 = vmatprep.subr.mxu0 %v2456_v60  ;;  %v2511_v59 = vld [vmem:[%s6901_s1 + $0xf40] sm:$0xff]  ;;  %v2512_v60 = vld [vmem:[%s6901_s1 + $0xb28] sm:$0xff] }
 0x195   :  { %1685 = vmatprep.subr.mxu1 %v2457_v61  ;;  %1609 = vmatpush1.msra.mxu0 %v2458_v62  ;;  %v2513_v61 = vld [vmem:[%s6901_s1 + $0xf28] sm:$0xff]  ;;  %v2514_v62 = vld [vmem:[%s6901_s1 + $0xb20] sm:$0xff] }
 0x196   :  { %1686 = vmatpush1.msra.mxu1 %v2459_v63  ;;  %1610 = vmatprep.subr.mxu0 %v2460_v0  ;;  %v2515_v63 = vld [vmem:[%s6901_s1 + $0xf20] sm:$0xff]  ;;  %v2516_v0 = vld [vmem:[%s6901_s1 + $0xb08] sm:$0xff] }
 0x197   :  { %1687 = vmatprep.subr.mxu1 %v2461_v1  ;;  %1611 = vmatpush1.msra.mxu0 %v2462_v2  ;;  %v2517_v1 = vld [vmem:[%s6901_s1 + $0xf08] sm:$0xff]  ;;  %v2518_v2 = vld [vmem:[%s6901_s1 + $0xb00] sm:$0xff] }
 0x198   :  { %1688 = vmatpush1.msra.mxu1 %v2463_v3  ;;  %1612 = vmatprep.subr.mxu0 %v2464_v4  ;;  %v2519_v3 = vld [vmem:[%s6901_s1 + $0xf00] sm:$0xff]  ;;  %v2520_v4 = vld [vmem:[%s6901_s1 + $0xae8] sm:$0xff] }
 0x199   :  { %1689 = vmatprep.subr.mxu1 %v2465_v5  ;;  %1613 = vmatpush1.msra.mxu0 %v2466_v6  ;;  %v2521_v5 = vld [vmem:[%s6901_s1 + $0xee8] sm:$0xff]  ;;  %v2522_v6 = vld [vmem:[%s6901_s1 + $0xae0] sm:$0xff] }
 0x19a   :  { %1690 = vmatpush1.msra.mxu1 %v2467_v7  ;;  %1614 = vmatprep.subr.mxu0 %v2468_v8  ;;  %v2523_v7 = vld [vmem:[%s6901_s1 + $0xee0] sm:$0xff]  ;;  %v2524_v8 = vld [vmem:[%s6901_s1 + $0xac8] sm:$0xff] }
 0x19b   :  { %1691 = vmatprep.subr.mxu1 %v2469_v9  ;;  %1615 = vmatpush1.msra.mxu0 %v2470_v11  ;;  %v2525_v9 = vld [vmem:[%s6901_s1 + $0xec8] sm:$0xff]  ;;  %v2526_v11 = vld [vmem:[%s6901_s1 + $0xac0] sm:$0xff] }
 0x19c   :  { %1692 = vmatpush1.msra.mxu1 %v2471_v12  ;;  %1616 = vmatprep.subr.mxu0 %v2472_v13  ;;  %v2527_v12 = vld [vmem:[%s6901_s1 + $0xec0] sm:$0xff]  ;;  %v2528_v13 = vld [vmem:[%s6901_s1 + $0xaa8] sm:$0xff] }
 0x19d   :  { %1693 = vmatprep.subr.mxu1 %v2473_v15  ;;  %1617 = vmatpush1.msra.mxu0 %v2474_v17  ;;  %v2529_v15 = vld [vmem:[%s6901_s1 + $0xea8] sm:$0xff]  ;;  %v2530_v17 = vld [vmem:[%s6901_s1 + $0xaa0] sm:$0xff] }
 0x19e   :  { %1694 = vmatpush1.msra.mxu1 %v2475_v19  ;;  %1618 = vmatprep.subr.mxu0 %v2476_v22  ;;  %v2531_v19 = vld [vmem:[%s6901_s1 + $0xea0] sm:$0xff]  ;;  %v2532_v22 = vld [vmem:[%s6901_s1 + $0xa88] sm:$0xff] }
 0x19f   :  { %1695 = vmatprep.subr.mxu1 %v2477_v23  ;;  %1619 = vmatpush1.msra.mxu0 %v2478_v26  ;;  %v2533_v23 = vld [vmem:[%s6901_s1 + $0xe88] sm:$0xff]  ;;  %v2534_v26 = vld [vmem:[%s6901_s1 + $0xa80] sm:$0xff] }
 0x1a0   :  { %1696 = vmatpush1.msra.mxu1 %v2479_v27  ;;  %1620 = vmatprep.subr.mxu0 %v2480_v28  ;;  %v2535_v27 = vld [vmem:[%s6901_s1 + $0xe80] sm:$0xff]  ;;  %v5595_v28 = vld [vmem:[%s6902_s0 + $0xf8] sm:$0xff] }
 0x1a1   :  { %1697 = vmatprep.subr.mxu1 %v2481_v29  ;;  %1621 = vmatpush1.msra.mxu0 %v2482_v30  ;;  %v5600_v29 = vld [vmem:[%s6902_s0 + $0x108] sm:$0xff] }
 0x1a2   :  { %1698 = vmatpush1.msra.mxu1 %v2483_v31  ;;  %1622 = vmatprep.subr.mxu0 %v2484_v32  ;;  %v2536_v30 = vld [vmem:[%s6901_s1 + $0xa68] sm:$0xff]  ;;  %v2538_v32 = vld [vmem:[%s6901_s1 + $0xa60] sm:$0xff] }
 0x1a3   :  { %1699 = vmatprep.subr.mxu1 %v2485_v33  ;;  %1623 = vmatpush1.msra.mxu0 %v2486_v34  ;;  %v2537_v31 = vld [vmem:[%s6901_s1 + $0xe68] sm:$0xff]  ;;  %v2539_v33 = vld [vmem:[%s6901_s1 + $0xe60] sm:$0xff]  ;;  %v5617_v34 = vld [vmem:[%s6902_s0 + $0xf0] sm:$0xff] }
 0x1a4   :  { %1700 = vmatpush1.msra.mxu1 %v2487_v35  ;;  %1624 = vmatprep.subr.mxu0 %v2488_v36  ;;  %v5622_v35 = vld [vmem:[%s6902_s0 + $0x100] sm:$0xff]  ;;  %v2540_v36 = vld [vmem:[%s6901_s1 + $0xa48] sm:$0xff] }
 0x1a5   :  { %1701 = vmatprep.subr.mxu1 %v2489_v37  ;;  %1625 = vmatpush2.msra.mxu0 %v2490_v38  ;;  %v2541_v37 = vld [vmem:[%s6901_s1 + $0xe48] sm:$0xff]  ;;  %v2542_v38 = vld [vmem:[%s6901_s1 + $0xa40] sm:$0xff] }
 0x1a6   :  { %1702 = vmatpush2.msra.mxu1 %v2491_v39  ;;  %1626 = vmatprep.subr.mxu0 %v2492_v40  ;;  %v2543_v39 = vld [vmem:[%s6901_s1 + $0xe40] sm:$0xff]  ;;  %v2544_v40 = vld [vmem:[%s6901_s1 + $0xa28] sm:$0xff] }
 0x1a7   :  { %1703 = vmatprep.subr.mxu1 %v2493_v41  ;;  %1627 = vmatpush2.msra.mxu0 %v2494_v42  ;;  %v2545_v41 = vld [vmem:[%s6901_s1 + $0xe28] sm:$0xff] }
 0x1a8   :  { %1704 = vmatpush2.msra.mxu1 %v2495_v43  ;;  %1628 = vmatprep.subr.mxu0 %v2496_v44  ;;  %v5649_v42 = vld [vmem:[%s6902_s0 + $0xc8] sm:$0xff]  ;;  %v2546_v43 = vld [vmem:[%s6901_s1 + $0xa20] sm:$0xff] }
 0x1a9   :  { %1705 = vmatprep.subr.mxu1 %v2497_v45  ;;  %1629 = vmatpush2.msra.mxu0 %v2498_v46  ;;  %v2547_v44 = vld [vmem:[%s6901_s1 + $0xe20] sm:$0xff]  ;;  %v2548_v46 = vld [vmem:[%s6901_s1 + $0xa08] sm:$0xff] }
 0x1aa   :  { %1706 = vmatpush2.msra.mxu1 %v2499_v47  ;;  %1630 = vmatprep.subr.mxu0 %v2500_v48  ;;  %v5660_v45 = vld [vmem:[%s6902_s0 + $0xc0] sm:$0xff]  ;;  %v2549_v47 = vld [vmem:[%s6901_s1 + $0xe08] sm:$0xff]  ;;  %v5671_v48 = vld [vmem:[%s6902_s0 + $0xd8] sm:$0xff] }
 0x1ab   :  { %1707 = vmatprep.subr.mxu1 %v2501_v49  ;;  %1631 = vmatpush2.msra.mxu0 %v2502_v50  ;;  %v2550_v49 = vld [vmem:[%s6901_s1 + $0xa00] sm:$0xff]  ;;  %v5680_v50 = vld [vmem:[%s6902_s0 + $0xd0] sm:$0xff] }
 0x1ac   :  { %1708 = vmatpush2.msra.mxu1 %v2503_v51  ;;  %1632 = vmatprep.subr.mxu0 %v2504_v52  ;;  %v2551_v51 = vld [vmem:[%s6901_s1 + $0xe00] sm:$0xff]  ;;  %v2552_v52 = vld [vmem:[%s6901_s1 + $0x11e8] sm:$0xff] }
 0x1ad   :  { %1709 = vmatprep.subr.mxu1 %v2505_v53  ;;  %1633 = vmatpush2.msra.mxu0 %v2506_v54  ;;  %v2553_v53 = vld [vmem:[%s6901_s1 + $0x1f8] sm:$0xff] }
 0x1ae   :  { %1710 = vmatpush2.msra.mxu1 %v2507_v55  ;;  %1634 = vmatprep.subr.mxu0 %v2508_v56  ;;  %v5697_v54 = vld [vmem:[%s6902_s0 + $0x118] sm:$0xff]  ;;  %v2554_v55 = vld [vmem:[%s6901_s1 + $0x11e0] sm:$0xff]  ;;  %v2555_v56 = vld [vmem:[%s6901_s1 + $0x1f0] sm:$0xff] }
 0x1af   :  { %1711 = vmatprep.subr.mxu1 %v2509_v57  ;;  %1635 = vmatpush2.msra.mxu0 %v2510_v58  ;;  %v5708_v57 = vld [vmem:[%s6902_s0 + $0x110] sm:$0xff]  ;;  %v2556_v58 = vld [vmem:[%s6901_s1 + $0x11c8] sm:$0xff] }
 0x1b0   :  { %1712 = vmatpush2.msra.mxu1 %v2511_v59  ;;  %1636 = vmatprep.subr.mxu0 %v2512_v60  ;;  %v2557_v59 = vld [vmem:[%s6901_s1 + $0x1d8] sm:$0xff]  ;;  %v2558_v60 = vld [vmem:[%s6901_s1 + $0x11c0] sm:$0xff] }
 0x1b1   :  { %1713 = vmatprep.subr.mxu1 %v2513_v61  ;;  %1637 = vmatpush2.msra.mxu0 %v2514_v62  ;;  %v5723_v61 = vld [vmem:[%s6902_s0 + $0x128] sm:$0xff]  ;;  %v2559_v62 = vld [vmem:[%s6901_s1 + $0x1d0] sm:$0xff] }
 0x1b2   :  { %1714 = vmatpush2.msra.mxu1 %v2515_v63  ;;  %1638 = vmatprep.subr.mxu0 %v2516_v0  ;;  %v2560_v63 = vld [vmem:[%s6901_s1 + $0x11a8] sm:$0xff]  ;;  %v2561_v0 = vld [vmem:[%s6901_s1 + $0x1b8] sm:$0xff] }
 0x1b3   :  { %1715 = vmatprep.subr.mxu1 %v2517_v1  ;;  %1639 = vmatpush2.msra.mxu0 %v2518_v2  ;;  %v5738_v1 = vld [vmem:[%s6902_s0 + $0x120] sm:$0xff] }
 0x1b4   :  { %1716 = vmatpush2.msra.mxu1 %v2519_v3  ;;  %1640 = vmatprep.subr.mxu0 %v2520_v4  ;;  %v2562_v2 = vld [vmem:[%s6901_s1 + $0x11a0] sm:$0xff]  ;;  %v2563_v3 = vld [vmem:[%s6901_s1 + $0x1b0] sm:$0xff]  ;;  %v2564_v4 = vld [vmem:[%s6901_s1 + $0x1188] sm:$0xff] }
 0x1b5   :  { %1717 = vmatprep.subr.mxu1 %v2521_v5  ;;  %1641 = vmatpush2.msra.mxu0 %v2522_v6  ;;  %v2565_v5 = vld [vmem:[%s6901_s1 + $0x198] sm:$0xff]  ;;  %v2566_v6 = vld [vmem:[%s6901_s1 + $0x1180] sm:$0xff] }
 0x1b6   :  { %1718 = vmatpush2.msra.mxu1 %v2523_v7  ;;  %1642 = vmatprep.subr.mxu0 %v2524_v8  ;;  %v2567_v7 = vld [vmem:[%s6901_s1 + $0x190] sm:$0xff]  ;;  %v2568_v8 = vld [vmem:[%s6901_s1 + $0x1168] sm:$0xff] }
 0x1b7   :  { %1719 = vmatprep.subr.mxu1 %v2525_v9  ;;  %1643 = vmatpush2.msra.mxu0 %v2526_v11  ;;  %v2569_v9 = vld [vmem:[%s6901_s1 + $0x178] sm:$0xff]  ;;  %v2570_v11 = vld [vmem:[%s6901_s1 + $0x1160] sm:$0xff] }
 0x1b8   :  { %1720 = vmatpush2.msra.mxu1 %v2527_v12  ;;  %1644 = vmatprep.subr.mxu0 %v2528_v13  ;;  %v2571_v12 = vld [vmem:[%s6901_s1 + $0x170] sm:$0xff]  ;;  %v2572_v13 = vld [vmem:[%s6901_s1 + $0x1148] sm:$0xff] }
 0x1b9   :  { %1721 = vmatprep.subr.mxu1 %v2529_v15  ;;  %1645 = vmatpush2.msra.mxu0 %v2530_v17  ;;  %v2573_v15 = vld [vmem:[%s6901_s1 + $0x158] sm:$0xff]  ;;  %v2574_v17 = vld [vmem:[%s6901_s1 + $0x1140] sm:$0xff] }
 0x1ba   :  { %1722 = vmatpush2.msra.mxu1 %v2531_v19  ;;  %1646 = vmatprep.subr.mxu0 %v2532_v22  ;;  %v2575_v19 = vld [vmem:[%s6901_s1 + $0x150] sm:$0xff]  ;;  %v2576_v22 = vld [vmem:[%s6901_s1 + $0x1128] sm:$0xff] }
 0x1bb   :  { %1723 = vmatprep.subr.mxu1 %v2533_v23  ;;  %1647 = vmatpush2.msra.mxu0 %v2534_v26  ;;  %v2577_v23 = vld [vmem:[%s6901_s1 + $0x138] sm:$0xff]  ;;  %v2578_v26 = vld [vmem:[%s6901_s1 + $0x1120] sm:$0xff] }
 0x1bc   :  { %1724 = vmatpush2.msra.mxu1 %v2535_v27  ;;  %1648 = vmatprep.subr.mxu0 %v2536_v30  ;;  %v2579_v27 = vld [vmem:[%s6901_s1 + $0x130] sm:$0xff]  ;;  %v2580_v30 = vld [vmem:[%s6901_s1 + $0x1108] sm:$0xff] }
 0x1bd   :  { %1725 = vmatprep.subr.mxu1 %v2537_v31  ;;  %1649 = vmatpush2.msra.mxu0 %v2538_v32  ;;  %v2581_v31 = vld [vmem:[%s6901_s1 + $0x118] sm:$0xff]  ;;  %v2582_v32 = vld [vmem:[%s6901_s1 + $0x1100] sm:$0xff] }
 0x1be   :  { %1726 = vmatpush2.msra.mxu1 %v2539_v33  ;;  %1508 = vmatprep.mubr.f32.mxu0 %v5595_v28  ;;  %v2583_v33 = vld [vmem:[%s6901_s1 + $0x110] sm:$0xff] }
 0x1bf   :  { %1585 = vmatprep.mubr.f32.mxu1 %v5600_v29  ;;  %1650 = vmatprep.subr.mxu0 %v2540_v36  ;;  %v2584_v36 = vld [vmem:[%s6901_s1 + $0x10e8] sm:$0xff] }
 0x1c0   :  { %1727 = vmatprep.subr.mxu1 %v2541_v37  ;;  %1509 = vmatmul.mubr.f32.gmra.mxu0 %v5617_v34  ;;  %v2585_v37 = vld [vmem:[%s6901_s1 + $0xf8] sm:$0xff] }
 0x1c1   :  { %1586 = vmatmul.mubr.f32.gmra.mxu1 %v5622_v35  ;;  %1651 = vmatpush2.msra.mxu0 %v2542_v38  ;;  %v2586_v38 = vld [vmem:[%s6901_s1 + $0x10e0] sm:$0xff] }
 0x1c2   :  { %1728 = vmatpush2.msra.mxu1 %v2543_v39  ;;  %1652 = vmatprep.subr.mxu0 %v2544_v40  ;;  %v2587_v39 = vld [vmem:[%s6901_s1 + $0xf0] sm:$0xff]  ;;  %v2588_v40 = vld [vmem:[%s6901_s1 + $0x10c8] sm:$0xff] }
 0x1c3   :  { %1729 = vmatprep.subr.mxu1 %v2545_v41  ;;  %1653 = vmatpush2.msra.mxu0 %v2546_v43  ;;  %v2589_v41 = vld [vmem:[%s6901_s1 + $0xd8] sm:$0xff]  ;;  %v2590_v43 = vld [vmem:[%s6901_s1 + $0x10c0] sm:$0xff] }
 0x1c4   :  { %1730 = vmatpush2.msra.mxu1 %v2547_v44  ;;  %1654 = vmatprep.subr.mxu0 %v2548_v46  ;;  %v2591_v44 = vld [vmem:[%s6901_s1 + $0xd0] sm:$0xff]  ;;  %v2592_v46 = vld [vmem:[%s6901_s1 + $0x10a8] sm:$0xff] }
 0x1c5   :  { %1731 = vmatprep.subr.mxu1 %v2549_v47  ;;  %1655 = vmatpush2.msra.mxu0 %v2550_v49  ;;  %v2593_v47 = vld [vmem:[%s6901_s1 + $0xb8] sm:$0xff]  ;;  %v2594_v49 = vld [vmem:[%s6901_s1 + $0x10a0] sm:$0xff] }
 0x1c6   :  { %1656 = vmatprep.mubr.f32.mxu0 %v5649_v42  ;;  %1732 = vmatpush2.msra.mxu1 %v2551_v51  ;;  %v2595_v51 = vld [vmem:[%s6901_s1 + $0xb0] sm:$0xff] }
 0x1c7   :  { %1657 = vmatmul.mubr.f32.vlgmr.msra.gmra.mxu0 %v5660_v45  ;;  %1733 = vmatprep.mubr.f32.mxu1 %v5671_v48 }
 0x1c8   :  { %1746 = vmatprep.subr.mxu0 %v2552_v52  ;;  %1823 = vmatprep.subr.mxu1 %v2553_v53  ;;  %v2596_v52 = vld [vmem:[%s6901_s1 + $0x1088] sm:$0xff]  ;;  %v2597_v53 = vld [vmem:[%s6901_s1 + $0x98] sm:$0xff] }
 0x1c9   :  { %1734 = vmatmul.mubr.f32.vlgmr.msra.gmra.mxu1 %v5680_v50  ;;  %1747 = vmatpush1.msra.mxu0 %v2554_v55  ;;  %v2598_v55 = vld [vmem:[%s6901_s1 + $0x1080] sm:$0xff] }
 0x1ca   :  { %1824 = vmatpush1.msra.mxu1 %v2555_v56  ;;  %1748 = vmatprep.subr.mxu0 %v2556_v58  ;;  %v2599_v56 = vld [vmem:[%s6901_s1 + $0x90] sm:$0xff]  ;;  %v2600_v58 = vld [vmem:[%s6901_s1 + $0x1068] sm:$0xff] }
 0x1cb   :  { %1825 = vmatprep.subr.mxu1 %v2557_v59  ;;  %1662 = vmatprep.mubr.f32.mxu0 %v5697_v54  ;;  %v2601_v59 = vld [vmem:[%s6901_s1 + $0x78] sm:$0xff] }
 0x1cc   :  { %1749 = vmatpush1.msra.mxu0 %v2558_v60  ;;  %1826 = vmatpush1.msra.mxu1 %v2559_v62  ;;  %v2602_v60 = vld [vmem:[%s6901_s1 + $0x1060] sm:$0xff]  ;;  %v2603_v62 = vld [vmem:[%s6901_s1 + $0x70] sm:$0xff] }
 0x1cd   :  { %1663 = vmatmul.mubr.f32.gmra.mxu0 %v5708_v57  ;;  %1750 = vmatprep.subr.mxu0 %v2560_v63  ;;  %v2604_v63 = vld [vmem:[%s6901_s1 + $0x1048] sm:$0xff] }
 0x1ce   :  { %1827 = vmatprep.subr.mxu1 %v2561_v0  ;;  %1739 = vmatprep.mubr.f32.mxu1 %v5723_v61  ;;  %v2605_v0 = vld [vmem:[%s6901_s1 + $0x58] sm:$0xff] }
 0x1cf   :  { %1751 = vmatpush1.msra.mxu0 %v2562_v2  ;;  %1828 = vmatpush1.msra.mxu1 %v2563_v3  ;;  %v2606_v2 = vld [vmem:[%s6901_s1 + $0x1040] sm:$0xff]  ;;  %v2607_v3 = vld [vmem:[%s6901_s1 + $0x50] sm:$0xff] }
 0x1d0   :  { %1752 = vmatprep.subr.mxu0 %v2564_v4  ;;  %1740 = vmatmul.mubr.f32.gmra.mxu1 %v5738_v1  ;;  %v2608_v4 = vld [vmem:[%s6901_s1 + $0x1028] sm:$0xff] }
 0x1d1   :  { %1829 = vmatprep.subr.mxu1 %v2565_v5  ;;  %1753 = vmatpush1.msra.mxu0 %v2566_v6  ;;  %v2609_v5 = vld [vmem:[%s6901_s1 + $0x38] sm:$0xff]  ;;  %v2610_v6 = vld [vmem:[%s6901_s1 + $0x1020] sm:$0xff] }
 0x1d2   :  { %1830 = vmatpush1.msra.mxu1 %v2567_v7  ;;  %1754 = vmatprep.subr.mxu0 %v2568_v8  ;;  %v2611_v7 = vld [vmem:[%s6901_s1 + $0x30] sm:$0xff]  ;;  %v2612_v8 = vld [vmem:[%s6901_s1 + $0x1008] sm:$0xff] }
 0x1d3   :  { %1831 = vmatprep.subr.mxu1 %v2569_v9  ;;  %1755 = vmatpush1.msra.mxu0 %v2570_v11  ;;  %v2613_v9 = vld [vmem:[%s6901_s1 + $0x18] sm:$0xff]  ;;  %v2614_v11 = vld [vmem:[%s6901_s1 + $0x1000] sm:$0xff] }
 0x1d4   :  { %1832 = vmatpush1.msra.mxu1 %v2571_v12  ;;  %1756 = vmatprep.subr.mxu0 %v2572_v13  ;;  %v2615_v12 = vld [vmem:[%s6901_s1 + $0x10] sm:$0xff]  ;;  %v2616_v13 = vld [vmem:[%s6901_s1 + $0x12a8] sm:$0xff] }
 0x1d5   :  { %1833 = vmatprep.subr.mxu1 %v2573_v15  ;;  %1757 = vmatpush1.msra.mxu0 %v2574_v17  ;;  %v2617_v15 = vld [vmem:[%s6901_s1 + $0x3f8] sm:$0xff]  ;;  %v2618_v17 = vld [vmem:[%s6901_s1 + $0x12a0] sm:$0xff] }
 0x1d6   :  { %1834 = vmatpush1.msra.mxu1 %v2575_v19  ;;  %1758 = vmatprep.subr.mxu0 %v2576_v22  ;;  %v2619_v19 = vld [vmem:[%s6901_s1 + $0x3f0] sm:$0xff]  ;;  %v2620_v22 = vld [vmem:[%s6901_s1 + $0x1288] sm:$0xff] }
 0x1d7   :  { %1835 = vmatprep.subr.mxu1 %v2577_v23  ;;  %1759 = vmatpush1.msra.mxu0 %v2578_v26  ;;  %v2621_v23 = vld [vmem:[%s6901_s1 + $0x3d8] sm:$0xff]  ;;  %v2622_v26 = vld [vmem:[%s6901_s1 + $0x1280] sm:$0xff] }
 0x1d8   :  { %1836 = vmatpush1.msra.mxu1 %v2579_v27  ;;  %1760 = vmatprep.subr.mxu0 %v2580_v30  ;;  %v2623_v27 = vld [vmem:[%s6901_s1 + $0x3d0] sm:$0xff]  ;;  %v2624_v30 = vld [vmem:[%s6901_s1 + $0x1268] sm:$0xff] }
 0x1d9   :  { %1837 = vmatprep.subr.mxu1 %v2581_v31  ;;  %1761 = vmatpush1.msra.mxu0 %v2582_v32  ;;  %v2625_v31 = vld [vmem:[%s6901_s1 + $0x3b8] sm:$0xff]  ;;  %v2626_v32 = vld [vmem:[%s6901_s1 + $0x1260] sm:$0xff] }
 0x1da   :  { %1838 = vmatpush1.msra.mxu1 %v2583_v33  ;;  %1762 = vmatprep.subr.mxu0 %v2584_v36  ;;  %v2627_v33 = vld [vmem:[%s6901_s1 + $0x3b0] sm:$0xff]  ;;  %v2628_v36 = vld [vmem:[%s6901_s1 + $0x1248] sm:$0xff] }
 0x1db   :  { %1839 = vmatprep.subr.mxu1 %v2585_v37  ;;  %1763 = vmatpush1.msra.mxu0 %v2586_v38  ;;  %v2629_v37 = vld [vmem:[%s6901_s1 + $0x398] sm:$0xff]  ;;  %v2630_v38 = vld [vmem:[%s6901_s1 + $0x1240] sm:$0xff] }
 0x1dc   :  { %1840 = vmatpush1.msra.mxu1 %v2587_v39  ;;  %1764 = vmatprep.subr.mxu0 %v2588_v40  ;;  %v2631_v39 = vld [vmem:[%s6901_s1 + $0x390] sm:$0xff]  ;;  %v2632_v40 = vld [vmem:[%s6901_s1 + $0x1228] sm:$0xff] }
 0x1dd   :  { %1841 = vmatprep.subr.mxu1 %v2589_v41  ;;  %1765 = vmatpush1.msra.mxu0 %v2590_v43  ;;  %v2633_v41 = vld [vmem:[%s6901_s1 + $0x378] sm:$0xff]  ;;  %v5961_v43 = vld [vmem:[%s6902_s0 + $0xe8] sm:$0xff] }
 0x1de   :  { %1842 = vmatpush1.msra.mxu1 %v2591_v44  ;;  %1766 = vmatprep.subr.mxu0 %v2592_v46  ;;  %v2634_v44 = vld [vmem:[%s6901_s1 + $0x1220] sm:$0xff]  ;;  %v2635_v46 = vld [vmem:[%s6901_s1 + $0x370] sm:$0xff] }
 0x1df   :  { %1843 = vmatprep.subr.mxu1 %v2593_v47  ;;  %1767 = vmatpush1.msra.mxu0 %v2594_v49  ;;  %v5972_v47 = vld [vmem:[%s6902_s0 + $0xe0] sm:$0xff]  ;;  %v2636_v49 = vld [vmem:[%s6901_s1 + $0x1208] sm:$0xff] }
 0x1e0   :  { %1844 = vmatpush1.msra.mxu1 %v2595_v51  ;;  %1768 = vmatprep.subr.mxu0 %v2596_v52  ;;  %v2637_v51 = vld [vmem:[%s6901_s1 + $0x358] sm:$0xff]  ;;  %v2638_v52 = vld [vmem:[%s6901_s1 + $0x1200] sm:$0xff] }
 0x1e1   :  { %1845 = vmatprep.subr.mxu1 %v2597_v53  ;;  %1769 = vmatpush1.msra.mxu0 %v2598_v55  ;;  %v2639_v53 = vld [vmem:[%s6901_s1 + $0x350] sm:$0xff]  ;;  %v2640_v55 = vld [vmem:[%s6901_s1 + $0x338] sm:$0xff] }
 0x1e2   :  { %1846 = vmatpush1.msra.mxu1 %v2599_v56  ;;  %1770 = vmatprep.subr.mxu0 %v2600_v58  ;;  %v2641_v56 = vld [vmem:[%s6901_s1 + $0x5f8] sm:$0xff] }
 0x1e3   :  { %1847 = vmatprep.subr.mxu1 %v2601_v59  ;;  %1771 = vmatpush1.msra.mxu0 %v2602_v60  ;;  %v5998_v58 = vld [vmem:[%s6902_s0 + $0x138] sm:$0xff]  ;;  %v2642_v59 = vld [vmem:[%s6901_s1 + $0x330] sm:$0xff] }
 0x1e4   :  { %1848 = vmatpush1.msra.mxu1 %v2603_v62  ;;  %1772 = vmatprep.subr.mxu0 %v2604_v63  ;;  %v2643_v60 = vld [vmem:[%s6901_s1 + $0x5f0] sm:$0xff]  ;;  %v2644_v62 = vld [vmem:[%s6901_s1 + $0x318] sm:$0xff] }
 0x1e5   :  { %1849 = vmatprep.subr.mxu1 %v2605_v0  ;;  %1773 = vmatpush1.msra.mxu0 %v2606_v2  ;;  %v2645_v63 = vld [vmem:[%s6901_s1 + $0x5d8] sm:$0xff]  ;;  %v6015_v0 = vld [vmem:[%s6902_s0 + $0x130] sm:$0xff] }
 0x1e6   :  { %1850 = vmatpush1.msra.mxu1 %v2607_v3  ;;  %1774 = vmatprep.subr.mxu0 %v2608_v4  ;;  %v2646_v2 = vld [vmem:[%s6901_s1 + $0x310] sm:$0xff]  ;;  %v2648_v4 = vld [vmem:[%s6901_s1 + $0x2f8] sm:$0xff] }
 0x1e7   :  { %1851 = vmatprep.subr.mxu1 %v2609_v5  ;;  %1775 = vmatpush1.msra.mxu0 %v2610_v6  ;;  %v2647_v3 = vld [vmem:[%s6901_s1 + $0x5d0] sm:$0xff]  ;;  %v2649_v5 = vld [vmem:[%s6901_s1 + $0x5b8] sm:$0xff] }
 0x1e8   :  { %1852 = vmatpush1.msra.mxu1 %v2611_v7  ;;  %1776 = vmatprep.subr.mxu0 %v2612_v8  ;;  %v2650_v6 = vld [vmem:[%s6901_s1 + $0x2f0] sm:$0xff]  ;;  %v2652_v8 = vld [vmem:[%s6901_s1 + $0x2d8] sm:$0xff] }
 0x1e9   :  { %1853 = vmatprep.subr.mxu1 %v2613_v9  ;;  %1777 = vmatpush1.msra.mxu0 %v2614_v11  ;;  %v2651_v7 = vld [vmem:[%s6901_s1 + $0x5b0] sm:$0xff]  ;;  %v2653_v9 = vld [vmem:[%s6901_s1 + $0x598] sm:$0xff] }
 0x1ea   :  { %1854 = vmatpush1.msra.mxu1 %v2615_v12  ;;  %1798 = vmatprep.subr.mxu0 %v2616_v13  ;;  %v2654_v11 = vld [vmem:[%s6901_s1 + $0x2d0] sm:$0xff]  ;;  %v2656_v13 = vld [vmem:[%s6901_s1 + $0x2b8] sm:$0xff] }
 0x1eb   :  { %1855 = vmatprep.subr.mxu1 %v2617_v15  ;;  %1799 = vmatpush2.msra.mxu0 %v2618_v17  ;;  %v2655_v12 = vld [vmem:[%s6901_s1 + $0x590] sm:$0xff]  ;;  %v2657_v15 = vld [vmem:[%s6901_s1 + $0x578] sm:$0xff] }
 0x1ec   :  { %1856 = vmatpush2.msra.mxu1 %v2619_v19  ;;  %1800 = vmatprep.subr.mxu0 %v2620_v22  ;;  %v2658_v17 = vld [vmem:[%s6901_s1 + $0x2b0] sm:$0xff]  ;;  %v2660_v22 = vld [vmem:[%s6901_s1 + $0x298] sm:$0xff] }
 0x1ed   :  { %1857 = vmatprep.subr.mxu1 %v2621_v23  ;;  %1801 = vmatpush2.msra.mxu0 %v2622_v26  ;;  %v2659_v19 = vld [vmem:[%s6901_s1 + $0x570] sm:$0xff]  ;;  %v2661_v23 = vld [vmem:[%s6901_s1 + $0x558] sm:$0xff] }
 0x1ee   :  { %1858 = vmatpush2.msra.mxu1 %v2623_v27  ;;  %1802 = vmatprep.subr.mxu0 %v2624_v30  ;;  %v2662_v26 = vld [vmem:[%s6901_s1 + $0x290] sm:$0xff]  ;;  %v2664_v30 = vld [vmem:[%s6901_s1 + $0x278] sm:$0xff] }
 0x1ef   :  { %1859 = vmatprep.subr.mxu1 %v2625_v31  ;;  %1803 = vmatpush2.msra.mxu0 %v2626_v32  ;;  %v2663_v27 = vld [vmem:[%s6901_s1 + $0x550] sm:$0xff]  ;;  %v2665_v31 = vld [vmem:[%s6901_s1 + $0x538] sm:$0xff] }
 0x1f0   :  { %1860 = vmatpush2.msra.mxu1 %v2627_v33  ;;  %1804 = vmatprep.subr.mxu0 %v2628_v36  ;;  %v2666_v32 = vld [vmem:[%s6901_s1 + $0x270] sm:$0xff]  ;;  %v2668_v36 = vld [vmem:[%s6901_s1 + $0x258] sm:$0xff] }
 0x1f1   :  { %1861 = vmatprep.subr.mxu1 %v2629_v37  ;;  %1805 = vmatpush2.msra.mxu0 %v2630_v38  ;;  %v2667_v33 = vld [vmem:[%s6901_s1 + $0x530] sm:$0xff]  ;;  %v2669_v37 = vld [vmem:[%s6901_s1 + $0x518] sm:$0xff] }
 0x1f2   :  { %1862 = vmatpush2.msra.mxu1 %v2631_v39  ;;  %1806 = vmatprep.subr.mxu0 %v2632_v40  ;;  %v2670_v38 = vld [vmem:[%s6901_s1 + $0x250] sm:$0xff]  ;;  %v2672_v40 = vld [vmem:[%s6901_s1 + $0x238] sm:$0xff] }
 0x1f3   :  { %1863 = vmatprep.subr.mxu1 %v2633_v41  ;;  %1807 = vmatpush2.msra.mxu0 %v2634_v44  ;;  %v2671_v39 = vld [vmem:[%s6901_s1 + $0x510] sm:$0xff]  ;;  %v2673_v41 = vld [vmem:[%s6901_s1 + $0x4f8] sm:$0xff] }
 0x1f4   :  { %1864 = vmatpush2.msra.mxu1 %v2635_v46  ;;  %1808 = vmatprep.subr.mxu0 %v2636_v49  ;;  %v2674_v44 = vld [vmem:[%s6901_s1 + $0x230] sm:$0xff]  ;;  %v2676_v49 = vld [vmem:[%s6901_s1 + $0x218] sm:$0xff] }
 0x1f5   :  { %1865 = vmatprep.subr.mxu1 %v2637_v51  ;;  %1809 = vmatpush2.msra.mxu0 %v2638_v52  ;;  %v2675_v46 = vld [vmem:[%s6901_s1 + $0x4f0] sm:$0xff]  ;;  %v2677_v51 = vld [vmem:[%s6901_s1 + $0x4d8] sm:$0xff] }
 0x1f6   :  { %2272 = vmatprep.mubr.msk.f32.mxu0 %vm634_vm0, %v5961_v43  ;;  %1866 = vmatpush2.msra.mxu1 %v2639_v53  ;;  %v2678_v52 = vld [vmem:[%s6901_s1 + $0x210] sm:$0xff] }
 0x1f7   :  { %1811 = vmatmul.mubr.f32.vlgmr.msra.gmra.mxu0 %v5972_v47  ;;  %1867 = vmatprep.subr.mxu1 %v2640_v55  ;;  %v2679_v53 = vld [vmem:[%s6901_s1 + $0x4d0] sm:$0xff]  ;;  %v2680_v55 = vld [vmem:[%s6901_s1 + $0x4b8] sm:$0xff] }
 0x1f8   :  { %1900 = vmatprep.subr.mxu0 %v2641_v56  ;;  %1868 = vmatpush2.msra.mxu1 %v2642_v59  ;;  %v2681_v56 = vld [vmem:[%s6901_s1 + $0x9f8] sm:$0xff]  ;;  %v2682_v59 = vld [vmem:[%s6901_s1 + $0x4b0] sm:$0xff] }
 0x1f9   :  { %1901 = vmatpush1.msra.mxu0 %v2643_v60  ;;  %1869 = vmatprep.subr.mxu1 %v2644_v62  ;;  %v2684_v60 = vld [vmem:[%s6901_s1 + $0x498] sm:$0xff] }
 0x1fa   :  { %1902 = vmatprep.subr.mxu0 %v2645_v63  ;;  %2273 = vmatprep.mubr.msk.f32.mxu0 %vm634_vm0, %v5998_v58  ;;  %v2685_v62 = vld [vmem:[%s6901_s1 + $0x9d8] sm:$0xff]  ;;  %v2687_v63 = vld [vmem:[%s6901_s1 + $0x9d0] sm:$0xff] }
 0x1fb   :  { %1870 = vmatpush2.msra.mxu1 %v2646_v2  ;;  %1903 = vmatpush1.msra.mxu0 %v2647_v3  ;;  %v2688_v2 = vld [vmem:[%s6901_s1 + $0x478] sm:$0xff] }
 0x1fc   :  { %1871 = vmatprep.subr.mxu1 %v2648_v4  ;;  %1817 = vmatmul.mubr.f32.gmra.mxu0 %v6015_v0  ;;  %v2689_v3 = vld [vmem:[%s6901_s1 + $0x9b8] sm:$0xff]  ;;  %v2690_v4 = vld [vmem:[%s6901_s1 + $0x470] sm:$0xff] }
 0x1fd   :  { %1904 = vmatprep.subr.mxu0 %v2649_v5  ;;  %1872 = vmatpush2.msra.mxu1 %v2650_v6  ;;  %v2691_v5 = vld [vmem:[%s6901_s1 + $0x9b0] sm:$0xff]  ;;  %v2692_v6 = vld [vmem:[%s6901_s1 + $0x458] sm:$0xff] }
 0x1fe   :  { %1905 = vmatpush1.msra.mxu0 %v2651_v7  ;;  %1873 = vmatprep.subr.mxu1 %v2652_v8  ;;  %v2693_v7 = vld [vmem:[%s6901_s1 + $0x998] sm:$0xff]  ;;  %v2694_v8 = vld [vmem:[%s6901_s1 + $0x450] sm:$0xff] }
 0x1ff   :  { %1906 = vmatprep.subr.mxu0 %v2653_v9  ;;  %1874 = vmatpush2.msra.mxu1 %v2654_v11  ;;  %v2695_v9 = vld [vmem:[%s6901_s1 + $0x990] sm:$0xff]  ;;  %v2696_v11 = vld [vmem:[%s6901_s1 + $0x438] sm:$0xff] }
 0x200   :  { %1907 = vmatpush1.msra.mxu0 %v2655_v12  ;;  %1875 = vmatprep.subr.mxu1 %v2656_v13  ;;  %v2697_v12 = vld [vmem:[%s6901_s1 + $0x978] sm:$0xff]  ;;  %v2698_v13 = vld [vmem:[%s6901_s1 + $0x430] sm:$0xff] }
 0x201   :  { %1908 = vmatprep.subr.mxu0 %v2657_v15  ;;  %1876 = vmatpush2.msra.mxu1 %v2658_v17  ;;  %v2699_v15 = vld [vmem:[%s6901_s1 + $0x970] sm:$0xff]  ;;  %v2700_v17 = vld [vmem:[%s6901_s1 + $0x418] sm:$0xff] }
 0x202   :  { %1909 = vmatpush1.msra.mxu0 %v2659_v19  ;;  %1877 = vmatprep.subr.mxu1 %v2660_v22  ;;  %v2701_v19 = vld [vmem:[%s6901_s1 + $0x958] sm:$0xff]  ;;  %v2702_v22 = vld [vmem:[%s6901_s1 + $0x410] sm:$0xff] }
 0x203   :  { %1910 = vmatprep.subr.mxu0 %v2661_v23  ;;  %1878 = vmatpush2.msra.mxu1 %v2662_v26  ;;  %v2703_v23 = vld [vmem:[%s6901_s1 + $0x950] sm:$0xff]  ;;  %v2704_v26 = vld [vmem:[%s6901_s1 + $0x7f8] sm:$0xff] }
 0x204   :  { %1911 = vmatpush1.msra.mxu0 %v2663_v27  ;;  %1879 = vmatprep.subr.mxu1 %v2664_v30  ;;  %v2705_v27 = vld [vmem:[%s6901_s1 + $0x938] sm:$0xff]  ;;  %v2706_v30 = vld [vmem:[%s6901_s1 + $0x7f0] sm:$0xff] }
 0x205   :  { %1912 = vmatprep.subr.mxu0 %v2665_v31  ;;  %1880 = vmatpush2.msra.mxu1 %v2666_v32  ;;  %v2707_v31 = vld [vmem:[%s6901_s1 + $0x930] sm:$0xff]  ;;  %v2708_v32 = vld [vmem:[%s6901_s1 + $0x7d8] sm:$0xff] }
 0x206   :  { %1913 = vmatpush1.msra.mxu0 %v2667_v33  ;;  %1881 = vmatprep.subr.mxu1 %v2668_v36  ;;  %v2709_v33 = vld [vmem:[%s6901_s1 + $0x918] sm:$0xff]  ;;  %v2710_v36 = vld [vmem:[%s6901_s1 + $0x7d0] sm:$0xff] }
 0x207   :  { %1914 = vmatprep.subr.mxu0 %v2669_v37  ;;  %1882 = vmatpush2.msra.mxu1 %v2670_v38  ;;  %v2711_v37 = vld [vmem:[%s6901_s1 + $0x910] sm:$0xff]  ;;  %v2712_v38 = vld [vmem:[%s6901_s1 + $0x7b8] sm:$0xff] }
 0x208   :  { %1915 = vmatpush1.msra.mxu0 %v2671_v39  ;;  %1883 = vmatprep.subr.mxu1 %v2672_v40  ;;  %v2713_v39 = vld [vmem:[%s6901_s1 + $0x8f8] sm:$0xff]  ;;  %v2714_v40 = vld [vmem:[%s6901_s1 + $0x7b0] sm:$0xff] }
 0x209   :  { %1916 = vmatprep.subr.mxu0 %v2673_v41  ;;  %1884 = vmatpush2.msra.mxu1 %v2674_v44  ;;  %v2715_v41 = vld [vmem:[%s6901_s1 + $0x8f0] sm:$0xff]  ;;  %v2716_v44 = vld [vmem:[%s6901_s1 + $0x798] sm:$0xff] }
 0x20a   :  { %1917 = vmatpush1.msra.mxu0 %v2675_v46  ;;  %1885 = vmatprep.subr.mxu1 %v2676_v49  ;;  %v2717_v46 = vld [vmem:[%s6901_s1 + $0x8d8] sm:$0xff]  ;;  %v2718_v49 = vld [vmem:[%s6901_s1 + $0x790] sm:$0xff] }
 0x20b   :  { %1918 = vmatprep.subr.mxu0 %v2677_v51  ;;  %1886 = vmatpush2.msra.mxu1 %v2678_v52  ;;  %v2719_v51 = vld [vmem:[%s6901_s1 + $0x8d0] sm:$0xff]  ;;  %v2720_v52 = vld [vmem:[%s6901_s1 + $0x778] sm:$0xff] }
 0x20c   :  { %1919 = vmatpush1.msra.mxu0 %v2679_v53  ;;  %1887 = vmatprep.mubr.f32.mxu1 %v5217_v16  ;;  %v2683_v16 = vld [vmem:[%s6901_s1 + $0x9f0] sm:$0xff]  ;;  %v2721_v53 = vld [vmem:[%s6901_s1 + $0x8b8] sm:$0xff] }
 0x20d   :  { %1920 = vmatprep.subr.mxu0 %v2680_v55  ;;  %1977 = vmatprep.subr.mxu1 %v2681_v56  ;;  %v2722_v55 = vld [vmem:[%s6901_s1 + $0x770] sm:$0xff] }
 0x20e   :  { %1888 = vmatmul.mubr.f32.vlgmr.msra.gmra.mxu1 %v5239_v24  ;;  %1921 = vmatpush1.msra.mxu0 %v2682_v59  ;;  %v2686_v24 = vld [vmem:[%s6901_s1 + $0x490] sm:$0xff]  ;;  %v2724_v59 = vld [vmem:[%s6901_s1 + $0x758] sm:$0xff] }
 0x20f   :  { %1978 = vmatpush1.msra.mxu1 %v2683_v16  ;;  %1922 = vmatprep.subr.mxu0 %v2684_v60  ;;  %v2723_v56 = vld [vmem:[%s6901_s1 + $0x8b0] sm:$0xff]  ;;  %v2725_v16 = vld [vmem:[%s6901_s1 + $0x898] sm:$0xff] }
 0x210   :  { %1979 = vmatprep.subr.mxu1 %v2685_v62  ;;  %1923 = vmatpush1.msra.mxu0 %v2686_v24  ;;  %v2726_v60 = vld [vmem:[%s6901_s1 + $0x750] sm:$0xff]  ;;  %v2728_v24 = vld [vmem:[%s6901_s1 + $0x738] sm:$0xff] }
 0x211   :  { %1980 = vmatpush1.msra.mxu1 %v2687_v63  ;;  %1924 = vmatprep.subr.mxu0 %v2688_v2  ;;  %v2727_v62 = vld [vmem:[%s6901_s1 + $0x890] sm:$0xff]  ;;  %v2729_v63 = vld [vmem:[%s6901_s1 + $0x878] sm:$0xff] }
 0x212   :  { %1981 = vmatprep.subr.mxu1 %v2689_v3  ;;  %1925 = vmatpush1.msra.mxu0 %v2690_v4  ;;  %v2730_v2 = vld [vmem:[%s6901_s1 + $0x730] sm:$0xff]  ;;  %v2732_v4 = vld [vmem:[%s6901_s1 + $0x718] sm:$0xff] }
 0x213   :  { %1982 = vmatpush1.msra.mxu1 %v2691_v5  ;;  %1926 = vmatprep.subr.mxu0 %v2692_v6  ;;  %v2731_v3 = vld [vmem:[%s6901_s1 + $0x870] sm:$0xff]  ;;  %v2733_v5 = vld [vmem:[%s6901_s1 + $0x858] sm:$0xff] }
 0x214   :  { %1983 = vmatprep.subr.mxu1 %v2693_v7  ;;  %1927 = vmatpush1.msra.mxu0 %v2694_v8  ;;  %v2734_v6 = vld [vmem:[%s6901_s1 + $0x710] sm:$0xff]  ;;  %v2736_v8 = vld [vmem:[%s6901_s1 + $0x6f8] sm:$0xff] }
 0x215   :  { %1984 = vmatpush1.msra.mxu1 %v2695_v9  ;;  %1928 = vmatprep.subr.mxu0 %v2696_v11  ;;  %v2735_v7 = vld [vmem:[%s6901_s1 + $0x850] sm:$0xff]  ;;  %v2737_v9 = vld [vmem:[%s6901_s1 + $0x838] sm:$0xff] }
 0x216   :  { %1985 = vmatprep.subr.mxu1 %v2697_v12  ;;  %1929 = vmatpush1.msra.mxu0 %v2698_v13  ;;  %v2738_v11 = vld [vmem:[%s6901_s1 + $0x6f0] sm:$0xff]  ;;  %v2740_v13 = vld [vmem:[%s6901_s1 + $0x6d8] sm:$0xff] }
 0x217   :  { %1986 = vmatpush1.msra.mxu1 %v2699_v15  ;;  %1930 = vmatprep.subr.mxu0 %v2700_v17  ;;  %v2739_v12 = vld [vmem:[%s6901_s1 + $0x830] sm:$0xff]  ;;  %v2741_v15 = vld [vmem:[%s6901_s1 + $0x818] sm:$0xff] }
 0x218   :  { %1987 = vmatprep.subr.mxu1 %v2701_v19  ;;  %1931 = vmatpush1.msra.mxu0 %v2702_v22  ;;  %v2742_v17 = vld [vmem:[%s6901_s1 + $0x6d0] sm:$0xff]  ;;  %v2744_v22 = vld [vmem:[%s6901_s1 + $0x6b8] sm:$0xff] }
 0x219   :  { %1988 = vmatpush1.msra.mxu1 %v2703_v23  ;;  %1932 = vmatprep.subr.mxu0 %v2704_v26  ;;  %v2743_v19 = vld [vmem:[%s6901_s1 + $0x810] sm:$0xff]  ;;  %v2745_v23 = vld [vmem:[%s6901_s1 + $0xbf8] sm:$0xff] }
 0x21a   :  { %1989 = vmatprep.subr.mxu1 %v2705_v27  ;;  %1933 = vmatpush2.msra.mxu0 %v2706_v30  ;;  %v2746_v26 = vld [vmem:[%s6901_s1 + $0x6b0] sm:$0xff]  ;;  %v2748_v30 = vld [vmem:[%s6901_s1 + $0x698] sm:$0xff] }
 0x21b   :  { %1990 = vmatpush1.msra.mxu1 %v2707_v31  ;;  %1934 = vmatprep.subr.mxu0 %v2708_v32  ;;  %v2747_v27 = vld [vmem:[%s6901_s1 + $0xbf0] sm:$0xff]  ;;  %v2749_v31 = vld [vmem:[%s6901_s1 + $0xbd8] sm:$0xff] }
 0x21c   :  { %1991 = vmatprep.subr.mxu1 %v2709_v33  ;;  %1935 = vmatpush2.msra.mxu0 %v2710_v36  ;;  %v2750_v32 = vld [vmem:[%s6901_s1 + $0x690] sm:$0xff]  ;;  %v2752_v36 = vld [vmem:[%s6901_s1 + $0x678] sm:$0xff] }
 0x21d   :  { %1992 = vmatpush1.msra.mxu1 %v2711_v37  ;;  %1936 = vmatprep.subr.mxu0 %v2712_v38  ;;  %v2751_v33 = vld [vmem:[%s6901_s1 + $0xbd0] sm:$0xff]  ;;  %v2753_v37 = vld [vmem:[%s6901_s1 + $0xbb8] sm:$0xff] }
 0x21e   :  { %1993 = vmatprep.subr.mxu1 %v2713_v39  ;;  %1937 = vmatpush2.msra.mxu0 %v2714_v40  ;;  %v2754_v38 = vld [vmem:[%s6901_s1 + $0x670] sm:$0xff]  ;;  %v2756_v40 = vld [vmem:[%s6901_s1 + $0x658] sm:$0xff] }
 0x21f   :  { %1994 = vmatpush1.msra.mxu1 %v2715_v41  ;;  %1938 = vmatprep.subr.mxu0 %v2716_v44  ;;  %v2755_v39 = vld [vmem:[%s6901_s1 + $0xbb0] sm:$0xff]  ;;  %v2757_v41 = vld [vmem:[%s6901_s1 + $0xb98] sm:$0xff] }
 0x220   :  { %1995 = vmatprep.subr.mxu1 %v2717_v46  ;;  %1939 = vmatpush2.msra.mxu0 %v2718_v49  ;;  %v2758_v44 = vld [vmem:[%s6901_s1 + $0x650] sm:$0xff]  ;;  %v2760_v49 = vld [vmem:[%s6901_s1 + $0x638] sm:$0xff] }
 0x221   :  { %1996 = vmatpush1.msra.mxu1 %v2719_v51  ;;  %1940 = vmatprep.subr.mxu0 %v2720_v52  ;;  %v2759_v46 = vld [vmem:[%s6901_s1 + $0xb90] sm:$0xff]  ;;  %v2761_v51 = vld [vmem:[%s6901_s1 + $0xb78] sm:$0xff] }
 0x222   :  { %1997 = vmatprep.subr.mxu1 %v2721_v53  ;;  %1941 = vmatpush2.msra.mxu0 %v2722_v55  ;;  %v2762_v52 = vld [vmem:[%s6901_s1 + $0x630] sm:$0xff]  ;;  %v2764_v55 = vld [vmem:[%s6901_s1 + $0x618] sm:$0xff] }
 0x223   :  { %1998 = vmatpush1.msra.mxu1 %v2723_v56  ;;  %1942 = vmatprep.subr.mxu0 %v2724_v59  ;;  %v2763_v53 = vld [vmem:[%s6901_s1 + $0xb70] sm:$0xff]  ;;  %v2765_v56 = vld [vmem:[%s6901_s1 + $0xb58] sm:$0xff] }
 0x224   :  { %1999 = vmatprep.subr.mxu1 %v2725_v16  ;;  %1943 = vmatpush2.msra.mxu0 %v2726_v60  ;;  %v2766_v59 = vld [vmem:[%s6901_s1 + $0x610] sm:$0xff]  ;;  %v2768_v60 = vld [vmem:[%s6901_s1 + $0xb38] sm:$0xff] }
 0x225   :  { %2000 = vmatpush1.msra.mxu1 %v2727_v62  ;;  %1944 = vmatprep.subr.mxu0 %v2728_v24  ;;  %v2767_v16 = vld [vmem:[%s6901_s1 + $0xb50] sm:$0xff]  ;;  %v2769_v62 = vld [vmem:[%s6901_s1 + $0xdf8] sm:$0xff] }
 0x226   :  { %2001 = vmatprep.subr.mxu1 %v2729_v63  ;;  %1945 = vmatpush2.msra.mxu0 %v2730_v2  ;;  %v2771_v24 = vld [vmem:[%s6901_s1 + $0xdf0] sm:$0xff]  ;;  %v2773_v63 = vld [vmem:[%s6901_s1 + $0xdd8] sm:$0xff] }
 0x227   :  { %2002 = vmatpush1.msra.mxu1 %v2731_v3  ;;  %1946 = vmatprep.subr.mxu0 %v2732_v4  ;;  %v2774_v2 = vld [vmem:[%s6901_s1 + $0xb10] sm:$0xff]  ;;  %v2776_v4 = vld [vmem:[%s6901_s1 + $0xaf8] sm:$0xff] }
 0x228   :  { %2003 = vmatprep.subr.mxu1 %v2733_v5  ;;  %1947 = vmatpush2.msra.mxu0 %v2734_v6  ;;  %v2775_v3 = vld [vmem:[%s6901_s1 + $0xdd0] sm:$0xff]  ;;  %v2777_v5 = vld [vmem:[%s6901_s1 + $0xdb8] sm:$0xff] }
 0x229   :  { %2004 = vmatpush1.msra.mxu1 %v2735_v7  ;;  %1948 = vmatprep.subr.mxu0 %v2736_v8  ;;  %v2778_v6 = vld [vmem:[%s6901_s1 + $0xaf0] sm:$0xff]  ;;  %v2780_v8 = vld [vmem:[%s6901_s1 + $0xad8] sm:$0xff] }
 0x22a   :  { %2005 = vmatprep.subr.mxu1 %v2737_v9  ;;  %1949 = vmatpush2.msra.mxu0 %v2738_v11  ;;  %v2779_v7 = vld [vmem:[%s6901_s1 + $0xdb0] sm:$0xff]  ;;  %v2781_v9 = vld [vmem:[%s6901_s1 + $0xd98] sm:$0xff] }
 0x22b   :  { %2006 = vmatpush1.msra.mxu1 %v2739_v12  ;;  %1950 = vmatprep.subr.mxu0 %v2740_v13  ;;  %v2782_v11 = vld [vmem:[%s6901_s1 + $0xad0] sm:$0xff]  ;;  %v2784_v13 = vld [vmem:[%s6901_s1 + $0xab8] sm:$0xff] }
 0x22c   :  { %2007 = vmatprep.subr.mxu1 %v2741_v15  ;;  %1951 = vmatpush2.msra.mxu0 %v2742_v17  ;;  %v2783_v12 = vld [vmem:[%s6901_s1 + $0xd90] sm:$0xff]  ;;  %v2785_v15 = vld [vmem:[%s6901_s1 + $0xd78] sm:$0xff] }
 0x22d   :  { %2008 = vmatpush1.msra.mxu1 %v2743_v19  ;;  %1952 = vmatprep.subr.mxu0 %v2744_v22  ;;  %v2786_v17 = vld [vmem:[%s6901_s1 + $0xab0] sm:$0xff]  ;;  %v2788_v22 = vld [vmem:[%s6901_s1 + $0xa98] sm:$0xff] }
 0x22e   :  { %2009 = vmatprep.subr.mxu1 %v2745_v23  ;;  %1953 = vmatpush2.msra.mxu0 %v2746_v26  ;;  %v2787_v19 = vld [vmem:[%s6901_s1 + $0xd70] sm:$0xff]  ;;  %v2789_v23 = vld [vmem:[%s6901_s1 + $0xd58] sm:$0xff] }
 0x22f   :  { %2010 = vmatpush2.msra.mxu1 %v2747_v27  ;;  %1954 = vmatprep.subr.mxu0 %v2748_v30  ;;  %v2790_v26 = vld [vmem:[%s6901_s1 + $0xa90] sm:$0xff]  ;;  %v2792_v30 = vld [vmem:[%s6901_s1 + $0xa78] sm:$0xff] }
 0x230   :  { %2011 = vmatprep.subr.mxu1 %v2749_v31  ;;  %1955 = vmatpush2.msra.mxu0 %v2750_v32  ;;  %v2791_v27 = vld [vmem:[%s6901_s1 + $0xd50] sm:$0xff]  ;;  %v2793_v31 = vld [vmem:[%s6901_s1 + $0xd38] sm:$0xff] }
 0x231   :  { %2012 = vmatpush2.msra.mxu1 %v2751_v33  ;;  %1956 = vmatprep.subr.mxu0 %v2752_v36  ;;  %v2794_v32 = vld [vmem:[%s6901_s1 + $0xa70] sm:$0xff]  ;;  %v2796_v36 = vld [vmem:[%s6901_s1 + $0xa58] sm:$0xff] }
 0x232   :  { %2013 = vmatprep.subr.mxu1 %v2753_v37  ;;  %1957 = vmatpush2.msra.mxu0 %v2754_v38  ;;  %v2795_v33 = vld [vmem:[%s6901_s1 + $0xd30] sm:$0xff]  ;;  %v2797_v37 = vld [vmem:[%s6901_s1 + $0xd18] sm:$0xff] }
 0x233   :  { %2014 = vmatpush2.msra.mxu1 %v2755_v39  ;;  %1958 = vmatprep.subr.mxu0 %v2756_v40  ;;  %v2798_v38 = vld [vmem:[%s6901_s1 + $0xa50] sm:$0xff]  ;;  %v2800_v40 = vld [vmem:[%s6901_s1 + $0xa38] sm:$0xff] }
 0x234   :  { %2015 = vmatprep.subr.mxu1 %v2757_v41  ;;  %1959 = vmatpush2.msra.mxu0 %v2758_v44  ;;  %v2799_v39 = vld [vmem:[%s6901_s1 + $0xd10] sm:$0xff]  ;;  %v2805_v44 = vld [vmem:[%s6901_s1 + $0xcd8] sm:$0xff] }
 0x235   :  { %2016 = vmatpush2.msra.mxu1 %v2759_v46  ;;  %1960 = vmatprep.subr.mxu0 %v2760_v49  ;;  %v2802_v41 = vld [vmem:[%s6901_s1 + $0xa30] sm:$0xff]  ;;  %v2808_v49 = vld [vmem:[%s6901_s1 + $0xcb8] sm:$0xff] }
 0x236   :  { %2017 = vmatprep.subr.mxu1 %v2761_v51  ;;  %1961 = vmatpush2.msra.mxu0 %v2762_v52  ;;  %v2807_v46 = vld [vmem:[%s6901_s1 + $0xcd0] sm:$0xff]  ;;  %v2809_v51 = vld [vmem:[%s6901_s1 + $0x11f8] sm:$0xff] }
 0x237   :  { %2018 = vmatpush2.msra.mxu1 %v2763_v53  ;;  %1962 = vmatprep.subr.mxu0 %v2764_v55  ;;  %v2811_v52 = vld [vmem:[%s6901_s1 + $0x11f0] sm:$0xff]  ;;  %v2813_v53 = vld [vmem:[%s6901_s1 + $0x11d8] sm:$0xff] }
 0x238   :  { %2019 = vmatprep.subr.mxu1 %v2765_v56  ;;  %1963 = vmatpush2.msra.mxu0 %v2766_v59  ;;  %v2814_v55 = vld [vmem:[%s6901_s1 + $0xc90] sm:$0xff]  ;;  %v2816_v59 = vld [vmem:[%s6901_s1 + $0xc78] sm:$0xff] }
 0x239   :  { %1964 = vmatprep.mubr.f32.mxu0 %v5228_v21  ;;  %2020 = vmatpush2.msra.mxu1 %v2767_v16  ;;  %v2770_v21 = vld [vmem:[%s6901_s1 + $0xb30] sm:$0xff] }
 0x23a   :  { %1965 = vmatmul.mubr.f32.vlgmr.msra.gmra.mxu0 %v5244_v25  ;;  %2021 = vmatprep.subr.mxu1 %v2768_v60  ;;  %v2772_v25 = vld [vmem:[%s6901_s1 + $0xb18] sm:$0xff]  ;;  %v2815_v56 = vld [vmem:[%s6901_s1 + $0x11d0] sm:$0xff] }
 0x23b   :  { %2054 = vmatprep.subr.mxu0 %v2769_v62  ;;  %2022 = vmatpush2.msra.mxu1 %v2770_v21  ;;  %v2818_v16 = vld [vmem:[%s6901_s1 + $0xc70] sm:$0xff]  ;;  %v2820_v62 = vld [vmem:[%s6901_s1 + $0xc58] sm:$0xff] }
 0x23c   :  { %2055 = vmatpush1.msra.mxu0 %v2771_v24  ;;  %2023 = vmatprep.subr.mxu1 %v2772_v25  ;;  %v2819_v60 = vld [vmem:[%s6901_s1 + $0x11b0] sm:$0xff]  ;;  %v2824_v25 = vld [vmem:[%s6901_s1 + $0xc38] sm:$0xff] }
 0x23d   :  { %2056 = vmatprep.subr.mxu0 %v2773_v63  ;;  %2024 = vmatpush2.msra.mxu1 %v2774_v2  ;;  %v2822_v21 = vld [vmem:[%s6901_s1 + $0xc50] sm:$0xff]  ;;  %v2825_v63 = vld [vmem:[%s6901_s1 + $0x1178] sm:$0xff] }
 0x23e   :  { %2057 = vmatpush1.msra.mxu0 %v2775_v3  ;;  %2025 = vmatprep.subr.mxu1 %v2776_v4  ;;  %v2823_v24 = vld [vmem:[%s6901_s1 + $0x1190] sm:$0xff]  ;;  %v2828_v4 = vld [vmem:[%s6901_s1 + $0xc18] sm:$0xff] }
 0x23f   :  { %2058 = vmatprep.subr.mxu0 %v2777_v5  ;;  %2026 = vmatpush2.msra.mxu1 %v2778_v6  ;;  %v2826_v2 = vld [vmem:[%s6901_s1 + $0xc30] sm:$0xff]  ;;  %v2829_v5 = vld [vmem:[%s6901_s1 + $0x1158] sm:$0xff] }
 0x240   :  { %2059 = vmatpush1.msra.mxu0 %v2779_v7  ;;  %2027 = vmatprep.subr.mxu1 %v2780_v8  ;;  %v2827_v3 = vld [vmem:[%s6901_s1 + $0x1170] sm:$0xff]  ;;  %v2832_v8 = vld [vmem:[%s6901_s1 + $0xff8] sm:$0xff] }
 0x241   :  { %2060 = vmatprep.subr.mxu0 %v2781_v9  ;;  %2028 = vmatpush2.msra.mxu1 %v2782_v11  ;;  %v2830_v6 = vld [vmem:[%s6901_s1 + $0xc10] sm:$0xff]  ;;  %v2833_v9 = vld [vmem:[%s6901_s1 + $0x1138] sm:$0xff] }
 0x242   :  { %2061 = vmatpush1.msra.mxu0 %v2783_v12  ;;  %2029 = vmatprep.subr.mxu1 %v2784_v13  ;;  %v2831_v7 = vld [vmem:[%s6901_s1 + $0x1150] sm:$0xff]  ;;  %v2836_v13 = vld [vmem:[%s6901_s1 + $0xfd8] sm:$0xff] }
 0x243   :  { %2062 = vmatprep.subr.mxu0 %v2785_v15  ;;  %2030 = vmatpush2.msra.mxu1 %v2786_v17  ;;  %v2834_v11 = vld [vmem:[%s6901_s1 + $0xff0] sm:$0xff]  ;;  %v2837_v15 = vld [vmem:[%s6901_s1 + $0x1118] sm:$0xff] }
 0x244   :  { %2063 = vmatpush1.msra.mxu0 %v2787_v19  ;;  %2031 = vmatprep.subr.mxu1 %v2788_v22  ;;  %v2835_v12 = vld [vmem:[%s6901_s1 + $0x1130] sm:$0xff]  ;;  %v2840_v22 = vld [vmem:[%s6901_s1 + $0xfb8] sm:$0xff] }
 0x245   :  { %2064 = vmatprep.subr.mxu0 %v2789_v23  ;;  %2032 = vmatpush2.msra.mxu1 %v2790_v26  ;;  %v2838_v17 = vld [vmem:[%s6901_s1 + $0xfd0] sm:$0xff]  ;;  %v2841_v23 = vld [vmem:[%s6901_s1 + $0x10f8] sm:$0xff] }
 0x246   :  { %2065 = vmatpush1.msra.mxu0 %v2791_v27  ;;  %2033 = vmatprep.subr.mxu1 %v2792_v30  ;;  %v2839_v19 = vld [vmem:[%s6901_s1 + $0x1110] sm:$0xff]  ;;  %v2844_v30 = vld [vmem:[%s6901_s1 + $0xf98] sm:$0xff] }
 0x247   :  { %2066 = vmatprep.subr.mxu0 %v2793_v31  ;;  %2034 = vmatpush2.msra.mxu1 %v2794_v32  ;;  %v2842_v26 = vld [vmem:[%s6901_s1 + $0xfb0] sm:$0xff]  ;;  %v2845_v31 = vld [vmem:[%s6901_s1 + $0x10d8] sm:$0xff] }
 0x248   :  { %2067 = vmatpush1.msra.mxu0 %v2795_v33  ;;  %2035 = vmatprep.subr.mxu1 %v2796_v36  ;;  %v2843_v27 = vld [vmem:[%s6901_s1 + $0x10f0] sm:$0xff]  ;;  %v2848_v36 = vld [vmem:[%s6901_s1 + $0xf78] sm:$0xff] }
 0x249   :  { %2068 = vmatprep.subr.mxu0 %v2797_v37  ;;  %1893 = vmatprep.mubr.f32.mxu1 %v5595_v28  ;;  %v2801_v28 = vld [vmem:[%s6901_s1 + $0xcf8] sm:$0xff]  ;;  %v2846_v32 = vld [vmem:[%s6901_s1 + $0xf90] sm:$0xff] }
 0x24a   :  { %2036 = vmatpush2.msra.mxu1 %v2798_v38  ;;  %2069 = vmatpush1.msra.mxu0 %v2799_v39  ;;  %v2847_v33 = vld [vmem:[%s6901_s1 + $0x10d0] sm:$0xff]  ;;  %v2849_v37 = vld [vmem:[%s6901_s1 + $0x10b8] sm:$0xff] }
 0x24b   :  { %1894 = vmatmul.mubr.f32.gmra.mxu1 %v5617_v34  ;;  %1970 = vmatprep.mubr.f32.mxu0 %v5600_v29  ;;  %v2803_v29 = vld [vmem:[%s6901_s1 + $0xcf0] sm:$0xff]  ;;  %v2804_v34 = vld [vmem:[%s6901_s1 + $0xa18] sm:$0xff] }
 0x24c   :  { %2037 = vmatprep.subr.mxu1 %v2800_v40  ;;  %2070 = vmatprep.subr.mxu0 %v2801_v28  ;;  %v2850_v38 = vld [vmem:[%s6901_s1 + $0xf70] sm:$0xff]  ;;  %v2852_v40 = vld [vmem:[%s6901_s1 + $0xf58] sm:$0xff] }
 0x24d   :  { %1971 = vmatmul.mubr.f32.gmra.mxu0 %v5622_v35  ;;  %2038 = vmatpush2.msra.mxu1 %v2802_v41  ;;  %v2806_v35 = vld [vmem:[%s6901_s1 + $0xa10] sm:$0xff]  ;;  %v2853_v28 = vld [vmem:[%s6901_s1 + $0x1098] sm:$0xff] }
 0x24e   :  { %2071 = vmatpush1.msra.mxu0 %v2803_v29  ;;  %2039 = vmatprep.subr.mxu1 %v2804_v34  ;;  %v2851_v39 = vld [vmem:[%s6901_s1 + $0x10b0] sm:$0xff]  ;;  %v2856_v34 = vld [vmem:[%s6901_s1 + $0xf38] sm:$0xff] }
 0x24f   :  { %2072 = vmatprep.subr.mxu0 %v2805_v44  ;;  %2040 = vmatpush2.msra.mxu1 %v2806_v35  ;;  %v2854_v41 = vld [vmem:[%s6901_s1 + $0xf50] sm:$0xff]  ;;  %v2857_v44 = vld [vmem:[%s6901_s1 + $0x1078] sm:$0xff] }
 0x250   :  { %2041 = vmatprep.mubr.f32.mxu1 %v5649_v42  ;;  %2073 = vmatpush1.msra.mxu0 %v2807_v46  ;;  %v2810_v42 = vld [vmem:[%s6901_s1 + $0xcb0] sm:$0xff] }
 0x251   :  { %2042 = vmatmul.mubr.f32.vlgmr.msra.gmra.mxu1 %v5660_v45  ;;  %2074 = vmatprep.subr.mxu0 %v2808_v49  ;;  %v2812_v45 = vld [vmem:[%s6901_s1 + $0xc98] sm:$0xff]  ;;  %v2855_v29 = vld [vmem:[%s6901_s1 + $0x1090] sm:$0xff] }
 0x252   :  { %2131 = vmatprep.subr.mxu1 %v2809_v51  ;;  %2075 = vmatpush1.msra.mxu0 %v2810_v42  ;;  %v2858_v35 = vld [vmem:[%s6901_s1 + $0xf30] sm:$0xff]  ;;  %v2860_v49 = vld [vmem:[%s6901_s1 + $0xf18] sm:$0xff] }
 0x253   :  { %2132 = vmatpush1.msra.mxu1 %v2811_v52  ;;  %2076 = vmatprep.subr.mxu0 %v2812_v45  ;;  %v2859_v46 = vld [vmem:[%s6901_s1 + $0x1070] sm:$0xff]  ;;  %v2861_v51 = vld [vmem:[%s6901_s1 + $0x1058] sm:$0xff] }
 0x254   :  { %2133 = vmatprep.subr.mxu1 %v2813_v53  ;;  %2047 = vmatprep.mubr.f32.mxu1 %v5697_v54  ;;  %v2817_v54 = vld [vmem:[%s6901_s1 + $0x11b8] sm:$0xff]  ;;  %v2862_v42 = vld [vmem:[%s6901_s1 + $0xf10] sm:$0xff] }
 0x255   :  { %2077 = vmatpush1.msra.mxu0 %v2814_v55  ;;  %2134 = vmatpush1.msra.mxu1 %v2815_v56  ;;  %v2863_v52 = vld [vmem:[%s6901_s1 + $0x1050] sm:$0xff]  ;;  %v2864_v45 = vld [vmem:[%s6901_s1 + $0xef8] sm:$0xff] }
 0x256   :  { %2078 = vmatprep.subr.mxu0 %v2816_v59  ;;  %2048 = vmatmul.mubr.f32.gmra.mxu1 %v5708_v57  ;;  %v2821_v57 = vld [vmem:[%s6901_s1 + $0x1198] sm:$0xff]  ;;  %v2866_v55 = vld [vmem:[%s6901_s1 + $0xef0] sm:$0xff] }
 0x257   :  { %2135 = vmatprep.subr.mxu1 %v2817_v54  ;;  %2079 = vmatpush1.msra.mxu0 %v2818_v16  ;;  %v2865_v53 = vld [vmem:[%s6901_s1 + $0x1038] sm:$0xff]  ;;  %v2867_v56 = vld [vmem:[%s6901_s1 + $0x1030] sm:$0xff] }
 0x258   :  { %2136 = vmatpush1.msra.mxu1 %v2819_v60  ;;  %2080 = vmatprep.subr.mxu0 %v2820_v62  ;;  %v2868_v59 = vld [vmem:[%s6901_s1 + $0xed8] sm:$0xff]  ;;  %v2870_v16 = vld [vmem:[%s6901_s1 + $0xed0] sm:$0xff] }
 0x259   :  { %2137 = vmatprep.subr.mxu1 %v2821_v57  ;;  %2081 = vmatpush1.msra.mxu0 %v2822_v21  ;;  %v2869_v54 = vld [vmem:[%s6901_s1 + $0x1018] sm:$0xff]  ;;  %v2871_v60 = vld [vmem:[%s6901_s1 + $0x1010] sm:$0xff] }
 0x25a   :  { %2138 = vmatpush1.msra.mxu1 %v2823_v24  ;;  %2082 = vmatprep.subr.mxu0 %v2824_v25  ;;  %v2872_v62 = vld [vmem:[%s6901_s1 + $0xeb8] sm:$0xff]  ;;  %v2874_v21 = vld [vmem:[%s6901_s1 + $0xeb0] sm:$0xff] }
 0x25b   :  { %2139 = vmatprep.subr.mxu1 %v2825_v63  ;;  %2083 = vmatpush1.msra.mxu0 %v2826_v2  ;;  %v2873_v57 = vld [vmem:[%s6901_s1 + $0x12b8] sm:$0xff]  ;;  %v2875_v24 = vld [vmem:[%s6901_s1 + $0x12b0] sm:$0xff] }
 0x25c   :  { %2140 = vmatpush1.msra.mxu1 %v2827_v3  ;;  %2084 = vmatprep.subr.mxu0 %v2828_v4  ;;  %v2876_v25 = vld [vmem:[%s6901_s1 + $0xe98] sm:$0xff]  ;;  %v2878_v2 = vld [vmem:[%s6901_s1 + $0xe90] sm:$0xff] }
 0x25d   :  { %2141 = vmatprep.subr.mxu1 %v2829_v5  ;;  %2085 = vmatpush1.msra.mxu0 %v2830_v6  ;;  %v2877_v63 = vld [vmem:[%s6901_s1 + $0x1298] sm:$0xff]  ;;  %v2879_v3 = vld [vmem:[%s6901_s1 + $0x1290] sm:$0xff] }
 0x25e   :  { %2142 = vmatpush1.msra.mxu1 %v2831_v7  ;;  %2086 = vmatprep.subr.mxu0 %v2832_v8  ;;  %v2880_v4 = vld [vmem:[%s6901_s1 + $0xe78] sm:$0xff]  ;;  %v2882_v6 = vld [vmem:[%s6901_s1 + $0xe70] sm:$0xff] }
 0x25f   :  { %2143 = vmatprep.subr.mxu1 %v2833_v9  ;;  %2087 = vmatpush2.msra.mxu0 %v2834_v11  ;;  %v2881_v5 = vld [vmem:[%s6901_s1 + $0x1278] sm:$0xff]  ;;  %v2883_v7 = vld [vmem:[%s6901_s1 + $0x1270] sm:$0xff] }
 0x260   :  { %2144 = vmatpush1.msra.mxu1 %v2835_v12  ;;  %2088 = vmatprep.subr.mxu0 %v2836_v13  ;;  %v2884_v8 = vld [vmem:[%s6901_s1 + $0xe58] sm:$0xff]  ;;  %v2886_v11 = vld [vmem:[%s6901_s1 + $0xe50] sm:$0xff] }
 0x261   :  { %2145 = vmatprep.subr.mxu1 %v2837_v15  ;;  %2089 = vmatpush2.msra.mxu0 %v2838_v17  ;;  %v2885_v9 = vld [vmem:[%s6901_s1 + $0x1258] sm:$0xff]  ;;  %v2887_v12 = vld [vmem:[%s6901_s1 + $0x1250] sm:$0xff] }
 0x262   :  { %2146 = vmatpush1.msra.mxu1 %v2839_v19  ;;  %2090 = vmatprep.subr.mxu0 %v2840_v22  ;;  %v2888_v13 = vld [vmem:[%s6901_s1 + $0xe38] sm:$0xff]  ;;  %v2890_v17 = vld [vmem:[%s6901_s1 + $0xe30] sm:$0xff] }
 0x263   :  { %2147 = vmatprep.subr.mxu1 %v2841_v23  ;;  %2091 = vmatpush2.msra.mxu0 %v2842_v26  ;;  %v2889_v15 = vld [vmem:[%s6901_s1 + $0x1238] sm:$0xff]  ;;  %v2891_v19 = vld [vmem:[%s6901_s1 + $0x1230] sm:$0xff] }
 0x264   :  { %2148 = vmatpush1.msra.mxu1 %v2843_v27  ;;  %2092 = vmatprep.subr.mxu0 %v2844_v30  ;;  %v2892_v22 = vld [vmem:[%s6901_s1 + $0xe18] sm:$0xff]  ;;  %v2894_v26 = vld [vmem:[%s6901_s1 + $0xe10] sm:$0xff]  ;;  %v861_v30 = vpop.f32.mrf.mxu0 }
 0x265   :  { %2149 = vmatprep.subr.mxu1 %v2845_v31  ;;  %2093 = vmatpush2.msra.mxu0 %v2846_v32  ;;  %v2893_v23 = vld [vmem:[%s6901_s1 + $0x1218] sm:$0xff]  ;;  %v2895_v27 = vld [vmem:[%s6901_s1 + $0x1210] sm:$0xff] }
 0x266   :  { %2150 = vmatpush1.msra.mxu1 %v2847_v33  ;;  %2094 = vmatprep.subr.mxu0 %v2848_v36  ;;  %v863_v32 = vpop.f32.mrf.mxu0 }
 0x267   :  { %2151 = vmatprep.subr.mxu1 %v2849_v37  ;;  %2095 = vmatpush2.msra.mxu0 %v2850_v38 }
 0x268   :  { %2152 = vmatpush1.msra.mxu1 %v2851_v39  ;;  %2096 = vmatprep.subr.mxu0 %v2852_v40 }
 0x269   :  { %2153 = vmatprep.subr.mxu1 %v2853_v28  ;;  %2097 = vmatpush2.msra.mxu0 %v2854_v41 }
 0x26a   :  { %2154 = vmatpush1.msra.mxu1 %v2855_v29  ;;  %2098 = vmatprep.subr.mxu0 %v2856_v34 }
 0x26b   :  { %2155 = vmatprep.subr.mxu1 %v2857_v44  ;;  %2099 = vmatpush2.msra.mxu0 %v2858_v35 }
 0x26c   :  { %2156 = vmatpush1.msra.mxu1 %v2859_v46  ;;  %2100 = vmatprep.subr.mxu0 %v2860_v49 }
 0x26d   :  { %2157 = vmatprep.subr.mxu1 %v2861_v51  ;;  %2101 = vmatpush2.msra.mxu0 %v2862_v42 }
 0x26e   :  { %2158 = vmatpush1.msra.mxu1 %v2863_v52  ;;  %2102 = vmatprep.subr.mxu0 %v2864_v45 }
 0x26f   :  { %2159 = vmatprep.subr.mxu1 %v2865_v53  ;;  %2103 = vmatpush2.msra.mxu0 %v2866_v55 }
 0x270   :  { %2160 = vmatpush1.msra.mxu1 %v2867_v56  ;;  %2104 = vmatprep.subr.mxu0 %v2868_v59 }
 0x271   :  { %2161 = vmatprep.subr.mxu1 %v2869_v54  ;;  %2105 = vmatpush2.msra.mxu0 %v2870_v16 }
 0x272   :  { %2162 = vmatpush1.msra.mxu1 %v2871_v60  ;;  %2106 = vmatprep.subr.mxu0 %v2872_v62 }
 0x273   :  { %2183 = vmatprep.subr.mxu1 %v2873_v57  ;;  %2107 = vmatpush2.msra.mxu0 %v2874_v21 }
 0x274   :  { %2184 = vmatpush2.msra.mxu1 %v2875_v24  ;;  %2108 = vmatprep.subr.mxu0 %v2876_v25 }
 0x275   :  { %2185 = vmatprep.subr.mxu1 %v2877_v63  ;;  %2109 = vmatpush2.msra.mxu0 %v2878_v2 }
 0x276   :  { %2186 = vmatpush2.msra.mxu1 %v2879_v3  ;;  %2110 = vmatprep.subr.mxu0 %v2880_v4 }
 0x277   :  { %2187 = vmatprep.subr.mxu1 %v2881_v5  ;;  %2111 = vmatpush2.msra.mxu0 %v2882_v6 }
 0x278   :  { %2188 = vmatpush2.msra.mxu1 %v2883_v7  ;;  %2112 = vmatprep.subr.mxu0 %v2884_v8 }
 0x279   :  { %2189 = vmatprep.subr.mxu1 %v2885_v9  ;;  %2113 = vmatpush2.msra.mxu0 %v2886_v11 }
 0x27a   :  { %2190 = vmatpush2.msra.mxu1 %v2887_v12  ;;  %2114 = vmatprep.subr.mxu0 %v2888_v13 }
 0x27b   :  { %2191 = vmatprep.subr.mxu1 %v2889_v15  ;;  %2115 = vmatpush2.msra.mxu0 %v2890_v17 }
 0x27c   :  { %2192 = vmatpush2.msra.mxu1 %v2891_v19  ;;  %2116 = vmatprep.subr.mxu0 %v2892_v22 }
 0x27d   :  { %2193 = vmatprep.subr.mxu1 %v2893_v23  ;;  %2117 = vmatpush2.msra.mxu0 %v2894_v26 }
 0x27e   :  { %2118 = vmatprep.mubr.f32.mxu0 %v5671_v48  ;;  %2194 = vmatpush2.msra.mxu1 %v2895_v27  ;;  %v6792_v48 = vpop.f32.mrf.mxu1 }
 0x27f   :  { %2274 = vmatprep.mubr.msk.f32.mxu1 %vm634_vm0, %v5961_v43  ;;  %2119 = vmatmul.mubr.f32.vlgmr.msra.gmra.mxu0 %v5680_v50  ;;  %v867_v50 = vpop.f32.mrf.mxu0 }
 0x280   :  { %2196 = vmatmul.mubr.f32.vlgmr.msra.gmra.mxu1 %v5972_v47  ;;  %2124 = vmatprep.mubr.f32.mxu0 %v5723_v61  ;;  %v6794_v31 = vpop.f32.mrf.mxu1 }
 0x281   :  { %2275 = vmatprep.mubr.msk.f32.mxu1 %vm634_vm0, %v5998_v58  ;;  %v869_v47 = vpop.f32.mrf.mxu0 }
 0x282   :  { %v6796_v43 = vpop.f32.mrf.mxu1 }
 0x283   :  { %2125 = vmatmul.mubr.f32.gmra.mxu0 %v5738_v1  ;;  %v6800_v36 = vpop.f32.mrf.mxu0 }
 0x284   :  { %2202 = vmatmul.mubr.f32.gmra.mxu1 %v6015_v0  ;;  %v6798_v33 = vpop.f32.mrf.mxu1 }
 0x285   :  { %v6802_v37 = vpop.f32.mrf.mxu0 }
 0x286   :  { %v1092_v61 = vpop.f32.mrf.mxu1 }
 0x287   :  { %v6806_v0 = vpop.f32.mrf.mxu0 }
 0x288   :  { %v1094_v58 = vpop.f32.mrf.mxu1 }
 0x289   :  { %v6810_v39 = vpop.f32.mrf.mxu0 }
 0x28a   :  { %v6804_v1 = vpop.f32.mrf.mxu1  ;;  %6905 = vst [vmem:[#allocation2_spill] sm:$0xff] %v6810_v39 }
 0x28b   :  { %v1169_v28 = vpop.f32.mrf.mxu0 }
 0x28c   :  { %v6808_v38 = vpop.f32.mrf.mxu1  ;;  %v1170_v19 = vadd.f32 %v1169_v28, %v1092_v61  ;;  %v2222_v61 = vlaneseq }
 0x28d   :  { %v1171_v29 = vpop.f32.mrf.mxu0 }
 0x28e   :  { %v1246_v40 = vpop.f32.mrf.mxu1  ;;  %v1172_v26 = vadd.f32 %v1171_v29, %v1094_v58 }
 0x28f   :  { %v1175_v34 = vpop.f32.mrf.mxu0  ;;  %v1247_v27 = vadd.f32 %v1246_v40, %v1170_v19 }
 0x290   :  { %v1248_v41 = vpop.f32.mrf.mxu1 }
 0x291   :  { %v1177_v35 = vpop.f32.mrf.mxu0 }
 0x292   :  { %v6812_v44 = vpop.f32.mrf.mxu1 }
 0x293   :  { %v1323_v49 = vpop.f32.mrf.mxu0 }
 0x294   :  { %v6814_v46 = vpop.f32.mrf.mxu1 }
 0x295   :  { %v1325_v42 = vpop.f32.mrf.mxu0 }
 0x296   :  { %v1400_v51 = vpop.f32.mrf.mxu1 }
 0x297   :  { %v6816_v45 = vpop.f32.mrf.mxu0 }
 0x298   :  { %v1402_v52 = vpop.f32.mrf.mxu1 }
 0x299   :  { %v6820_v55 = vpop.f32.mrf.mxu0 }
 0x29a   :  { %v6818_v53 = vpop.f32.mrf.mxu1 }
 0x29b   :  { %6906 = vst [vmem:[#allocation3_spill] sm:$0xff] %v6818_v53  ;;  %v1504_v59 = vpop.f32.mrf.mxu0  ;;  %v868_v53 = vadd.f32 %v867_v50, %v4843_v10 }
 0x29c   :  { %v6822_v56 = vpop.f32.mrf.mxu1 }
 0x29d   :  { %6907 = vst [vmem:[#allocation4_spill] sm:$0xff] %v6822_v56  ;;  %v1506_v16 = vpop.f32.mrf.mxu0  ;;  %v1249_v56 = vadd.f32 %v1248_v41, %v1172_v26  ;;  %v945_v40 = vadd.f32 %v6796_v43, %v868_v53  ;;  %v2223_v41 = vshrl.u32 %v2222_v61, 7 }
 0x29e   :  { %v1581_v54 = vpop.f32.mrf.mxu1 }
 0x29f   :  { %v1510_v62 = vpop.f32.mrf.mxu0 }
 0x2a0   :  { %v1583_v60 = vpop.f32.mrf.mxu1 }
 0x2a1   :  { %v6824_v21 = vpop.f32.mrf.mxu0 }
 0x2a2   :  { %v1587_v57 = vpop.f32.mrf.mxu1 }
 0x2a3   :  { %v1658_v63 = vpop.f32.mrf.mxu0 }
 0x2a4   :  { %v1589_v24 = vpop.f32.mrf.mxu1 }
 0x2a5   :  { %v1660_v3 = vpop.f32.mrf.mxu0 }
 0x2a6   :  { %v1735_v25 = vpop.f32.mrf.mxu1 }
 0x2a7   :  { %v1664_v5 = vpop.f32.mrf.mxu0 }
 0x2a8   :  { %v6826_v2 = vpop.f32.mrf.mxu1 }
 0x2a9   :  { %v6832_v7 = vpop.f32.mrf.mxu0 }
 0x2aa   :  { %v6828_v4 = vpop.f32.mrf.mxu1  ;;  %6910 = vst [vmem:[#allocation7_spill] sm:$0xff] %v6832_v7  ;;  %v1326_v7 = vadd.f32 %v1325_v42, %v1249_v56 }
 0x2ab   :  { %6908 = vst [vmem:[#allocation5_spill] sm:$0xff] %v6828_v4  ;;  %v864_v4 = vadd.f32 %v863_v32, %v4501_v20 }
 0x2ac   :  { %v6830_v6 = vpop.f32.mrf.mxu1  ;;  %v6858_v50 = vadd.f32 %v1402_v52, %v1326_v7 }
 0x2ad   :  { %6909 = vst [vmem:[#allocation6_spill] sm:$0xff] %v6830_v6  ;;  %v862_v6 = vadd.f32 %v861_v30, %v4490_v14  ;;  %v941_v58 = vadd.f32 %v6794_v31, %v864_v4  ;;  %v1582_v14 = vadd.f32 %v1581_v54, %v1504_v59 }
 0x2af   :  { %v939_v28 = vadd.f32 %v6792_v48, %v862_v6  ;;  %v1178_v48 = vadd.f32 %v1177_v35, %v6808_v38  ;;  %v1659_v31 = vadd.f32 %v1658_v63, %v1582_v14  ;;  %v1018_v43 = vadd.f32 %v6802_v37, %v941_v58  ;;  %v2220_v63 = vld [vmem:[%s6903_s2] sm:$0x3] }
 0x2b1   :  { %v1016_v32 = vadd.f32 %v6800_v36, %v939_v28  ;;  %v1255_v42 = vadd.f32 %v6814_v46, %v1178_v48  ;;  %v2209_v38 = vmax.f32 %v1018_v43, %v6858_v50  ;;  %v1736_v59 = vadd.f32 %v1735_v25, %v1659_v31 }
 0x2b3   :  { %v1332_v46 = vadd.f32 %v6820_v55, %v1255_v42 }
 0x2b7   :  { %v6834_v9 = vpop.f32.mrf.mxu0 }
 0x2b8   :  { %6911 = vst [vmem:[#allocation8_spill] sm:$0xff] %v6834_v9 }
 0x2b9   :  { %v6836_v12 = vpop.f32.mrf.mxu0 }
 0x2ba   :  { %6912 = vst [vmem:[#allocation9_spill] sm:$0xff] %v6836_v12  ;;  %v1324_v12 = vadd.f32 %v1323_v49, %v1247_v27  ;;  %v6863_v49 = vadd.f32 %v6806_v0, %v945_v40  ;;  %v1590_v0 = vadd.f32 %v1589_v24, %v6824_v21 }
 0x2bc   :  { %v6838_v15 = vpop.f32.mrf.mxu0  ;;  %v6851_v29 = vadd.f32 %v1400_v51, %v1324_v12 }
 0x2bd   :  { %6913 = vst [vmem:[#allocation10_spill] sm:$0xff] %v6838_v15  ;;  %v870_v15 = vadd.f32 %v869_v47, %v4857_v18  ;;  %v1176_v18 = vadd.f32 %v1175_v34, %v6804_v1  ;;  %v1584_v47 = vadd.f32 %v1583_v60, %v1506_v16  ;;  %v1588_v1 = vadd.f32 %v1587_v57, %v1510_v62 }
 0x2be   :  { %v6842_v22 = vpop.f32.mrf.mxu0  ;;  %v2208_v36 = vmax.f32 %v1016_v32, %v6851_v29  ;;  %v2224_v16 = vsub.s32 0, %v2223_v41  ;;  %v6921_v29 = vld [vmem:[#allocation4_spill] sm:$0xff] }
 0x2bf   :  { %v6854_v10 = vadd.f32 %v6798_v33, %v870_v15  ;;  %v1253_v51 = vadd.f32 %v6812_v44, %v1176_v18  ;;  %v1661_v34 = vadd.f32 %v1660_v3, %v1584_v47  ;;  %v1665_v54 = vadd.f32 %v1664_v5, %v1588_v1  ;;  %v6915_v3 = vld [vmem:[#allocation7_spill] sm:$0xff]  ;;  %v6916_v6 = vld [vmem:[#allocation8_spill] sm:$0xff]  ;;  %v6919_v15 = vld [vmem:[#allocation5_spill] sm:$0xff] }
 0x2c0   :  { %v1667_v4 = vadd.f32 %v6915_v3, %v1590_v0  ;;  %v1813_v21 = vadd.f32 %v6916_v6, %v1736_v59  ;;  %v2228_v5 = vsub.s32 1, %v2223_v41  ;;  %v2225_v26 = vrot.slane %v2220_v63, %v2224_v16 }
 0x2c1   :  { %v1330_v35 = vadd.f32 %v6816_v45, %v1253_v51  ;;  %v1738_v45 = vadd.f32 %v6826_v2, %v1661_v34  ;;  %v6920_v19 = vld [vmem:[#allocation9_spill] sm:$0xff]  ;;  %v1409_v14 = vadd.f32 %v6921_v29, %v1332_v46  ;;  %v6924_v51 = vld [vmem:[#allocation2_spill] sm:$0xff] }
 0x2c2   :  { %v2229_v50 = vrot.slane %v2220_v63, %v2228_v5 }
 0x2ce   :  { %v1889_v8 = vpop.f32.mrf.mxu1 }
 0x2d0   :  { %v1891_v11 = vpop.f32.mrf.mxu1 }
 0x2fa   :  { %v1966_v39 = vpop.f32.mrf.mxu0 }
 0x2fb   :  { %v1967_v33 = vadd.f32 %v1966_v39, %v1889_v8 }
 0x30b   :  { %v1895_v13 = vpop.f32.mrf.mxu1 }
 0x30d   :  { %v6840_v17 = vpop.f32.mrf.mxu1 }
 0x30e   :  { %6914 = vst [vmem:[#allocation11_spill] sm:$0xff] %v6840_v17  ;;  %v1968_v17 = vpop.f32.mrf.mxu0 }
 0x30f   :  { %v1969_v56 = vadd.f32 %v1968_v17, %v1891_v11  ;;  %v1742_v17 = vadd.f32 %v6919_v15, %v1665_v54 }
 0x310   :  { %v1972_v30 = vpop.f32.mrf.mxu0 }
 0x311   :  { %v2043_v23 = vpop.f32.mrf.mxu1  ;;  %v1973_v60 = vadd.f32 %v1972_v30, %v1895_v13  ;;  %v6922_v30 = vld [vmem:[#allocation6_spill] sm:$0xff] }
 0x312   :  { %v1974_v52 = vpop.f32.mrf.mxu0  ;;  %v2044_v37 = vadd.f32 %v2043_v23, %v1967_v33  ;;  %v1815_v23 = vadd.f32 %v6920_v19, %v1738_v45  ;;  %v1744_v32 = vadd.f32 %v6922_v30, %v1667_v4  ;;  %v1024_v33 = vadd.f32 %v6924_v51, %v6854_v10 }
 0x313   :  { %v2045_v9 = vpop.f32.mrf.mxu1 }
 0x314   :  { %v2046_v62 = vadd.f32 %v2045_v9, %v1969_v56  ;;  %v6918_v9 = vld [vmem:[#allocation3_spill] sm:$0xff]  ;;  %v1821_v1 = vadd.f32 %v6842_v22, %v1744_v32 }
 0x315   :  { %v6917_v7 = vld [vmem:[#allocation11_spill] sm:$0xff]  ;;  %v1407_v13 = vadd.f32 %v6918_v9, %v1330_v35 }
 0x316   :  { %v2049_v20 = vpop.f32.mrf.mxu1  ;;  %v1975_v8 = vadd.f32 %v1974_v52, %v6917_v7 }
 0x317   :  { %v2050_v11 = vadd.f32 %v2049_v20, %v1973_v60  ;;  %v6923_v20 = vld [vmem:[#allocation10_spill] sm:$0xff]  ;;  %v2210_v42 = vmax.f32 %v6863_v49, %v1407_v13 }
 0x318   :  { %v2051_v53 = vpop.f32.mrf.mxu1  ;;  %v1819_v18 = vadd.f32 %v6923_v20, %v1742_v17 }
 0x319   :  { %v2052_v61 = vadd.f32 %v2051_v53, %v1975_v8 }
 0x33f   :  { %v2120_v44 = vpop.f32.mrf.mxu0 }
 0x340   :  { %v2197_v39 = vpop.f32.mrf.mxu1  ;;  %v2121_v57 = vadd.f32 %v2120_v44, %v2044_v37  ;;  %v2211_v37 = vmax.f32 %v1024_v33, %v1409_v14 }
 0x341   :  { %v2122_v24 = vpop.f32.mrf.mxu0 }
 0x342   :  { %v2199_v25 = vpop.f32.mrf.mxu1  ;;  %v2198_v55 = vadd.f32 %v2197_v39, %v2121_v57  ;;  %v2123_v12 = vadd.f32 %v2122_v24, %v2046_v62 }
 0x343   :  { %v2126_v2 = vpop.f32.mrf.mxu0 }
 0x344   :  { %v2203_v27 = vpop.f32.mrf.mxu1  ;;  %v2212_v28 = vmax.f32 %v1813_v21, %v2198_v55  ;;  %v2200_v58 = vadd.f32 %v2199_v25, %v2123_v12  ;;  %v2127_v40 = vadd.f32 %v2126_v2, %v2050_v11 }
 0x345   :  { %v2128_v48 = vpop.f32.mrf.mxu0 }
 0x346   :  { %v2216_v47 = vmax.f32 %v2208_v36, %v2212_v28  ;;  %v2213_v31 = vmax.f32 %v1815_v23, %v2200_v58  ;;  %v2204_v41 = vadd.f32 %v2203_v27, %v2127_v40  ;;  %v2129_v43 = vadd.f32 %v2128_v48, %v2052_v61  ;;  %v2205_v34 = vpop.f32.mrf.mxu1 }
 0x348   :  { %v2232_v52 = vadd.f32 %v2225_v26, %v2216_v47  ;;  %v2217_v53 = vmax.f32 %v2209_v38, %v2213_v31  ;;  %v2214_v35 = vmax.f32 %v1819_v18, %v2204_v41  ;;  %v2206_v56 = vadd.f32 %v2205_v34, %v2129_v43 }
 0x34a   :  { %v2236_v0 = vmax.f32 %v2232_v52, 0.0  ;;  %v2233_v59 = vadd.f32 %v2229_v50, %v2217_v53  ;;  %v2218_v54 = vmax.f32 %v2210_v42, %v2214_v35  ;;  %v2215_v36 = vmax.f32 %v1821_v1, %v2206_v56 }
 0x34c   :  { %2240 = vst [vmem:[%s6904_s3] sm:$0xff] %v2236_v0  ;;  %v2237_v44 = vmax.f32 %v2233_v59, 0.0  ;;  %v2234_v10 = vadd.f32 %v2225_v26, %v2218_v54  ;;  %v2219_v39 = vmax.f32 %v2211_v37, %v2215_v36 }
 0x34e   :  { %2241 = vst [vmem:[%s6904_s3 + $0x8] sm:$0xff] %v2237_v44  ;;  %v2238_v22 = vmax.f32 %v2234_v10, 0.0  ;;  %v2235_v49 = vadd.f32 %v2229_v50, %v2219_v39 }
 0x350   :  { %2242 = vst [vmem:[%s6904_s3 + $0x10] sm:$0xff] %v2238_v22  ;;  %v2239_v38 = vmax.f32 %v2235_v49, 0.0 }
 0x352   :  { %2243 = vst [vmem:[%s6904_s3 + $0x18] sm:$0xff] %v2239_v38 }

</bundles_post_ra>
